<compile_context>
chip_gen: v7x
topology: tpu7x:2x2x1
jax: 0.10.0
libtpu: 0.0.40
codegen_flags: <defaults>
</compile_context>

<pallas_src>
import functools

import jax
import jax.numpy as jnp
from jax import lax
from jax.experimental import pallas as pl
from jax.experimental.pallas import tpu as pltpu

LANE = 128          # last-dim vreg tile
SUBLANE_BF16 = 16   # bf16 packs 2 rows per sublane -> dense (16, 128) tiles

# VMEM budgeting: keep pipelined tiles inside ~44 MiB so the whole kernel plus
# compiler scratch stays under the 56 MiB limit -> fits v7x's 64 MiB physical
# VMEM with headroom; still large enough to amortize grid-step overhead
# everywhere.
_VMEM_LIMIT_BYTES = 56 * 1024 * 1024
_TILE_BUDGET_BYTES = 44 * 1024 * 1024


# ----------------------------------------------------------------------------
# Small helpers
# ----------------------------------------------------------------------------
def _matmul_dtype():
    # bf16 operands feed the MXU natively on TPU; non-TPU (CPU interpret)
    # executors do not support bf16 x bf16 -> f32 dots, so fall back to f32.
    return jnp.bfloat16 if jax.default_backend() == "tpu" else jnp.float32


def _round_up(x, m):
    return (x + m - 1) // m * m


def _cdiv(a, b):
    return -(-a // b)


def _pad_axis(a, axis, size):
    if a.shape[axis] == size:
        return a
    pads = [(0, 0)] * a.ndim
    pads[axis] = (0, size - a.shape[axis])
    return jnp.pad(a, pads)


def _choose_time_block(seq_len, batch_block, hidden_pad, *, store_bytes,
                       mm_bytes, max_tb, tile_budget=_TILE_BUDGET_BYTES):
    """Pick the time-chunk size TB.

    Largest TB <= max_tb whose pipelined tiles fit the VMEM tile budget, then
    rebalanced so Tpad = TB * nt barely exceeds seq_len (keeps chunks large for
    awkward T instead of collapsing to tiny divisors).
    """
    g = 4 * hidden_pad
    # gx and y chunks are double-buffered by the Pallas pipeline.
    per_step = 2 * batch_block * (g + hidden_pad) * store_bytes
    fixed = (hidden_pad * g * mm_bytes              # resident Wh (single copy)
             + 4 * batch_block * hidden_pad * 4     # h/c scratch + c out block
             + (1 << 20))                           # compiler-scratch slack
    avail = max(tile_budget - fixed, per_step)
    tb_cap = int(max(1, min(max_tb, avail // per_step)))
    nt = _cdiv(seq_len, tb_cap)
    tb = _cdiv(seq_len, nt)
    return tb, nt, tb * nt


# ----------------------------------------------------------------------------
# Parameter preparation (PyTorch nn.Linear layout -> split, lane-padded)
# ----------------------------------------------------------------------------
def _prepare_layer(w, bias, d_in, d_in_pad, hidden, hidden_pad, mm_dtype):
    """w: (4H, d_in + H) nn.Linear weight, bias: (4H,).

    Returns wx (d_in_pad, 4*Hp), wh (Hp, 4*Hp) in mm_dtype and b (4*Hp,) f32,
    each gate block zero-padded from H to Hp lanes (padding rows/columns are
    zero, so padded lanes stay exactly 0 through the recurrence).
    """
    H, Hp = hidden, hidden_pad
    wx = w[:, :d_in].T                                   # (d_in, 4H)
    wh = w[:, d_in:].T                                   # (H, 4H)

    def pad_gate_cols(m):                                # (rows, 4H) -> (rows, 4Hp)
        r = m.shape[0]
        return _pad_axis(m.reshape(r, 4, H), 2, Hp).reshape(r, 4 * Hp)

    wx = _pad_axis(pad_gate_cols(wx), 0, d_in_pad)       # (d_in_pad, 4*Hp)
    wh = _pad_axis(pad_gate_cols(wh), 0, Hp)             # (Hp, 4*Hp)
    b = _pad_axis(bias.reshape(4, H), 1, Hp).reshape(4 * Hp)
    return wx.astype(mm_dtype), wh.astype(mm_dtype), b.astype(jnp.float32)


def init_lstmf_params(key, input_size, hidden_size, num_layers):
    """Deterministic nn.Linear-style init. Returns raw (weight, bias) per layer."""
    params = []
    for layer in range(num_layers):
        d_in = input_size if layer == 0 else hidden_size
        fan_in = d_in + hidden_size
        key, kw, kb = jax.random.split(key, 3)
        bound = 1.0 / float(fan_in) ** 0.5
        w = jax.random.uniform(kw, (4 * hidden_size, fan_in),
                               minval=-bound, maxval=bound, dtype=jnp.float32)
        b = jax.random.uniform(kb, (4 * hidden_size,),
                               minval=-bound, maxval=bound, dtype=jnp.float32)
        params.append((w, b))
    return params


# ----------------------------------------------------------------------------
# Pallas recurrent kernel
# ----------------------------------------------------------------------------
def _lstm_recurrence_kernel(gx_ref, wh_ref, y_ref, cf_ref, h_sc, c_sc, *,
                            hidden_pad, time_block, seq_len, mask_time):
    """Serial LSTM recurrence over one (batch-block, time-chunk) tile.

    gx_ref : (TB, BB, 4*Hp) bf16  precomputed x@Wx + b for this time chunk
    wh_ref : (Hp, 4*Hp)           recurrent weight (whole-array VMEM resident)
    y_ref  : (TB, BB, Hp)   bf16  per-step hidden outputs
    cf_ref : (BB, Hp)       f32   final cell state (same block revisited; the
                                  last chunk's write is what lands in HBM)
    h_sc, c_sc : (BB, Hp)   f32   VMEM-resident recurrent state across chunks
    """
    t_chunk = pl.program_id(1)
    Hp = hidden_pad

    @pl.when(t_chunk == 0)
    def _():
        # Module starts from a fresh zero hidden state.
        h_sc[...] = jnp.zeros_like(h_sc)
        c_sc[...] = jnp.zeros_like(c_sc)

    wh = wh_ref[...]                 # hoist the (Hp, 4Hp) load out of the loop
    t0 = t_chunk * time_block

    def step(i, carry):
        h_prev, c_prev = carry       # f32 (BB, Hp)
        gates = (gx_ref[i].astype(jnp.float32)
                 + jnp.dot(h_prev.astype(wh.dtype), wh,
                           preferred_element_type=jnp.float32))
        # chunk(4, dim=1) order: input, forget, cell, output (lane-aligned)
        i_g = jax.nn.sigmoid(gates[:, 0 * Hp:1 * Hp])
        f_g = jax.nn.sigmoid(gates[:, 1 * Hp:2 * Hp])
        g_g = jnp.tanh(gates[:, 2 * Hp:3 * Hp])
        o_g = jax.nn.sigmoid(gates[:, 3 * Hp:4 * Hp])
        c_next = f_g * c_prev + i_g * g_g
        h_next = o_g * jnp.tanh(c_next)
        if mask_time:
            # Time-padded steps must not advance the recurrent state.
            valid = (t0 + i) < seq_len
            h_next = jnp.where(valid, h_next, h_prev)
            c_next = jnp.where(valid, c_next, c_prev)
        y_ref[i] = h_next.astype(y_ref.dtype)
        return h_next, c_next

    h_f, c_f = lax.fori_loop(0, time_block, step, (h_sc[...], c_sc[...]),
                             unroll=min(time_block, 8))
    h_sc[...] = h_f
    c_sc[...] = c_f
    # The cf block index is constant across the time axis, so it stays VMEM
    # resident and is written back to HBM once at the end of the sweep.
    cf_ref[...] = c_f


def _lstm_recurrence(gx, wh, *, hidden_pad, batch_block, time_block, seq_len):
    """Run the serial recurrence over the (time-padded) sequence.

    gx: (Tpad, Bp, 4*Hp) bf16, wh: (Hp, 4*Hp)
    returns y (Tpad, Bp, Hp) bf16 and c_final (Bp, Hp) f32.
    """
    Tp, Bp, G = gx.shape
    Hp = hidden_pad
    assert G == 4 * Hp and wh.shape == (Hp, G)
    assert Bp % batch_block == 0 and Tp % time_block == 0
    nb = Bp // batch_block
    nt = Tp // time_block

    kernel = functools.partial(_lstm_recurrence_kernel, hidden_pad=Hp,
                               time_block=time_block, seq_len=seq_len,
                               mask_time=(Tp != seq_len))

    grid_spec = pltpu.PrefetchScalarGridSpec(
        num_scalar_prefetch=0,
        grid=(nb, nt),
        in_specs=[
            pl.BlockSpec((time_block, batch_block, G), lambda b, t: (t, b, 0)),
            # Grid-invariant recurrent weight: whole-array VMEM residence ->
            # one copy, no double buffering.
            pl.BlockSpec(memory_space=pltpu.MemorySpace.VMEM),
        ],
        out_specs=[
            pl.BlockSpec((time_block, batch_block, Hp), lambda b, t: (t, b, 0)),
            pl.BlockSpec((batch_block, Hp), lambda b, t: (b, 0)),   # final c
        ],
        scratch_shapes=[
            pltpu.VMEM((batch_block, Hp), jnp.float32),   # h carry
            pltpu.VMEM((batch_block, Hp), jnp.float32),   # c carry
        ],
    )
    out_shape = (
        jax.ShapeDtypeStruct((Tp, Bp, Hp), gx.dtype),   # per-step hidden (bf16)
        jax.ShapeDtypeStruct((Bp, Hp), jnp.float32),    # final cell state
    )
    return pl.pallas_call(
        kernel,
        out_shape=out_shape,
        grid_spec=grid_spec,
        compiler_params=pltpu.CompilerParams(
            # Batch blocks (if any) are independent; the time axis carries the
            # recurrence and must stay sequential.
            dimension_semantics=("parallel", "arbitrary"),
            vmem_limit_bytes=_VMEM_LIMIT_BYTES,
        ),
    )(gx, wh)


# ----------------------------------------------------------------------------
# Full forward (replicates LSTMf.forward starting from a fresh zero state)
# ----------------------------------------------------------------------------
def lstmf_forward(x_btd, raw_params, hidden_size, *, max_time_block=64,
                  batch_blocks=1):
    """x_btd: (B, T, input_size). Returns outputs (B, T, H) and [(h, c)] per layer."""
    B, T, D = x_btd.shape
    H = hidden_size
    Hp = _round_up(H, LANE)
    # Pad the batch to 16 sublanes so bf16 gx / y blocks keep dense (16, 128)
    # tiling (no masked partial stores).
    Bp = _round_up(max(B, batch_blocks * SUBLANE_BF16), SUBLANE_BF16)
    # TODO(synk): set batch_blocks=2 only on v7x (two TensorCores); on
    # single-TC v5e/v6e splitting the batch just doubles MXU passes.
    assert Bp % batch_blocks == 0
    BB = Bp // batch_blocks

    mm_dtype = _matmul_dtype()
    store_dtype = jnp.bfloat16       # HBM storage dtype for the gx / y streams

    TB, _, Tpad = _choose_time_block(
        T, BB, Hp,
        store_bytes=jnp.dtype(store_dtype).itemsize,
        mm_bytes=jnp.dtype(mm_dtype).itemsize,
        max_tb=max_time_block)

    x = _pad_axis(x_btd.astype(jnp.float32), 0, Bp)      # (Bp, T, D)

    layer_in = x
    hidden = []
    for li, (w, bias) in enumerate(raw_params):
        d_in = D if li == 0 else H
        d_in_pad = D if li == 0 else Hp
        wx, wh, b = _prepare_layer(w, bias, d_in, d_in_pad, H, Hp, mm_dtype)

        # Hoisted input projection: one big GEMM over all timesteps with f32
        # accumulation and the bias folded in, emitted time-major (layer 0
        # additionally folds the (B,T,D)->(T,B,D) transpose into the GEMM).
        eq = 'btd,dg->tbg' if li == 0 else 'tbd,dg->tbg'
        gx = jnp.einsum(eq, layer_in.astype(mm_dtype), wx,
                        preferred_element_type=jnp.float32) + b
        gx = gx.astype(store_dtype)                      # halve the HBM stream
        if gx.shape[0] < Tpad:                           # pad time to TB multiple
            gx = jnp.pad(gx, ((0, Tpad - gx.shape[0]), (0, 0), (0, 0)))

        y, c_f = _lstm_recurrence(gx, wh, hidden_pad=Hp, batch_block=BB,
                                  time_block=TB, seq_len=T)
        # Final h equals the last valid per-step output (saves one output DMA).
        h_f = y[T - 1].astype(jnp.float32)
        hidden.append((h_f[:B, :H], c_f[:B, :H]))
        layer_in = y                                     # (Tpad, Bp, Hp) bf16

    outputs = jnp.transpose(layer_in[:T, :B, :H], (1, 0, 2)).astype(jnp.float32)
    return outputs, hidden


# ----------------------------------------------------------------------------
# Pure-JAX reference (same matmul-dtype / bf16-storage numerics)
# ----------------------------------------------------------------------------
def lstmf_reference(x_btd, raw_params, hidden_size):
    H = hidden_size
    B, T, D = x_btd.shape
    mm_dtype = _matmul_dtype()
    store_dtype = jnp.bfloat16
    layer_in = jnp.transpose(x_btd, (1, 0, 2)).astype(jnp.float32)   # (T, B, d)
    hidden = []
    for li, (w, bias) in enumerate(raw_params):
        d_in = D if li == 0 else H
        wx = w[:, :d_in].T.astype(mm_dtype)
        wh = w[:, d_in:].T.astype(mm_dtype)
        b = bias.astype(jnp.float32)
        gx = jnp.einsum('tbd,dg->tbg', layer_in.astype(mm_dtype), wx,
                        preferred_element_type=jnp.float32) + b
        gx = gx.astype(store_dtype).astype(jnp.float32)   # mimic bf16 storage

        def step(carry, g_t, wh=wh):
            h, c = carry
            gates = g_t + jnp.dot(h.astype(mm_dtype), wh,
                                  preferred_element_type=jnp.float32)
            i = jax.nn.sigmoid(gates[:, 0 * H:1 * H])
            f = jax.nn.sigmoid(gates[:, 1 * H:2 * H])
            g = jnp.tanh(gates[:, 2 * H:3 * H])
            o = jax.nn.sigmoid(gates[:, 3 * H:4 * H])
            c_n = f * c + i * g
            h_n = o * jnp.tanh(c_n)
            y = h_n.astype(store_dtype).astype(jnp.float32)  # bf16 y storage
            return (h_n, c_n), y

        init = (jnp.zeros((B, H), jnp.float32), jnp.zeros((B, H), jnp.float32))
        (_, c_f), ys = lax.scan(step, init, gx)
        hidden.append((ys[-1], c_f))
        layer_in = ys
    return jnp.transpose(layer_in, (1, 0, 2)), hidden


if __name__ == "__main__":
    batch = 2
    seq_len = 8
    input_size = 16
    hidden_size = 32
    num_layers = 2

    key = jax.random.PRNGKey(0)
    k_x, k_p = jax.random.split(key)
    x = jax.random.normal(k_x, (batch, seq_len, input_size), dtype=jnp.float32)
    params = init_lstmf_params(k_p, input_size, hidden_size, num_layers)

    fwd = jax.jit(functools.partial(lstmf_forward, hidden_size=hidden_size))
    outputs, hidden = fwd(x, params)
    outputs = jax.block_until_ready(outputs)
    hidden = jax.tree_util.tree_map(jax.block_until_ready, hidden)

    # Sanity check against a pure-JAX reference using the same matmul dtype and
    # bf16 gx/y storage numerics; tolerance covers accumulation-order effects.
    ref_out, ref_hidden = lstmf_reference(x, params, hidden_size)
    assert outputs.shape == (batch, seq_len, hidden_size)
    assert jnp.allclose(outputs, ref_out, atol=2e-3, rtol=2e-3)
    for (h, c), (rh, rc) in zip(hidden, ref_hidden):
        assert h.shape == (batch, hidden_size) and c.shape == (batch, hidden_size)
        assert jnp.allclose(h, rh, atol=2e-3, rtol=2e-3)
        assert jnp.allclose(c, rc, atol=2e-3, rtol=2e-3)

    print("KERNEL_OK")
</pallas_src>

<mosaic_0001>
module attributes {stable_mosaic.version = 11 : i64} {
  func.func @_lstm_recurrence_kernel(%arg0: i32, %arg1: i32, %arg2: memref<8x16x512xbf16, #tpu.memory_space<vmem>>, %arg3: memref<128x512xf32, #tpu.memory_space<vmem>>, %arg4: memref<8x16x128xbf16, #tpu.memory_space<vmem>>, %arg5: memref<16x128xf32, #tpu.memory_space<vmem>>, %arg6: memref<16x128xf32, #tpu.memory_space<vmem>>, %arg7: memref<16x128xf32, #tpu.memory_space<vmem>>) attributes {dimension_semantics = [#tpu.dimension_semantics<parallel>, #tpu.dimension_semantics<arbitrary>], iteration_bounds = array<i64: 1, 1>, scalar_prefetch = 0 : i64, scratch_operands = 2 : i64, tpu.core_type = #tpu.core_type<tc>, window_params = [{transform_indices = @transform_0, window_bounds = array<i64: 8, 16, 512>}, {pipeline_mode = #tpu.pipeline_mode<synchronous>, transform_indices = @transform_1, window_bounds = array<i64: 128, 512>}, {transform_indices = @transform_2, window_bounds = array<i64: 8, 16, 128>}, {transform_indices = @transform_3, window_bounds = array<i64: 16, 128>}]} {
    %c0_i32 = arith.constant 0 : i32
    %0 = arith.cmpi eq, %arg1, %c0_i32 : i32
    %1 = arith.extui %0 : i1 to i32
    %c0_i32_0 = arith.constant 0 : i32
    %2 = arith.cmpi ne, %1, %c0_i32_0 : i32
    scf.if %2 {
      %cst_76 = arith.constant 0.000000e+00 : f32
      %297 = vector.broadcast %cst_76 : f32 to vector<16x128xf32>
      %c0_77 = arith.constant 0 : index
      %c0_78 = arith.constant 0 : index
      %298 = vector.load %arg6[%c0_77, %c0_78] : memref<16x128xf32, #tpu.memory_space<vmem>>, vector<16x128xf32>
      tpu.vector_store %arg6[%c0_77, %c0_78], %297 {strides = array<i32>} : memref<16x128xf32, #tpu.memory_space<vmem>>, vector<16x128xf32>,
      %cst_79 = arith.constant 0.000000e+00 : f32
      %299 = vector.broadcast %cst_79 : f32 to vector<16x128xf32>
      %c0_80 = arith.constant 0 : index
      %c0_81 = arith.constant 0 : index
      %300 = vector.load %arg7[%c0_80, %c0_81] : memref<16x128xf32, #tpu.memory_space<vmem>>, vector<16x128xf32>
      tpu.vector_store %arg7[%c0_80, %c0_81], %299 {strides = array<i32>} : memref<16x128xf32, #tpu.memory_space<vmem>>, vector<16x128xf32>,
    } else {
    }
    %c0 = arith.constant 0 : index
    %c0_1 = arith.constant 0 : index
    %3 = vector.load %arg3[%c0, %c0_1] : memref<128x512xf32, #tpu.memory_space<vmem>>, vector<128x512xf32>
    %c0_2 = arith.constant 0 : index
    %c0_3 = arith.constant 0 : index
    %4 = vector.load %arg6[%c0_2, %c0_3] : memref<16x128xf32, #tpu.memory_space<vmem>>, vector<16x128xf32>
    %c0_4 = arith.constant 0 : index
    %c0_5 = arith.constant 0 : index
    %5 = vector.load %arg7[%c0_4, %c0_5] : memref<16x128xf32, #tpu.memory_space<vmem>>, vector<16x128xf32>
    %c0_i32_6 = arith.constant 0 : i32
    %6 = arith.index_cast %c0_i32_6 : i32 to index
    %c0_7 = arith.constant 0 : index
    %c0_8 = arith.constant 0 : index
    %7 = vector.load %arg2[%6, %c0_7, %c0_8] : memref<8x16x512xbf16, #tpu.memory_space<vmem>>, vector<1x16x512xbf16>
    %8 = vector.shape_cast %7 : vector<1x16x512xbf16> to vector<16x512xbf16>
    %9 = arith.extf %8 : vector<16x512xbf16> to vector<16x512xf32>
    %cst = arith.constant dense<0.000000e+00> : vector<16x512xf32>
    %10 = tpu.matmul %4, %3, %cst {dimension_numbers = #tpu.dot_dimension_numbers<[1], [0], [0], [1], [0, 0, 1, 1], [], []>} : vector<16x128xf32>, vector<128x512xf32>, vector<16x512xf32> -> vector<16x512xf32>
    %11 = arith.addf %9, %10 : vector<16x512xf32>
    %12 = vector.extract_strided_slice %11 {offsets = [0, 0], sizes = [16, 128], strides = [1, 1]} : vector<16x512xf32> to vector<16x128xf32>
    %13 = arith.negf %12 : vector<16x128xf32>
    %14 = math.exp %13 : vector<16x128xf32>
    %cst_9 = arith.constant 1.000000e+00 : f32
    %15 = vector.broadcast %cst_9 : f32 to vector<16x128xf32>
    %16 = arith.addf %15, %14 : vector<16x128xf32>
    %17 = arith.divf %15, %16 : vector<16x128xf32>
    %18 = vector.extract_strided_slice %11 {offsets = [0, 128], sizes = [16, 128], strides = [1, 1]} : vector<16x512xf32> to vector<16x128xf32>
    %19 = arith.negf %18 : vector<16x128xf32>
    %20 = math.exp %19 : vector<16x128xf32>
    %cst_10 = arith.constant 1.000000e+00 : f32
    %21 = vector.broadcast %cst_10 : f32 to vector<16x128xf32>
    %22 = arith.addf %21, %20 : vector<16x128xf32>
    %23 = arith.divf %21, %22 : vector<16x128xf32>
    %24 = vector.extract_strided_slice %11 {offsets = [0, 256], sizes = [16, 128], strides = [1, 1]} : vector<16x512xf32> to vector<16x128xf32>
    %25 = math.tanh %24 : vector<16x128xf32>
    %26 = vector.extract_strided_slice %11 {offsets = [0, 384], sizes = [16, 128], strides = [1, 1]} : vector<16x512xf32> to vector<16x128xf32>
    %27 = arith.negf %26 : vector<16x128xf32>
    %28 = math.exp %27 : vector<16x128xf32>
    %cst_11 = arith.constant 1.000000e+00 : f32
    %29 = vector.broadcast %cst_11 : f32 to vector<16x128xf32>
    %30 = arith.addf %29, %28 : vector<16x128xf32>
    %31 = arith.divf %29, %30 : vector<16x128xf32>
    %32 = arith.mulf %23, %5 : vector<16x128xf32>
    %33 = arith.mulf %17, %25 : vector<16x128xf32>
    %34 = arith.addf %32, %33 : vector<16x128xf32>
    %35 = math.tanh %34 : vector<16x128xf32>
    %36 = arith.mulf %31, %35 : vector<16x128xf32>
    %37 = arith.truncf %36 : vector<16x128xf32> to vector<16x128xbf16>
    %38 = arith.index_cast %c0_i32_6 : i32 to index
    %c0_12 = arith.constant 0 : index
    %c0_13 = arith.constant 0 : index
    %39 = vector.load %arg4[%38, %c0_12, %c0_13] : memref<8x16x128xbf16, #tpu.memory_space<vmem>>, vector<1x16x128xbf16>
    %40 = vector.shape_cast %39 : vector<1x16x128xbf16> to vector<16x128xbf16>
    %41 = vector.shape_cast %37 : vector<16x128xbf16> to vector<1x16x128xbf16>
    tpu.vector_store %arg4[%38, %c0_12, %c0_13], %41 {strides = array<i32>} : memref<8x16x128xbf16, #tpu.memory_space<vmem>>, vector<1x16x128xbf16>,
    %c1_i32 = arith.constant 1 : i32
    %42 = arith.index_cast %c1_i32 : i32 to index
    %c0_14 = arith.constant 0 : index
    %c0_15 = arith.constant 0 : index
    %43 = vector.load %arg2[%42, %c0_14, %c0_15] : memref<8x16x512xbf16, #tpu.memory_space<vmem>>, vector<1x16x512xbf16>
    %44 = vector.shape_cast %43 : vector<1x16x512xbf16> to vector<16x512xbf16>
    %45 = arith.extf %44 : vector<16x512xbf16> to vector<16x512xf32>
    %cst_16 = arith.constant dense<0.000000e+00> : vector<16x512xf32>
    %46 = tpu.matmul %36, %3, %cst_16 {dimension_numbers = #tpu.dot_dimension_numbers<[1], [0], [0], [1], [0, 0, 1, 1], [], []>} : vector<16x128xf32>, vector<128x512xf32>, vector<16x512xf32> -> vector<16x512xf32>
    %47 = arith.addf %45, %46 : vector<16x512xf32>
    %48 = vector.extract_strided_slice %47 {offsets = [0, 0], sizes = [16, 128], strides = [1, 1]} : vector<16x512xf32> to vector<16x128xf32>
    %49 = arith.negf %48 : vector<16x128xf32>
    %50 = math.exp %49 : vector<16x128xf32>
    %cst_17 = arith.constant 1.000000e+00 : f32
    %51 = vector.broadcast %cst_17 : f32 to vector<16x128xf32>
    %52 = arith.addf %51, %50 : vector<16x128xf32>
    %53 = arith.divf %51, %52 : vector<16x128xf32>
    %54 = vector.extract_strided_slice %47 {offsets = [0, 128], sizes = [16, 128], strides = [1, 1]} : vector<16x512xf32> to vector<16x128xf32>
    %55 = arith.negf %54 : vector<16x128xf32>
    %56 = math.exp %55 : vector<16x128xf32>
    %cst_18 = arith.constant 1.000000e+00 : f32
    %57 = vector.broadcast %cst_18 : f32 to vector<16x128xf32>
    %58 = arith.addf %57, %56 : vector<16x128xf32>
    %59 = arith.divf %57, %58 : vector<16x128xf32>
    %60 = vector.extract_strided_slice %47 {offsets = [0, 256], sizes = [16, 128], strides = [1, 1]} : vector<16x512xf32> to vector<16x128xf32>
    %61 = math.tanh %60 : vector<16x128xf32>
    %62 = vector.extract_strided_slice %47 {offsets = [0, 384], sizes = [16, 128], strides = [1, 1]} : vector<16x512xf32> to vector<16x128xf32>
    %63 = arith.negf %62 : vector<16x128xf32>
    %64 = math.exp %63 : vector<16x128xf32>
    %cst_19 = arith.constant 1.000000e+00 : f32
    %65 = vector.broadcast %cst_19 : f32 to vector<16x128xf32>
    %66 = arith.addf %65, %64 : vector<16x128xf32>
    %67 = arith.divf %65, %66 : vector<16x128xf32>
    %68 = arith.mulf %59, %34 : vector<16x128xf32>
    %69 = arith.mulf %53, %61 : vector<16x128xf32>
    %70 = arith.addf %68, %69 : vector<16x128xf32>
    %71 = math.tanh %70 : vector<16x128xf32>
    %72 = arith.mulf %67, %71 : vector<16x128xf32>
    %73 = arith.truncf %72 : vector<16x128xf32> to vector<16x128xbf16>
    %74 = arith.index_cast %c1_i32 : i32 to index
    %c0_20 = arith.constant 0 : index
    %c0_21 = arith.constant 0 : index
    %75 = vector.load %arg4[%74, %c0_20, %c0_21] : memref<8x16x128xbf16, #tpu.memory_space<vmem>>, vector<1x16x128xbf16>
    %76 = vector.shape_cast %75 : vector<1x16x128xbf16> to vector<16x128xbf16>
    %77 = vector.shape_cast %73 : vector<16x128xbf16> to vector<1x16x128xbf16>
    tpu.vector_store %arg4[%74, %c0_20, %c0_21], %77 {strides = array<i32>} : memref<8x16x128xbf16, #tpu.memory_space<vmem>>, vector<1x16x128xbf16>,
    %c2_i32 = arith.constant 2 : i32
    %78 = arith.index_cast %c2_i32 : i32 to index
    %c0_22 = arith.constant 0 : index
    %c0_23 = arith.constant 0 : index
    %79 = vector.load %arg2[%78, %c0_22, %c0_23] : memref<8x16x512xbf16, #tpu.memory_space<vmem>>, vector<1x16x512xbf16>
    %80 = vector.shape_cast %79 : vector<1x16x512xbf16> to vector<16x512xbf16>
    %81 = arith.extf %80 : vector<16x512xbf16> to vector<16x512xf32>
    %cst_24 = arith.constant dense<0.000000e+00> : vector<16x512xf32>
    %82 = tpu.matmul %72, %3, %cst_24 {dimension_numbers = #tpu.dot_dimension_numbers<[1], [0], [0], [1], [0, 0, 1, 1], [], []>} : vector<16x128xf32>, vector<128x512xf32>, vector<16x512xf32> -> vector<16x512xf32>
    %83 = arith.addf %81, %82 : vector<16x512xf32>
    %84 = vector.extract_strided_slice %83 {offsets = [0, 0], sizes = [16, 128], strides = [1, 1]} : vector<16x512xf32> to vector<16x128xf32>
    %85 = arith.negf %84 : vector<16x128xf32>
    %86 = math.exp %85 : vector<16x128xf32>
    %cst_25 = arith.constant 1.000000e+00 : f32
    %87 = vector.broadcast %cst_25 : f32 to vector<16x128xf32>
    %88 = arith.addf %87, %86 : vector<16x128xf32>
    %89 = arith.divf %87, %88 : vector<16x128xf32>
    %90 = vector.extract_strided_slice %83 {offsets = [0, 128], sizes = [16, 128], strides = [1, 1]} : vector<16x512xf32> to vector<16x128xf32>
    %91 = arith.negf %90 : vector<16x128xf32>
    %92 = math.exp %91 : vector<16x128xf32>
    %cst_26 = arith.constant 1.000000e+00 : f32
    %93 = vector.broadcast %cst_26 : f32 to vector<16x128xf32>
    %94 = arith.addf %93, %92 : vector<16x128xf32>
    %95 = arith.divf %93, %94 : vector<16x128xf32>
    %96 = vector.extract_strided_slice %83 {offsets = [0, 256], sizes = [16, 128], strides = [1, 1]} : vector<16x512xf32> to vector<16x128xf32>
    %97 = math.tanh %96 : vector<16x128xf32>
    %98 = vector.extract_strided_slice %83 {offsets = [0, 384], sizes = [16, 128], strides = [1, 1]} : vector<16x512xf32> to vector<16x128xf32>
    %99 = arith.negf %98 : vector<16x128xf32>
    %100 = math.exp %99 : vector<16x128xf32>
    %cst_27 = arith.constant 1.000000e+00 : f32
    %101 = vector.broadcast %cst_27 : f32 to vector<16x128xf32>
    %102 = arith.addf %101, %100 : vector<16x128xf32>
    %103 = arith.divf %101, %102 : vector<16x128xf32>
    %104 = arith.mulf %95, %70 : vector<16x128xf32>
    %105 = arith.mulf %89, %97 : vector<16x128xf32>
    %106 = arith.addf %104, %105 : vector<16x128xf32>
    %107 = math.tanh %106 : vector<16x128xf32>
    %108 = arith.mulf %103, %107 : vector<16x128xf32>
    %109 = arith.truncf %108 : vector<16x128xf32> to vector<16x128xbf16>
    %110 = arith.index_cast %c2_i32 : i32 to index
    %c0_28 = arith.constant 0 : index
    %c0_29 = arith.constant 0 : index
    %111 = vector.load %arg4[%110, %c0_28, %c0_29] : memref<8x16x128xbf16, #tpu.memory_space<vmem>>, vector<1x16x128xbf16>
    %112 = vector.shape_cast %111 : vector<1x16x128xbf16> to vector<16x128xbf16>
    %113 = vector.shape_cast %109 : vector<16x128xbf16> to vector<1x16x128xbf16>
    tpu.vector_store %arg4[%110, %c0_28, %c0_29], %113 {strides = array<i32>} : memref<8x16x128xbf16, #tpu.memory_space<vmem>>, vector<1x16x128xbf16>,
    %c3_i32 = arith.constant 3 : i32
    %114 = arith.index_cast %c3_i32 : i32 to index
    %c0_30 = arith.constant 0 : index
    %c0_31 = arith.constant 0 : index
    %115 = vector.load %arg2[%114, %c0_30, %c0_31] : memref<8x16x512xbf16, #tpu.memory_space<vmem>>, vector<1x16x512xbf16>
    %116 = vector.shape_cast %115 : vector<1x16x512xbf16> to vector<16x512xbf16>
    %117 = arith.extf %116 : vector<16x512xbf16> to vector<16x512xf32>
    %cst_32 = arith.constant dense<0.000000e+00> : vector<16x512xf32>
    %118 = tpu.matmul %108, %3, %cst_32 {dimension_numbers = #tpu.dot_dimension_numbers<[1], [0], [0], [1], [0, 0, 1, 1], [], []>} : vector<16x128xf32>, vector<128x512xf32>, vector<16x512xf32> -> vector<16x512xf32>
    %119 = arith.addf %117, %118 : vector<16x512xf32>
    %120 = vector.extract_strided_slice %119 {offsets = [0, 0], sizes = [16, 128], strides = [1, 1]} : vector<16x512xf32> to vector<16x128xf32>
    %121 = arith.negf %120 : vector<16x128xf32>
    %122 = math.exp %121 : vector<16x128xf32>
    %cst_33 = arith.constant 1.000000e+00 : f32
    %123 = vector.broadcast %cst_33 : f32 to vector<16x128xf32>
    %124 = arith.addf %123, %122 : vector<16x128xf32>
    %125 = arith.divf %123, %124 : vector<16x128xf32>
    %126 = vector.extract_strided_slice %119 {offsets = [0, 128], sizes = [16, 128], strides = [1, 1]} : vector<16x512xf32> to vector<16x128xf32>
    %127 = arith.negf %126 : vector<16x128xf32>
    %128 = math.exp %127 : vector<16x128xf32>
    %cst_34 = arith.constant 1.000000e+00 : f32
    %129 = vector.broadcast %cst_34 : f32 to vector<16x128xf32>
    %130 = arith.addf %129, %128 : vector<16x128xf32>
    %131 = arith.divf %129, %130 : vector<16x128xf32>
    %132 = vector.extract_strided_slice %119 {offsets = [0, 256], sizes = [16, 128], strides = [1, 1]} : vector<16x512xf32> to vector<16x128xf32>
    %133 = math.tanh %132 : vector<16x128xf32>
    %134 = vector.extract_strided_slice %119 {offsets = [0, 384], sizes = [16, 128], strides = [1, 1]} : vector<16x512xf32> to vector<16x128xf32>
    %135 = arith.negf %134 : vector<16x128xf32>
    %136 = math.exp %135 : vector<16x128xf32>
    %cst_35 = arith.constant 1.000000e+00 : f32
    %137 = vector.broadcast %cst_35 : f32 to vector<16x128xf32>
    %138 = arith.addf %137, %136 : vector<16x128xf32>
    %139 = arith.divf %137, %138 : vector<16x128xf32>
    %140 = arith.mulf %131, %106 : vector<16x128xf32>
    %141 = arith.mulf %125, %133 : vector<16x128xf32>
    %142 = arith.addf %140, %141 : vector<16x128xf32>
    %143 = math.tanh %142 : vector<16x128xf32>
    %144 = arith.mulf %139, %143 : vector<16x128xf32>
    %145 = arith.truncf %144 : vector<16x128xf32> to vector<16x128xbf16>
    %146 = arith.index_cast %c3_i32 : i32 to index
    %c0_36 = arith.constant 0 : index
    %c0_37 = arith.constant 0 : index
    %147 = vector.load %arg4[%146, %c0_36, %c0_37] : memref<8x16x128xbf16, #tpu.memory_space<vmem>>, vector<1x16x128xbf16>
    %148 = vector.shape_cast %147 : vector<1x16x128xbf16> to vector<16x128xbf16>
    %149 = vector.shape_cast %145 : vector<16x128xbf16> to vector<1x16x128xbf16>
    tpu.vector_store %arg4[%146, %c0_36, %c0_37], %149 {strides = array<i32>} : memref<8x16x128xbf16, #tpu.memory_space<vmem>>, vector<1x16x128xbf16>,
    %c4_i32 = arith.constant 4 : i32
    %150 = arith.index_cast %c4_i32 : i32 to index
    %c0_38 = arith.constant 0 : index
    %c0_39 = arith.constant 0 : index
    %151 = vector.load %arg2[%150, %c0_38, %c0_39] : memref<8x16x512xbf16, #tpu.memory_space<vmem>>, vector<1x16x512xbf16>
    %152 = vector.shape_cast %151 : vector<1x16x512xbf16> to vector<16x512xbf16>
    %153 = arith.extf %152 : vector<16x512xbf16> to vector<16x512xf32>
    %cst_40 = arith.constant dense<0.000000e+00> : vector<16x512xf32>
    %154 = tpu.matmul %144, %3, %cst_40 {dimension_numbers = #tpu.dot_dimension_numbers<[1], [0], [0], [1], [0, 0, 1, 1], [], []>} : vector<16x128xf32>, vector<128x512xf32>, vector<16x512xf32> -> vector<16x512xf32>
    %155 = arith.addf %153, %154 : vector<16x512xf32>
    %156 = vector.extract_strided_slice %155 {offsets = [0, 0], sizes = [16, 128], strides = [1, 1]} : vector<16x512xf32> to vector<16x128xf32>
    %157 = arith.negf %156 : vector<16x128xf32>
    %158 = math.exp %157 : vector<16x128xf32>
    %cst_41 = arith.constant 1.000000e+00 : f32
    %159 = vector.broadcast %cst_41 : f32 to vector<16x128xf32>
    %160 = arith.addf %159, %158 : vector<16x128xf32>
    %161 = arith.divf %159, %160 : vector<16x128xf32>
    %162 = vector.extract_strided_slice %155 {offsets = [0, 128], sizes = [16, 128], strides = [1, 1]} : vector<16x512xf32> to vector<16x128xf32>
    %163 = arith.negf %162 : vector<16x128xf32>
    %164 = math.exp %163 : vector<16x128xf32>
    %cst_42 = arith.constant 1.000000e+00 : f32
    %165 = vector.broadcast %cst_42 : f32 to vector<16x128xf32>
    %166 = arith.addf %165, %164 : vector<16x128xf32>
    %167 = arith.divf %165, %166 : vector<16x128xf32>
    %168 = vector.extract_strided_slice %155 {offsets = [0, 256], sizes = [16, 128], strides = [1, 1]} : vector<16x512xf32> to vector<16x128xf32>
    %169 = math.tanh %168 : vector<16x128xf32>
    %170 = vector.extract_strided_slice %155 {offsets = [0, 384], sizes = [16, 128], strides = [1, 1]} : vector<16x512xf32> to vector<16x128xf32>
    %171 = arith.negf %170 : vector<16x128xf32>
    %172 = math.exp %171 : vector<16x128xf32>
    %cst_43 = arith.constant 1.000000e+00 : f32
    %173 = vector.broadcast %cst_43 : f32 to vector<16x128xf32>
    %174 = arith.addf %173, %172 : vector<16x128xf32>
    %175 = arith.divf %173, %174 : vector<16x128xf32>
    %176 = arith.mulf %167, %142 : vector<16x128xf32>
    %177 = arith.mulf %161, %169 : vector<16x128xf32>
    %178 = arith.addf %176, %177 : vector<16x128xf32>
    %179 = math.tanh %178 : vector<16x128xf32>
    %180 = arith.mulf %175, %179 : vector<16x128xf32>
    %181 = arith.truncf %180 : vector<16x128xf32> to vector<16x128xbf16>
    %182 = arith.index_cast %c4_i32 : i32 to index
    %c0_44 = arith.constant 0 : index
    %c0_45 = arith.constant 0 : index
    %183 = vector.load %arg4[%182, %c0_44, %c0_45] : memref<8x16x128xbf16, #tpu.memory_space<vmem>>, vector<1x16x128xbf16>
    %184 = vector.shape_cast %183 : vector<1x16x128xbf16> to vector<16x128xbf16>
    %185 = vector.shape_cast %181 : vector<16x128xbf16> to vector<1x16x128xbf16>
    tpu.vector_store %arg4[%182, %c0_44, %c0_45], %185 {strides = array<i32>} : memref<8x16x128xbf16, #tpu.memory_space<vmem>>, vector<1x16x128xbf16>,
    %c5_i32 = arith.constant 5 : i32
    %186 = arith.index_cast %c5_i32 : i32 to index
    %c0_46 = arith.constant 0 : index
    %c0_47 = arith.constant 0 : index
    %187 = vector.load %arg2[%186, %c0_46, %c0_47] : memref<8x16x512xbf16, #tpu.memory_space<vmem>>, vector<1x16x512xbf16>
    %188 = vector.shape_cast %187 : vector<1x16x512xbf16> to vector<16x512xbf16>
    %189 = arith.extf %188 : vector<16x512xbf16> to vector<16x512xf32>
    %cst_48 = arith.constant dense<0.000000e+00> : vector<16x512xf32>
    %190 = tpu.matmul %180, %3, %cst_48 {dimension_numbers = #tpu.dot_dimension_numbers<[1], [0], [0], [1], [0, 0, 1, 1], [], []>} : vector<16x128xf32>, vector<128x512xf32>, vector<16x512xf32> -> vector<16x512xf32>
    %191 = arith.addf %189, %190 : vector<16x512xf32>
    %192 = vector.extract_strided_slice %191 {offsets = [0, 0], sizes = [16, 128], strides = [1, 1]} : vector<16x512xf32> to vector<16x128xf32>
    %193 = arith.negf %192 : vector<16x128xf32>
    %194 = math.exp %193 : vector<16x128xf32>
    %cst_49 = arith.constant 1.000000e+00 : f32
    %195 = vector.broadcast %cst_49 : f32 to vector<16x128xf32>
    %196 = arith.addf %195, %194 : vector<16x128xf32>
    %197 = arith.divf %195, %196 : vector<16x128xf32>
    %198 = vector.extract_strided_slice %191 {offsets = [0, 128], sizes = [16, 128], strides = [1, 1]} : vector<16x512xf32> to vector<16x128xf32>
    %199 = arith.negf %198 : vector<16x128xf32>
    %200 = math.exp %199 : vector<16x128xf32>
    %cst_50 = arith.constant 1.000000e+00 : f32
    %201 = vector.broadcast %cst_50 : f32 to vector<16x128xf32>
    %202 = arith.addf %201, %200 : vector<16x128xf32>
    %203 = arith.divf %201, %202 : vector<16x128xf32>
    %204 = vector.extract_strided_slice %191 {offsets = [0, 256], sizes = [16, 128], strides = [1, 1]} : vector<16x512xf32> to vector<16x128xf32>
    %205 = math.tanh %204 : vector<16x128xf32>
    %206 = vector.extract_strided_slice %191 {offsets = [0, 384], sizes = [16, 128], strides = [1, 1]} : vector<16x512xf32> to vector<16x128xf32>
    %207 = arith.negf %206 : vector<16x128xf32>
    %208 = math.exp %207 : vector<16x128xf32>
    %cst_51 = arith.constant 1.000000e+00 : f32
    %209 = vector.broadcast %cst_51 : f32 to vector<16x128xf32>
    %210 = arith.addf %209, %208 : vector<16x128xf32>
    %211 = arith.divf %209, %210 : vector<16x128xf32>
    %212 = arith.mulf %203, %178 : vector<16x128xf32>
    %213 = arith.mulf %197, %205 : vector<16x128xf32>
    %214 = arith.addf %212, %213 : vector<16x128xf32>
    %215 = math.tanh %214 : vector<16x128xf32>
    %216 = arith.mulf %211, %215 : vector<16x128xf32>
    %217 = arith.truncf %216 : vector<16x128xf32> to vector<16x128xbf16>
    %218 = arith.index_cast %c5_i32 : i32 to index
    %c0_52 = arith.constant 0 : index
    %c0_53 = arith.constant 0 : index
    %219 = vector.load %arg4[%218, %c0_52, %c0_53] : memref<8x16x128xbf16, #tpu.memory_space<vmem>>, vector<1x16x128xbf16>
    %220 = vector.shape_cast %219 : vector<1x16x128xbf16> to vector<16x128xbf16>
    %221 = vector.shape_cast %217 : vector<16x128xbf16> to vector<1x16x128xbf16>
    tpu.vector_store %arg4[%218, %c0_52, %c0_53], %221 {strides = array<i32>} : memref<8x16x128xbf16, #tpu.memory_space<vmem>>, vector<1x16x128xbf16>,
    %c6_i32 = arith.constant 6 : i32
    %222 = arith.index_cast %c6_i32 : i32 to index
    %c0_54 = arith.constant 0 : index
    %c0_55 = arith.constant 0 : index
    %223 = vector.load %arg2[%222, %c0_54, %c0_55] : memref<8x16x512xbf16, #tpu.memory_space<vmem>>, vector<1x16x512xbf16>
    %224 = vector.shape_cast %223 : vector<1x16x512xbf16> to vector<16x512xbf16>
    %225 = arith.extf %224 : vector<16x512xbf16> to vector<16x512xf32>
    %cst_56 = arith.constant dense<0.000000e+00> : vector<16x512xf32>
    %226 = tpu.matmul %216, %3, %cst_56 {dimension_numbers = #tpu.dot_dimension_numbers<[1], [0], [0], [1], [0, 0, 1, 1], [], []>} : vector<16x128xf32>, vector<128x512xf32>, vector<16x512xf32> -> vector<16x512xf32>
    %227 = arith.addf %225, %226 : vector<16x512xf32>
    %228 = vector.extract_strided_slice %227 {offsets = [0, 0], sizes = [16, 128], strides = [1, 1]} : vector<16x512xf32> to vector<16x128xf32>
    %229 = arith.negf %228 : vector<16x128xf32>
    %230 = math.exp %229 : vector<16x128xf32>
    %cst_57 = arith.constant 1.000000e+00 : f32
    %231 = vector.broadcast %cst_57 : f32 to vector<16x128xf32>
    %232 = arith.addf %231, %230 : vector<16x128xf32>
    %233 = arith.divf %231, %232 : vector<16x128xf32>
    %234 = vector.extract_strided_slice %227 {offsets = [0, 128], sizes = [16, 128], strides = [1, 1]} : vector<16x512xf32> to vector<16x128xf32>
    %235 = arith.negf %234 : vector<16x128xf32>
    %236 = math.exp %235 : vector<16x128xf32>
    %cst_58 = arith.constant 1.000000e+00 : f32
    %237 = vector.broadcast %cst_58 : f32 to vector<16x128xf32>
    %238 = arith.addf %237, %236 : vector<16x128xf32>
    %239 = arith.divf %237, %238 : vector<16x128xf32>
    %240 = vector.extract_strided_slice %227 {offsets = [0, 256], sizes = [16, 128], strides = [1, 1]} : vector<16x512xf32> to vector<16x128xf32>
    %241 = math.tanh %240 : vector<16x128xf32>
    %242 = vector.extract_strided_slice %227 {offsets = [0, 384], sizes = [16, 128], strides = [1, 1]} : vector<16x512xf32> to vector<16x128xf32>
    %243 = arith.negf %242 : vector<16x128xf32>
    %244 = math.exp %243 : vector<16x128xf32>
    %cst_59 = arith.constant 1.000000e+00 : f32
    %245 = vector.broadcast %cst_59 : f32 to vector<16x128xf32>
    %246 = arith.addf %245, %244 : vector<16x128xf32>
    %247 = arith.divf %245, %246 : vector<16x128xf32>
    %248 = arith.mulf %239, %214 : vector<16x128xf32>
    %249 = arith.mulf %233, %241 : vector<16x128xf32>
    %250 = arith.addf %248, %249 : vector<16x128xf32>
    %251 = math.tanh %250 : vector<16x128xf32>
    %252 = arith.mulf %247, %251 : vector<16x128xf32>
    %253 = arith.truncf %252 : vector<16x128xf32> to vector<16x128xbf16>
    %254 = arith.index_cast %c6_i32 : i32 to index
    %c0_60 = arith.constant 0 : index
    %c0_61 = arith.constant 0 : index
    %255 = vector.load %arg4[%254, %c0_60, %c0_61] : memref<8x16x128xbf16, #tpu.memory_space<vmem>>, vector<1x16x128xbf16>
    %256 = vector.shape_cast %255 : vector<1x16x128xbf16> to vector<16x128xbf16>
    %257 = vector.shape_cast %253 : vector<16x128xbf16> to vector<1x16x128xbf16>
    tpu.vector_store %arg4[%254, %c0_60, %c0_61], %257 {strides = array<i32>} : memref<8x16x128xbf16, #tpu.memory_space<vmem>>, vector<1x16x128xbf16>,
    %c7_i32 = arith.constant 7 : i32
    %258 = arith.index_cast %c7_i32 : i32 to index
    %c0_62 = arith.constant 0 : index
    %c0_63 = arith.constant 0 : index
    %259 = vector.load %arg2[%258, %c0_62, %c0_63] : memref<8x16x512xbf16, #tpu.memory_space<vmem>>, vector<1x16x512xbf16>
    %260 = vector.shape_cast %259 : vector<1x16x512xbf16> to vector<16x512xbf16>
    %261 = arith.extf %260 : vector<16x512xbf16> to vector<16x512xf32>
    %cst_64 = arith.constant dense<0.000000e+00> : vector<16x512xf32>
    %262 = tpu.matmul %252, %3, %cst_64 {dimension_numbers = #tpu.dot_dimension_numbers<[1], [0], [0], [1], [0, 0, 1, 1], [], []>} : vector<16x128xf32>, vector<128x512xf32>, vector<16x512xf32> -> vector<16x512xf32>
    %263 = arith.addf %261, %262 : vector<16x512xf32>
    %264 = vector.extract_strided_slice %263 {offsets = [0, 0], sizes = [16, 128], strides = [1, 1]} : vector<16x512xf32> to vector<16x128xf32>
    %265 = arith.negf %264 : vector<16x128xf32>
    %266 = math.exp %265 : vector<16x128xf32>
    %cst_65 = arith.constant 1.000000e+00 : f32
    %267 = vector.broadcast %cst_65 : f32 to vector<16x128xf32>
    %268 = arith.addf %267, %266 : vector<16x128xf32>
    %269 = arith.divf %267, %268 : vector<16x128xf32>
    %270 = vector.extract_strided_slice %263 {offsets = [0, 128], sizes = [16, 128], strides = [1, 1]} : vector<16x512xf32> to vector<16x128xf32>
    %271 = arith.negf %270 : vector<16x128xf32>
    %272 = math.exp %271 : vector<16x128xf32>
    %cst_66 = arith.constant 1.000000e+00 : f32
    %273 = vector.broadcast %cst_66 : f32 to vector<16x128xf32>
    %274 = arith.addf %273, %272 : vector<16x128xf32>
    %275 = arith.divf %273, %274 : vector<16x128xf32>
    %276 = vector.extract_strided_slice %263 {offsets = [0, 256], sizes = [16, 128], strides = [1, 1]} : vector<16x512xf32> to vector<16x128xf32>
    %277 = math.tanh %276 : vector<16x128xf32>
    %278 = vector.extract_strided_slice %263 {offsets = [0, 384], sizes = [16, 128], strides = [1, 1]} : vector<16x512xf32> to vector<16x128xf32>
    %279 = arith.negf %278 : vector<16x128xf32>
    %280 = math.exp %279 : vector<16x128xf32>
    %cst_67 = arith.constant 1.000000e+00 : f32
    %281 = vector.broadcast %cst_67 : f32 to vector<16x128xf32>
    %282 = arith.addf %281, %280 : vector<16x128xf32>
    %283 = arith.divf %281, %282 : vector<16x128xf32>
    %284 = arith.mulf %275, %250 : vector<16x128xf32>
    %285 = arith.mulf %269, %277 : vector<16x128xf32>
    %286 = arith.addf %284, %285 : vector<16x128xf32>
    %287 = math.tanh %286 : vector<16x128xf32>
    %288 = arith.mulf %283, %287 : vector<16x128xf32>
    %289 = arith.truncf %288 : vector<16x128xf32> to vector<16x128xbf16>
    %290 = arith.index_cast %c7_i32 : i32 to index
    %c0_68 = arith.constant 0 : index
    %c0_69 = arith.constant 0 : index
    %291 = vector.load %arg4[%290, %c0_68, %c0_69] : memref<8x16x128xbf16, #tpu.memory_space<vmem>>, vector<1x16x128xbf16>
    %292 = vector.shape_cast %291 : vector<1x16x128xbf16> to vector<16x128xbf16>
    %293 = vector.shape_cast %289 : vector<16x128xbf16> to vector<1x16x128xbf16>
    tpu.vector_store %arg4[%290, %c0_68, %c0_69], %293 {strides = array<i32>} : memref<8x16x128xbf16, #tpu.memory_space<vmem>>, vector<1x16x128xbf16>,
    %c8_i32 = arith.constant 8 : i32
    %c0_70 = arith.constant 0 : index
    %c0_71 = arith.constant 0 : index
    %294 = vector.load %arg6[%c0_70, %c0_71] : memref<16x128xf32, #tpu.memory_space<vmem>>, vector<16x128xf32>
    tpu.vector_store %arg6[%c0_70, %c0_71], %288 {strides = array<i32>} : memref<16x128xf32, #tpu.memory_space<vmem>>, vector<16x128xf32>,
    %c0_72 = arith.constant 0 : index
    %c0_73 = arith.constant 0 : index
    %295 = vector.load %arg7[%c0_72, %c0_73] : memref<16x128xf32, #tpu.memory_space<vmem>>, vector<16x128xf32>
    tpu.vector_store %arg7[%c0_72, %c0_73], %286 {strides = array<i32>} : memref<16x128xf32, #tpu.memory_space<vmem>>, vector<16x128xf32>,
    %c0_74 = arith.constant 0 : index
    %c0_75 = arith.constant 0 : index
    %296 = vector.load %arg5[%c0_74, %c0_75] : memref<16x128xf32, #tpu.memory_space<vmem>>, vector<16x128xf32>
    tpu.vector_store %arg5[%c0_74, %c0_75], %286 {strides = array<i32>} : memref<16x128xf32, #tpu.memory_space<vmem>>, vector<16x128xf32>,
    return
  }
  func.func @transform_0(%arg0: i32, %arg1: i32) -> (i32, i32, i32) {
    %c0_i32 = arith.constant 0 : i32
    %c0_i32_0 = arith.constant 0 : i32
    return %arg1, %arg0, %c0_i32 : i32, i32, i32
  }
  func.func @transform_1(%arg0: i32, %arg1: i32) -> (i32, i32) {
    %c0_i32 = arith.constant 0 : i32
    %c0_i32_0 = arith.constant 0 : i32
    %c0_i32_1 = arith.constant 0 : i32
    return %c0_i32, %c0_i32_0 : i32, i32
  }
  func.func @transform_2(%arg0: i32, %arg1: i32) -> (i32, i32, i32) {
    %c0_i32 = arith.constant 0 : i32
    %c0_i32_0 = arith.constant 0 : i32
    return %arg1, %arg0, %c0_i32 : i32, i32, i32
  }
  func.func @transform_3(%arg0: i32, %arg1: i32) -> (i32, i32) {
    %c0_i32 = arith.constant 0 : i32
    %c0_i32_0 = arith.constant 0 : i32
    return %arg0, %c0_i32 : i32, i32
  }
}

module attributes {stable_mosaic.version = 11 : i64} {
  func.func @_lstm_recurrence_kernel(%arg0: i32, %arg1: i32, %arg2: memref<8x16x512xbf16, #tpu.memory_space<vmem>>, %arg3: memref<128x512xf32, #tpu.memory_space<vmem>>, %arg4: memref<8x16x128xbf16, #tpu.memory_space<vmem>>, %arg5: memref<16x128xf32, #tpu.memory_space<vmem>>, %arg6: memref<16x128xf32, #tpu.memory_space<vmem>>, %arg7: memref<16x128xf32, #tpu.memory_space<vmem>>) attributes {dimension_semantics = [#tpu.dimension_semantics<parallel>, #tpu.dimension_semantics<arbitrary>], iteration_bounds = array<i64: 1, 1>, scalar_prefetch = 0 : i64, scratch_operands = 2 : i64, tpu.core_type = #tpu.core_type<tc>, window_params = [{transform_indices = @transform_0, window_bounds = array<i64: 8, 16, 512>}, {pipeline_mode = #tpu.pipeline_mode<synchronous>, transform_indices = @transform_1, window_bounds = array<i64: 128, 512>}, {transform_indices = @transform_2, window_bounds = array<i64: 8, 16, 128>}, {transform_indices = @transform_3, window_bounds = array<i64: 16, 128>}]} {
    %c0_i32 = arith.constant 0 : i32
    %0 = arith.cmpi eq, %arg1, %c0_i32 : i32
    %1 = arith.extui %0 : i1 to i32
    %c0_i32_0 = arith.constant 0 : i32
    %2 = arith.cmpi ne, %1, %c0_i32_0 : i32
    scf.if %2 {
      %cst_76 = arith.constant 0.000000e+00 : f32
      %297 = vector.broadcast %cst_76 : f32 to vector<16x128xf32>
      %c0_77 = arith.constant 0 : index
      %c0_78 = arith.constant 0 : index
      %298 = vector.load %arg6[%c0_77, %c0_78] : memref<16x128xf32, #tpu.memory_space<vmem>>, vector<16x128xf32>
      tpu.vector_store %arg6[%c0_77, %c0_78], %297 {strides = array<i32>} : memref<16x128xf32, #tpu.memory_space<vmem>>, vector<16x128xf32>,
      %cst_79 = arith.constant 0.000000e+00 : f32
      %299 = vector.broadcast %cst_79 : f32 to vector<16x128xf32>
      %c0_80 = arith.constant 0 : index
      %c0_81 = arith.constant 0 : index
      %300 = vector.load %arg7[%c0_80, %c0_81] : memref<16x128xf32, #tpu.memory_space<vmem>>, vector<16x128xf32>
      tpu.vector_store %arg7[%c0_80, %c0_81], %299 {strides = array<i32>} : memref<16x128xf32, #tpu.memory_space<vmem>>, vector<16x128xf32>,
    } else {
    }
    %c0 = arith.constant 0 : index
    %c0_1 = arith.constant 0 : index
    %3 = vector.load %arg3[%c0, %c0_1] : memref<128x512xf32, #tpu.memory_space<vmem>>, vector<128x512xf32>
    %c0_2 = arith.constant 0 : index
    %c0_3 = arith.constant 0 : index
    %4 = vector.load %arg6[%c0_2, %c0_3] : memref<16x128xf32, #tpu.memory_space<vmem>>, vector<16x128xf32>
    %c0_4 = arith.constant 0 : index
    %c0_5 = arith.constant 0 : index
    %5 = vector.load %arg7[%c0_4, %c0_5] : memref<16x128xf32, #tpu.memory_space<vmem>>, vector<16x128xf32>
    %c0_i32_6 = arith.constant 0 : i32
    %6 = arith.index_cast %c0_i32_6 : i32 to index
    %c0_7 = arith.constant 0 : index
    %c0_8 = arith.constant 0 : index
    %7 = vector.load %arg2[%6, %c0_7, %c0_8] : memref<8x16x512xbf16, #tpu.memory_space<vmem>>, vector<1x16x512xbf16>
    %8 = vector.shape_cast %7 : vector<1x16x512xbf16> to vector<16x512xbf16>
    %9 = arith.extf %8 : vector<16x512xbf16> to vector<16x512xf32>
    %cst = arith.constant dense<0.000000e+00> : vector<16x512xf32>
    %10 = tpu.matmul %4, %3, %cst {dimension_numbers = #tpu.dot_dimension_numbers<[1], [0], [0], [1], [0, 0, 1, 1], [], []>} : vector<16x128xf32>, vector<128x512xf32>, vector<16x512xf32> -> vector<16x512xf32>
    %11 = arith.addf %9, %10 : vector<16x512xf32>
    %12 = vector.extract_strided_slice %11 {offsets = [0, 0], sizes = [16, 128], strides = [1, 1]} : vector<16x512xf32> to vector<16x128xf32>
    %13 = arith.negf %12 : vector<16x128xf32>
    %14 = math.exp %13 : vector<16x128xf32>
    %cst_9 = arith.constant 1.000000e+00 : f32
    %15 = vector.broadcast %cst_9 : f32 to vector<16x128xf32>
    %16 = arith.addf %15, %14 : vector<16x128xf32>
    %17 = arith.divf %15, %16 : vector<16x128xf32>
    %18 = vector.extract_strided_slice %11 {offsets = [0, 128], sizes = [16, 128], strides = [1, 1]} : vector<16x512xf32> to vector<16x128xf32>
    %19 = arith.negf %18 : vector<16x128xf32>
    %20 = math.exp %19 : vector<16x128xf32>
    %cst_10 = arith.constant 1.000000e+00 : f32
    %21 = vector.broadcast %cst_10 : f32 to vector<16x128xf32>
    %22 = arith.addf %21, %20 : vector<16x128xf32>
    %23 = arith.divf %21, %22 : vector<16x128xf32>
    %24 = vector.extract_strided_slice %11 {offsets = [0, 256], sizes = [16, 128], strides = [1, 1]} : vector<16x512xf32> to vector<16x128xf32>
    %25 = math.tanh %24 : vector<16x128xf32>
    %26 = vector.extract_strided_slice %11 {offsets = [0, 384], sizes = [16, 128], strides = [1, 1]} : vector<16x512xf32> to vector<16x128xf32>
    %27 = arith.negf %26 : vector<16x128xf32>
    %28 = math.exp %27 : vector<16x128xf32>
    %cst_11 = arith.constant 1.000000e+00 : f32
    %29 = vector.broadcast %cst_11 : f32 to vector<16x128xf32>
    %30 = arith.addf %29, %28 : vector<16x128xf32>
    %31 = arith.divf %29, %30 : vector<16x128xf32>
    %32 = arith.mulf %23, %5 : vector<16x128xf32>
    %33 = arith.mulf %17, %25 : vector<16x128xf32>
    %34 = arith.addf %32, %33 : vector<16x128xf32>
    %35 = math.tanh %34 : vector<16x128xf32>
    %36 = arith.mulf %31, %35 : vector<16x128xf32>
    %37 = arith.truncf %36 : vector<16x128xf32> to vector<16x128xbf16>
    %38 = arith.index_cast %c0_i32_6 : i32 to index
    %c0_12 = arith.constant 0 : index
    %c0_13 = arith.constant 0 : index
    %39 = vector.load %arg4[%38, %c0_12, %c0_13] : memref<8x16x128xbf16, #tpu.memory_space<vmem>>, vector<1x16x128xbf16>
    %40 = vector.shape_cast %39 : vector<1x16x128xbf16> to vector<16x128xbf16>
    %41 = vector.shape_cast %37 : vector<16x128xbf16> to vector<1x16x128xbf16>
    tpu.vector_store %arg4[%38, %c0_12, %c0_13], %41 {strides = array<i32>} : memref<8x16x128xbf16, #tpu.memory_space<vmem>>, vector<1x16x128xbf16>,
    %c1_i32 = arith.constant 1 : i32
    %42 = arith.index_cast %c1_i32 : i32 to index
    %c0_14 = arith.constant 0 : index
    %c0_15 = arith.constant 0 : index
    %43 = vector.load %arg2[%42, %c0_14, %c0_15] : memref<8x16x512xbf16, #tpu.memory_space<vmem>>, vector<1x16x512xbf16>
    %44 = vector.shape_cast %43 : vector<1x16x512xbf16> to vector<16x512xbf16>
    %45 = arith.extf %44 : vector<16x512xbf16> to vector<16x512xf32>
    %cst_16 = arith.constant dense<0.000000e+00> : vector<16x512xf32>
    %46 = tpu.matmul %36, %3, %cst_16 {dimension_numbers = #tpu.dot_dimension_numbers<[1], [0], [0], [1], [0, 0, 1, 1], [], []>} : vector<16x128xf32>, vector<128x512xf32>, vector<16x512xf32> -> vector<16x512xf32>
    %47 = arith.addf %45, %46 : vector<16x512xf32>
    %48 = vector.extract_strided_slice %47 {offsets = [0, 0], sizes = [16, 128], strides = [1, 1]} : vector<16x512xf32> to vector<16x128xf32>
    %49 = arith.negf %48 : vector<16x128xf32>
    %50 = math.exp %49 : vector<16x128xf32>
    %cst_17 = arith.constant 1.000000e+00 : f32
    %51 = vector.broadcast %cst_17 : f32 to vector<16x128xf32>
    %52 = arith.addf %51, %50 : vector<16x128xf32>
    %53 = arith.divf %51, %52 : vector<16x128xf32>
    %54 = vector.extract_strided_slice %47 {offsets = [0, 128], sizes = [16, 128], strides = [1, 1]} : vector<16x512xf32> to vector<16x128xf32>
    %55 = arith.negf %54 : vector<16x128xf32>
    %56 = math.exp %55 : vector<16x128xf32>
    %cst_18 = arith.constant 1.000000e+00 : f32
    %57 = vector.broadcast %cst_18 : f32 to vector<16x128xf32>
    %58 = arith.addf %57, %56 : vector<16x128xf32>
    %59 = arith.divf %57, %58 : vector<16x128xf32>
    %60 = vector.extract_strided_slice %47 {offsets = [0, 256], sizes = [16, 128], strides = [1, 1]} : vector<16x512xf32> to vector<16x128xf32>
    %61 = math.tanh %60 : vector<16x128xf32>
    %62 = vector.extract_strided_slice %47 {offsets = [0, 384], sizes = [16, 128], strides = [1, 1]} : vector<16x512xf32> to vector<16x128xf32>
    %63 = arith.negf %62 : vector<16x128xf32>
    %64 = math.exp %63 : vector<16x128xf32>
    %cst_19 = arith.constant 1.000000e+00 : f32
    %65 = vector.broadcast %cst_19 : f32 to vector<16x128xf32>
    %66 = arith.addf %65, %64 : vector<16x128xf32>
    %67 = arith.divf %65, %66 : vector<16x128xf32>
    %68 = arith.mulf %59, %34 : vector<16x128xf32>
    %69 = arith.mulf %53, %61 : vector<16x128xf32>
    %70 = arith.addf %68, %69 : vector<16x128xf32>
    %71 = math.tanh %70 : vector<16x128xf32>
    %72 = arith.mulf %67, %71 : vector<16x128xf32>
    %73 = arith.truncf %72 : vector<16x128xf32> to vector<16x128xbf16>
    %74 = arith.index_cast %c1_i32 : i32 to index
    %c0_20 = arith.constant 0 : index
    %c0_21 = arith.constant 0 : index
    %75 = vector.load %arg4[%74, %c0_20, %c0_21] : memref<8x16x128xbf16, #tpu.memory_space<vmem>>, vector<1x16x128xbf16>
    %76 = vector.shape_cast %75 : vector<1x16x128xbf16> to vector<16x128xbf16>
    %77 = vector.shape_cast %73 : vector<16x128xbf16> to vector<1x16x128xbf16>
    tpu.vector_store %arg4[%74, %c0_20, %c0_21], %77 {strides = array<i32>} : memref<8x16x128xbf16, #tpu.memory_space<vmem>>, vector<1x16x128xbf16>,
    %c2_i32 = arith.constant 2 : i32
    %78 = arith.index_cast %c2_i32 : i32 to index
    %c0_22 = arith.constant 0 : index
    %c0_23 = arith.constant 0 : index
    %79 = vector.load %arg2[%78, %c0_22, %c0_23] : memref<8x16x512xbf16, #tpu.memory_space<vmem>>, vector<1x16x512xbf16>
    %80 = vector.shape_cast %79 : vector<1x16x512xbf16> to vector<16x512xbf16>
    %81 = arith.extf %80 : vector<16x512xbf16> to vector<16x512xf32>
    %cst_24 = arith.constant dense<0.000000e+00> : vector<16x512xf32>
    %82 = tpu.matmul %72, %3, %cst_24 {dimension_numbers = #tpu.dot_dimension_numbers<[1], [0], [0], [1], [0, 0, 1, 1], [], []>} : vector<16x128xf32>, vector<128x512xf32>, vector<16x512xf32> -> vector<16x512xf32>
    %83 = arith.addf %81, %82 : vector<16x512xf32>
    %84 = vector.extract_strided_slice %83 {offsets = [0, 0], sizes = [16, 128], strides = [1, 1]} : vector<16x512xf32> to vector<16x128xf32>
    %85 = arith.negf %84 : vector<16x128xf32>
    %86 = math.exp %85 : vector<16x128xf32>
    %cst_25 = arith.constant 1.000000e+00 : f32
    %87 = vector.broadcast %cst_25 : f32 to vector<16x128xf32>
    %88 = arith.addf %87, %86 : vector<16x128xf32>
    %89 = arith.divf %87, %88 : vector<16x128xf32>
    %90 = vector.extract_strided_slice %83 {offsets = [0, 128], sizes = [16, 128], strides = [1, 1]} : vector<16x512xf32> to vector<16x128xf32>
    %91 = arith.negf %90 : vector<16x128xf32>
    %92 = math.exp %91 : vector<16x128xf32>
    %cst_26 = arith.constant 1.000000e+00 : f32
    %93 = vector.broadcast %cst_26 : f32 to vector<16x128xf32>
    %94 = arith.addf %93, %92 : vector<16x128xf32>
    %95 = arith.divf %93, %94 : vector<16x128xf32>
    %96 = vector.extract_strided_slice %83 {offsets = [0, 256], sizes = [16, 128], strides = [1, 1]} : vector<16x512xf32> to vector<16x128xf32>
    %97 = math.tanh %96 : vector<16x128xf32>
    %98 = vector.extract_strided_slice %83 {offsets = [0, 384], sizes = [16, 128], strides = [1, 1]} : vector<16x512xf32> to vector<16x128xf32>
    %99 = arith.negf %98 : vector<16x128xf32>
    %100 = math.exp %99 : vector<16x128xf32>
    %cst_27 = arith.constant 1.000000e+00 : f32
    %101 = vector.broadcast %cst_27 : f32 to vector<16x128xf32>
    %102 = arith.addf %101, %100 : vector<16x128xf32>
    %103 = arith.divf %101, %102 : vector<16x128xf32>
    %104 = arith.mulf %95, %70 : vector<16x128xf32>
    %105 = arith.mulf %89, %97 : vector<16x128xf32>
    %106 = arith.addf %104, %105 : vector<16x128xf32>
    %107 = math.tanh %106 : vector<16x128xf32>
    %108 = arith.mulf %103, %107 : vector<16x128xf32>
    %109 = arith.truncf %108 : vector<16x128xf32> to vector<16x128xbf16>
    %110 = arith.index_cast %c2_i32 : i32 to index
    %c0_28 = arith.constant 0 : index
    %c0_29 = arith.constant 0 : index
    %111 = vector.load %arg4[%110, %c0_28, %c0_29] : memref<8x16x128xbf16, #tpu.memory_space<vmem>>, vector<1x16x128xbf16>
    %112 = vector.shape_cast %111 : vector<1x16x128xbf16> to vector<16x128xbf16>
    %113 = vector.shape_cast %109 : vector<16x128xbf16> to vector<1x16x128xbf16>
    tpu.vector_store %arg4[%110, %c0_28, %c0_29], %113 {strides = array<i32>} : memref<8x16x128xbf16, #tpu.memory_space<vmem>>, vector<1x16x128xbf16>,
    %c3_i32 = arith.constant 3 : i32
    %114 = arith.index_cast %c3_i32 : i32 to index
    %c0_30 = arith.constant 0 : index
    %c0_31 = arith.constant 0 : index
    %115 = vector.load %arg2[%114, %c0_30, %c0_31] : memref<8x16x512xbf16, #tpu.memory_space<vmem>>, vector<1x16x512xbf16>
    %116 = vector.shape_cast %115 : vector<1x16x512xbf16> to vector<16x512xbf16>
    %117 = arith.extf %116 : vector<16x512xbf16> to vector<16x512xf32>
    %cst_32 = arith.constant dense<0.000000e+00> : vector<16x512xf32>
    %118 = tpu.matmul %108, %3, %cst_32 {dimension_numbers = #tpu.dot_dimension_numbers<[1], [0], [0], [1], [0, 0, 1, 1], [], []>} : vector<16x128xf32>, vector<128x512xf32>, vector<16x512xf32> -> vector<16x512xf32>
    %119 = arith.addf %117, %118 : vector<16x512xf32>
    %120 = vector.extract_strided_slice %119 {offsets = [0, 0], sizes = [16, 128], strides = [1, 1]} : vector<16x512xf32> to vector<16x128xf32>
    %121 = arith.negf %120 : vector<16x128xf32>
    %122 = math.exp %121 : vector<16x128xf32>
    %cst_33 = arith.constant 1.000000e+00 : f32
    %123 = vector.broadcast %cst_33 : f32 to vector<16x128xf32>
    %124 = arith.addf %123, %122 : vector<16x128xf32>
    %125 = arith.divf %123, %124 : vector<16x128xf32>
    %126 = vector.extract_strided_slice %119 {offsets = [0, 128], sizes = [16, 128], strides = [1, 1]} : vector<16x512xf32> to vector<16x128xf32>
    %127 = arith.negf %126 : vector<16x128xf32>
    %128 = math.exp %127 : vector<16x128xf32>
    %cst_34 = arith.constant 1.000000e+00 : f32
    %129 = vector.broadcast %cst_34 : f32 to vector<16x128xf32>
    %130 = arith.addf %129, %128 : vector<16x128xf32>
    %131 = arith.divf %129, %130 : vector<16x128xf32>
    %132 = vector.extract_strided_slice %119 {offsets = [0, 256], sizes = [16, 128], strides = [1, 1]} : vector<16x512xf32> to vector<16x128xf32>
    %133 = math.tanh %132 : vector<16x128xf32>
    %134 = vector.extract_strided_slice %119 {offsets = [0, 384], sizes = [16, 128], strides = [1, 1]} : vector<16x512xf32> to vector<16x128xf32>
    %135 = arith.negf %134 : vector<16x128xf32>
    %136 = math.exp %135 : vector<16x128xf32>
    %cst_35 = arith.constant 1.000000e+00 : f32
    %137 = vector.broadcast %cst_35 : f32 to vector<16x128xf32>
    %138 = arith.addf %137, %136 : vector<16x128xf32>
    %139 = arith.divf %137, %138 : vector<16x128xf32>
    %140 = arith.mulf %131, %106 : vector<16x128xf32>
    %141 = arith.mulf %125, %133 : vector<16x128xf32>
    %142 = arith.addf %140, %141 : vector<16x128xf32>
    %143 = math.tanh %142 : vector<16x128xf32>
    %144 = arith.mulf %139, %143 : vector<16x128xf32>
    %145 = arith.truncf %144 : vector<16x128xf32> to vector<16x128xbf16>
    %146 = arith.index_cast %c3_i32 : i32 to index
    %c0_36 = arith.constant 0 : index
    %c0_37 = arith.constant 0 : index
    %147 = vector.load %arg4[%146, %c0_36, %c0_37] : memref<8x16x128xbf16, #tpu.memory_space<vmem>>, vector<1x16x128xbf16>
    %148 = vector.shape_cast %147 : vector<1x16x128xbf16> to vector<16x128xbf16>
    %149 = vector.shape_cast %145 : vector<16x128xbf16> to vector<1x16x128xbf16>
    tpu.vector_store %arg4[%146, %c0_36, %c0_37], %149 {strides = array<i32>} : memref<8x16x128xbf16, #tpu.memory_space<vmem>>, vector<1x16x128xbf16>,
    %c4_i32 = arith.constant 4 : i32
    %150 = arith.index_cast %c4_i32 : i32 to index
    %c0_38 = arith.constant 0 : index
    %c0_39 = arith.constant 0 : index
    %151 = vector.load %arg2[%150, %c0_38, %c0_39] : memref<8x16x512xbf16, #tpu.memory_space<vmem>>, vector<1x16x512xbf16>
    %152 = vector.shape_cast %151 : vector<1x16x512xbf16> to vector<16x512xbf16>
    %153 = arith.extf %152 : vector<16x512xbf16> to vector<16x512xf32>
    %cst_40 = arith.constant dense<0.000000e+00> : vector<16x512xf32>
    %154 = tpu.matmul %144, %3, %cst_40 {dimension_numbers = #tpu.dot_dimension_numbers<[1], [0], [0], [1], [0, 0, 1, 1], [], []>} : vector<16x128xf32>, vector<128x512xf32>, vector<16x512xf32> -> vector<16x512xf32>
    %155 = arith.addf %153, %154 : vector<16x512xf32>
    %156 = vector.extract_strided_slice %155 {offsets = [0, 0], sizes = [16, 128], strides = [1, 1]} : vector<16x512xf32> to vector<16x128xf32>
    %157 = arith.negf %156 : vector<16x128xf32>
    %158 = math.exp %157 : vector<16x128xf32>
    %cst_41 = arith.constant 1.000000e+00 : f32
    %159 = vector.broadcast %cst_41 : f32 to vector<16x128xf32>
    %160 = arith.addf %159, %158 : vector<16x128xf32>
    %161 = arith.divf %159, %160 : vector<16x128xf32>
    %162 = vector.extract_strided_slice %155 {offsets = [0, 128], sizes = [16, 128], strides = [1, 1]} : vector<16x512xf32> to vector<16x128xf32>
    %163 = arith.negf %162 : vector<16x128xf32>
    %164 = math.exp %163 : vector<16x128xf32>
    %cst_42 = arith.constant 1.000000e+00 : f32
    %165 = vector.broadcast %cst_42 : f32 to vector<16x128xf32>
    %166 = arith.addf %165, %164 : vector<16x128xf32>
    %167 = arith.divf %165, %166 : vector<16x128xf32>
    %168 = vector.extract_strided_slice %155 {offsets = [0, 256], sizes = [16, 128], strides = [1, 1]} : vector<16x512xf32> to vector<16x128xf32>
    %169 = math.tanh %168 : vector<16x128xf32>
    %170 = vector.extract_strided_slice %155 {offsets = [0, 384], sizes = [16, 128], strides = [1, 1]} : vector<16x512xf32> to vector<16x128xf32>
    %171 = arith.negf %170 : vector<16x128xf32>
    %172 = math.exp %171 : vector<16x128xf32>
    %cst_43 = arith.constant 1.000000e+00 : f32
    %173 = vector.broadcast %cst_43 : f32 to vector<16x128xf32>
    %174 = arith.addf %173, %172 : vector<16x128xf32>
    %175 = arith.divf %173, %174 : vector<16x128xf32>
    %176 = arith.mulf %167, %142 : vector<16x128xf32>
    %177 = arith.mulf %161, %169 : vector<16x128xf32>
    %178 = arith.addf %176, %177 : vector<16x128xf32>
    %179 = math.tanh %178 : vector<16x128xf32>
    %180 = arith.mulf %175, %179 : vector<16x128xf32>
    %181 = arith.truncf %180 : vector<16x128xf32> to vector<16x128xbf16>
    %182 = arith.index_cast %c4_i32 : i32 to index
    %c0_44 = arith.constant 0 : index
    %c0_45 = arith.constant 0 : index
    %183 = vector.load %arg4[%182, %c0_44, %c0_45] : memref<8x16x128xbf16, #tpu.memory_space<vmem>>, vector<1x16x128xbf16>
    %184 = vector.shape_cast %183 : vector<1x16x128xbf16> to vector<16x128xbf16>
    %185 = vector.shape_cast %181 : vector<16x128xbf16> to vector<1x16x128xbf16>
    tpu.vector_store %arg4[%182, %c0_44, %c0_45], %185 {strides = array<i32>} : memref<8x16x128xbf16, #tpu.memory_space<vmem>>, vector<1x16x128xbf16>,
    %c5_i32 = arith.constant 5 : i32
    %186 = arith.index_cast %c5_i32 : i32 to index
    %c0_46 = arith.constant 0 : index
    %c0_47 = arith.constant 0 : index
    %187 = vector.load %arg2[%186, %c0_46, %c0_47] : memref<8x16x512xbf16, #tpu.memory_space<vmem>>, vector<1x16x512xbf16>
    %188 = vector.shape_cast %187 : vector<1x16x512xbf16> to vector<16x512xbf16>
    %189 = arith.extf %188 : vector<16x512xbf16> to vector<16x512xf32>
    %cst_48 = arith.constant dense<0.000000e+00> : vector<16x512xf32>
    %190 = tpu.matmul %180, %3, %cst_48 {dimension_numbers = #tpu.dot_dimension_numbers<[1], [0], [0], [1], [0, 0, 1, 1], [], []>} : vector<16x128xf32>, vector<128x512xf32>, vector<16x512xf32> -> vector<16x512xf32>
    %191 = arith.addf %189, %190 : vector<16x512xf32>
    %192 = vector.extract_strided_slice %191 {offsets = [0, 0], sizes = [16, 128], strides = [1, 1]} : vector<16x512xf32> to vector<16x128xf32>
    %193 = arith.negf %192 : vector<16x128xf32>
    %194 = math.exp %193 : vector<16x128xf32>
    %cst_49 = arith.constant 1.000000e+00 : f32
    %195 = vector.broadcast %cst_49 : f32 to vector<16x128xf32>
    %196 = arith.addf %195, %194 : vector<16x128xf32>
    %197 = arith.divf %195, %196 : vector<16x128xf32>
    %198 = vector.extract_strided_slice %191 {offsets = [0, 128], sizes = [16, 128], strides = [1, 1]} : vector<16x512xf32> to vector<16x128xf32>
    %199 = arith.negf %198 : vector<16x128xf32>
    %200 = math.exp %199 : vector<16x128xf32>
    %cst_50 = arith.constant 1.000000e+00 : f32
    %201 = vector.broadcast %cst_50 : f32 to vector<16x128xf32>
    %202 = arith.addf %201, %200 : vector<16x128xf32>
    %203 = arith.divf %201, %202 : vector<16x128xf32>
    %204 = vector.extract_strided_slice %191 {offsets = [0, 256], sizes = [16, 128], strides = [1, 1]} : vector<16x512xf32> to vector<16x128xf32>
    %205 = math.tanh %204 : vector<16x128xf32>
    %206 = vector.extract_strided_slice %191 {offsets = [0, 384], sizes = [16, 128], strides = [1, 1]} : vector<16x512xf32> to vector<16x128xf32>
    %207 = arith.negf %206 : vector<16x128xf32>
    %208 = math.exp %207 : vector<16x128xf32>
    %cst_51 = arith.constant 1.000000e+00 : f32
    %209 = vector.broadcast %cst_51 : f32 to vector<16x128xf32>
    %210 = arith.addf %209, %208 : vector<16x128xf32>
    %211 = arith.divf %209, %210 : vector<16x128xf32>
    %212 = arith.mulf %203, %178 : vector<16x128xf32>
    %213 = arith.mulf %197, %205 : vector<16x128xf32>
    %214 = arith.addf %212, %213 : vector<16x128xf32>
    %215 = math.tanh %214 : vector<16x128xf32>
    %216 = arith.mulf %211, %215 : vector<16x128xf32>
    %217 = arith.truncf %216 : vector<16x128xf32> to vector<16x128xbf16>
    %218 = arith.index_cast %c5_i32 : i32 to index
    %c0_52 = arith.constant 0 : index
    %c0_53 = arith.constant 0 : index
    %219 = vector.load %arg4[%218, %c0_52, %c0_53] : memref<8x16x128xbf16, #tpu.memory_space<vmem>>, vector<1x16x128xbf16>
    %220 = vector.shape_cast %219 : vector<1x16x128xbf16> to vector<16x128xbf16>
    %221 = vector.shape_cast %217 : vector<16x128xbf16> to vector<1x16x128xbf16>
    tpu.vector_store %arg4[%218, %c0_52, %c0_53], %221 {strides = array<i32>} : memref<8x16x128xbf16, #tpu.memory_space<vmem>>, vector<1x16x128xbf16>,
    %c6_i32 = arith.constant 6 : i32
    %222 = arith.index_cast %c6_i32 : i32 to index
    %c0_54 = arith.constant 0 : index
    %c0_55 = arith.constant 0 : index
    %223 = vector.load %arg2[%222, %c0_54, %c0_55] : memref<8x16x512xbf16, #tpu.memory_space<vmem>>, vector<1x16x512xbf16>
    %224 = vector.shape_cast %223 : vector<1x16x512xbf16> to vector<16x512xbf16>
    %225 = arith.extf %224 : vector<16x512xbf16> to vector<16x512xf32>
    %cst_56 = arith.constant dense<0.000000e+00> : vector<16x512xf32>
    %226 = tpu.matmul %216, %3, %cst_56 {dimension_numbers = #tpu.dot_dimension_numbers<[1], [0], [0], [1], [0, 0, 1, 1], [], []>} : vector<16x128xf32>, vector<128x512xf32>, vector<16x512xf32> -> vector<16x512xf32>
    %227 = arith.addf %225, %226 : vector<16x512xf32>
    %228 = vector.extract_strided_slice %227 {offsets = [0, 0], sizes = [16, 128], strides = [1, 1]} : vector<16x512xf32> to vector<16x128xf32>
    %229 = arith.negf %228 : vector<16x128xf32>
    %230 = math.exp %229 : vector<16x128xf32>
    %cst_57 = arith.constant 1.000000e+00 : f32
    %231 = vector.broadcast %cst_57 : f32 to vector<16x128xf32>
    %232 = arith.addf %231, %230 : vector<16x128xf32>
    %233 = arith.divf %231, %232 : vector<16x128xf32>
    %234 = vector.extract_strided_slice %227 {offsets = [0, 128], sizes = [16, 128], strides = [1, 1]} : vector<16x512xf32> to vector<16x128xf32>
    %235 = arith.negf %234 : vector<16x128xf32>
    %236 = math.exp %235 : vector<16x128xf32>
    %cst_58 = arith.constant 1.000000e+00 : f32
    %237 = vector.broadcast %cst_58 : f32 to vector<16x128xf32>
    %238 = arith.addf %237, %236 : vector<16x128xf32>
    %239 = arith.divf %237, %238 : vector<16x128xf32>
    %240 = vector.extract_strided_slice %227 {offsets = [0, 256], sizes = [16, 128], strides = [1, 1]} : vector<16x512xf32> to vector<16x128xf32>
    %241 = math.tanh %240 : vector<16x128xf32>
    %242 = vector.extract_strided_slice %227 {offsets = [0, 384], sizes = [16, 128], strides = [1, 1]} : vector<16x512xf32> to vector<16x128xf32>
    %243 = arith.negf %242 : vector<16x128xf32>
    %244 = math.exp %243 : vector<16x128xf32>
    %cst_59 = arith.constant 1.000000e+00 : f32
    %245 = vector.broadcast %cst_59 : f32 to vector<16x128xf32>
    %246 = arith.addf %245, %244 : vector<16x128xf32>
    %247 = arith.divf %245, %246 : vector<16x128xf32>
    %248 = arith.mulf %239, %214 : vector<16x128xf32>
    %249 = arith.mulf %233, %241 : vector<16x128xf32>
    %250 = arith.addf %248, %249 : vector<16x128xf32>
    %251 = math.tanh %250 : vector<16x128xf32>
    %252 = arith.mulf %247, %251 : vector<16x128xf32>
    %253 = arith.truncf %252 : vector<16x128xf32> to vector<16x128xbf16>
    %254 = arith.index_cast %c6_i32 : i32 to index
    %c0_60 = arith.constant 0 : index
    %c0_61 = arith.constant 0 : index
    %255 = vector.load %arg4[%254, %c0_60, %c0_61] : memref<8x16x128xbf16, #tpu.memory_space<vmem>>, vector<1x16x128xbf16>
    %256 = vector.shape_cast %255 : vector<1x16x128xbf16> to vector<16x128xbf16>
    %257 = vector.shape_cast %253 : vector<16x128xbf16> to vector<1x16x128xbf16>
    tpu.vector_store %arg4[%254, %c0_60, %c0_61], %257 {strides = array<i32>} : memref<8x16x128xbf16, #tpu.memory_space<vmem>>, vector<1x16x128xbf16>,
    %c7_i32 = arith.constant 7 : i32
    %258 = arith.index_cast %c7_i32 : i32 to index
    %c0_62 = arith.constant 0 : index
    %c0_63 = arith.constant 0 : index
    %259 = vector.load %arg2[%258, %c0_62, %c0_63] : memref<8x16x512xbf16, #tpu.memory_space<vmem>>, vector<1x16x512xbf16>
    %260 = vector.shape_cast %259 : vector<1x16x512xbf16> to vector<16x512xbf16>
    %261 = arith.extf %260 : vector<16x512xbf16> to vector<16x512xf32>
    %cst_64 = arith.constant dense<0.000000e+00> : vector<16x512xf32>
    %262 = tpu.matmul %252, %3, %cst_64 {dimension_numbers = #tpu.dot_dimension_numbers<[1], [0], [0], [1], [0, 0, 1, 1], [], []>} : vector<16x128xf32>, vector<128x512xf32>, vector<16x512xf32> -> vector<16x512xf32>
    %263 = arith.addf %261, %262 : vector<16x512xf32>
    %264 = vector.extract_strided_slice %263 {offsets = [0, 0], sizes = [16, 128], strides = [1, 1]} : vector<16x512xf32> to vector<16x128xf32>
    %265 = arith.negf %264 : vector<16x128xf32>
    %266 = math.exp %265 : vector<16x128xf32>
    %cst_65 = arith.constant 1.000000e+00 : f32
    %267 = vector.broadcast %cst_65 : f32 to vector<16x128xf32>
    %268 = arith.addf %267, %266 : vector<16x128xf32>
    %269 = arith.divf %267, %268 : vector<16x128xf32>
    %270 = vector.extract_strided_slice %263 {offsets = [0, 128], sizes = [16, 128], strides = [1, 1]} : vector<16x512xf32> to vector<16x128xf32>
    %271 = arith.negf %270 : vector<16x128xf32>
    %272 = math.exp %271 : vector<16x128xf32>
    %cst_66 = arith.constant 1.000000e+00 : f32
    %273 = vector.broadcast %cst_66 : f32 to vector<16x128xf32>
    %274 = arith.addf %273, %272 : vector<16x128xf32>
    %275 = arith.divf %273, %274 : vector<16x128xf32>
    %276 = vector.extract_strided_slice %263 {offsets = [0, 256], sizes = [16, 128], strides = [1, 1]} : vector<16x512xf32> to vector<16x128xf32>
    %277 = math.tanh %276 : vector<16x128xf32>
    %278 = vector.extract_strided_slice %263 {offsets = [0, 384], sizes = [16, 128], strides = [1, 1]} : vector<16x512xf32> to vector<16x128xf32>
    %279 = arith.negf %278 : vector<16x128xf32>
    %280 = math.exp %279 : vector<16x128xf32>
    %cst_67 = arith.constant 1.000000e+00 : f32
    %281 = vector.broadcast %cst_67 : f32 to vector<16x128xf32>
    %282 = arith.addf %281, %280 : vector<16x128xf32>
    %283 = arith.divf %281, %282 : vector<16x128xf32>
    %284 = arith.mulf %275, %250 : vector<16x128xf32>
    %285 = arith.mulf %269, %277 : vector<16x128xf32>
    %286 = arith.addf %284, %285 : vector<16x128xf32>
    %287 = math.tanh %286 : vector<16x128xf32>
    %288 = arith.mulf %283, %287 : vector<16x128xf32>
    %289 = arith.truncf %288 : vector<16x128xf32> to vector<16x128xbf16>
    %290 = arith.index_cast %c7_i32 : i32 to index
    %c0_68 = arith.constant 0 : index
    %c0_69 = arith.constant 0 : index
    %291 = vector.load %arg4[%290, %c0_68, %c0_69] : memref<8x16x128xbf16, #tpu.memory_space<vmem>>, vector<1x16x128xbf16>
    %292 = vector.shape_cast %291 : vector<1x16x128xbf16> to vector<16x128xbf16>
    %293 = vector.shape_cast %289 : vector<16x128xbf16> to vector<1x16x128xbf16>
    tpu.vector_store %arg4[%290, %c0_68, %c0_69], %293 {strides = array<i32>} : memref<8x16x128xbf16, #tpu.memory_space<vmem>>, vector<1x16x128xbf16>,
    %c8_i32 = arith.constant 8 : i32
    %c0_70 = arith.constant 0 : index
    %c0_71 = arith.constant 0 : index
    %294 = vector.load %arg6[%c0_70, %c0_71] : memref<16x128xf32, #tpu.memory_space<vmem>>, vector<16x128xf32>
    tpu.vector_store %arg6[%c0_70, %c0_71], %288 {strides = array<i32>} : memref<16x128xf32, #tpu.memory_space<vmem>>, vector<16x128xf32>,
    %c0_72 = arith.constant 0 : index
    %c0_73 = arith.constant 0 : index
    %295 = vector.load %arg7[%c0_72, %c0_73] : memref<16x128xf32, #tpu.memory_space<vmem>>, vector<16x128xf32>
    tpu.vector_store %arg7[%c0_72, %c0_73], %286 {strides = array<i32>} : memref<16x128xf32, #tpu.memory_space<vmem>>, vector<16x128xf32>,
    %c0_74 = arith.constant 0 : index
    %c0_75 = arith.constant 0 : index
    %296 = vector.load %arg5[%c0_74, %c0_75] : memref<16x128xf32, #tpu.memory_space<vmem>>, vector<16x128xf32>
    tpu.vector_store %arg5[%c0_74, %c0_75], %286 {strides = array<i32>} : memref<16x128xf32, #tpu.memory_space<vmem>>, vector<16x128xf32>,
    return
  }
  func.func @transform_0(%arg0: i32, %arg1: i32) -> (i32, i32, i32) {
    %c0_i32 = arith.constant 0 : i32
    %c0_i32_0 = arith.constant 0 : i32
    return %arg1, %arg0, %c0_i32 : i32, i32, i32
  }
  func.func @transform_1(%arg0: i32, %arg1: i32) -> (i32, i32) {
    %c0_i32 = arith.constant 0 : i32
    %c0_i32_0 = arith.constant 0 : i32
    %c0_i32_1 = arith.constant 0 : i32
    return %c0_i32, %c0_i32_0 : i32, i32
  }
  func.func @transform_2(%arg0: i32, %arg1: i32) -> (i32, i32, i32) {
    %c0_i32 = arith.constant 0 : i32
    %c0_i32_0 = arith.constant 0 : i32
    return %arg1, %arg0, %c0_i32 : i32, i32, i32
  }
  func.func @transform_3(%arg0: i32, %arg1: i32) -> (i32, i32) {
    %c0_i32 = arith.constant 0 : i32
    %c0_i32_0 = arith.constant 0 : i32
    return %arg0, %c0_i32 : i32, i32
  }
}

</mosaic_0001>

<bundles_post_ra>
// kernel: lstmf_forward.2
= control target key start
LH: loop header
LB: loop body
LE: loop exit
PB: predicated region body
PF: predicated region fallthrough
CT: control target
= control target key end

     0   :  { %v2761_v3 = vmov 0.0   ;;  %s3512_s1 = inlined_call_operand.vmem [shape: f32[128,512], index: 1, kind: input, shape index: {}]   ;;  %s3513_s0 = inlined_call_operand.vmem [shape: bf16[8,16,512], index: 0, kind: input, shape index: {}]   ;;  %s3514_s2 = inlined_call_operand.vmem [shape: bf16[8,16,128], index: 2, kind: output, shape index: {0}]   ;;  %s3515_s3 = inlined_call_operand.vmem [shape: f32[16,128], index: 3, kind: output, shape index: {1}]  }
   0x1   :  { %v22_v0 = vld [vmem:[%s3512_s1 + $0x8] sm:$0xff]  ;;  %v21_v2 = vld [vmem:[%s3512_s1] sm:$0xff]  ;;  %165 = vmatprep.mubr.f32.mxu0 %v2761_v3  ;;  %242 = vmatprep.mubr.f32.mxu1 %v2761_v3  ;;  %v24_v19 = vld [vmem:[%s3512_s1 + $0x18] sm:$0xff] }
   0x2   :  { %v26_v1 = vld [vmem:[%s3512_s1 + $0x28] sm:$0xff]  ;;  %v25_v5 = vld [vmem:[%s3512_s1 + $0x20] sm:$0xff]  ;;  %v28_v20 = vld [vmem:[%s3512_s1 + $0x38] sm:$0xff] }
   0x3   :  { %v2793_v4 = vpack.c.bf16 %v26_v1, %v22_v0  ;;  %v30_v6 = vld [vmem:[%s3512_s1 + $0x48] sm:$0xff]  ;;  %v2804_v8 = vpack.c.bf16 %v25_v5, %v21_v2  ;;  %v29_v10 = vld [vmem:[%s3512_s1 + $0x40] sm:$0xff]  ;;  %v2845_v22 = vpack.c.bf16 %v28_v20, %v24_v19  ;;  %v23_v23 = vld [vmem:[%s3512_s1 + $0x10] sm:$0xff] }
   0x4   :  { %v34_v7 = vld [vmem:[%s3512_s1 + $0x68] sm:$0xff]  ;;  %v33_v11 = vld [vmem:[%s3512_s1 + $0x60] sm:$0xff]  ;;  %v27_v24 = vld [vmem:[%s3512_s1 + $0x30] sm:$0xff] }
   0x5   :  { %v2806_v9 = vpack.c.bf16 %v34_v7, %v30_v6  ;;  %v38_v12 = vld [vmem:[%s3512_s1 + $0x88] sm:$0xff]  ;;  %1993 = vmatprep.subr.bf16.mxu0 %v2793_v4  ;;  %v2822_v14 = vpack.c.bf16 %v33_v11, %v29_v10  ;;  %v37_v15 = vld [vmem:[%s3512_s1 + $0x80] sm:$0xff]  ;;  %v2853_v25 = vpack.c.bf16 %v27_v24, %v23_v23  ;;  %2025 = vmatprep.subr.bf16.mxu1 %v2845_v22  ;;  %v32_v27 = vld [vmem:[%s3512_s1 + $0x58] sm:$0xff] }
   0x6   :  { %v42_v13 = vld [vmem:[%s3512_s1 + $0xa8] sm:$0xff]  ;;  %1995 = vmatpush1.bf16.msra.mxu0 %v2804_v8  ;;  %v41_v16 = vld [vmem:[%s3512_s1 + $0xa0] sm:$0xff]  ;;  %v36_v28 = vld [vmem:[%s3512_s1 + $0x78] sm:$0xff] }
   0x7   :  { %1997 = vmatprep.subr.bf16.mxu0 %v2806_v9  ;;  %v2831_v17 = vpack.c.bf16 %v42_v13, %v38_v12  ;;  %v46_v18 = vld [vmem:[%s3512_s1 + $0xc8] sm:$0xff]  ;;  %v2856_v26 = vpack.c.bf16 %v41_v16, %v37_v15  ;;  %v31_v29 = vld [vmem:[%s3512_s1 + $0x50] sm:$0xff]  ;;  %v45_v31 = vld [vmem:[%s3512_s1 + $0xc0] sm:$0xff]  ;;  %2027 = vmatpush1.bf16.msra.mxu1 %v2853_v25  ;;  %v2878_v33 = vpack.c.bf16 %v36_v28, %v32_v27 }
   0x8   :  { %v50_v21 = vld [vmem:[%s3512_s1 + $0xe8] sm:$0xff]  ;;  %v49_v32 = vld [vmem:[%s3512_s1 + $0xe0] sm:$0xff]  ;;  %v35_v34 = vld [vmem:[%s3512_s1 + $0x70] sm:$0xff] }
   0x9   :  { %v2869_v30 = vpack.c.bf16 %v50_v21, %v46_v18  ;;  %v54_v35 = vld [vmem:[%s3512_s1 + $0x108] sm:$0xff]  ;;  %v2889_v37 = vpack.c.bf16 %v35_v34, %v31_v29  ;;  %v40_v38 = vld [vmem:[%s3512_s1 + $0x98] sm:$0xff]  ;;  %2029 = vmatprep.subr.bf16.mxu1 %v2878_v33  ;;  %v39_v40 = vld [vmem:[%s3512_s1 + $0x90] sm:$0xff]  ;;  %v2905_v42 = vpack.c.bf16 %v49_v32, %v45_v31 }
   0xa   :  { %1999 = vmatpush1.bf16.msra.mxu0 %v2822_v14  ;;  %v58_v36 = vld [vmem:[%s3512_s1 + $0x128] sm:$0xff]  ;;  %v44_v39 = vld [vmem:[%s3512_s1 + $0xb8] sm:$0xff]  ;;  %v43_v41 = vld [vmem:[%s3512_s1 + $0xb0] sm:$0xff] }
   0xb   :  { %2001 = vmatprep.subr.bf16.mxu0 %v2831_v17  ;;  %v53_v43 = vld [vmem:[%s3512_s1 + $0x100] sm:$0xff]  ;;  %v2913_v45 = vpack.c.bf16 %v44_v39, %v40_v38  ;;  %v2916_v46 = vpack.c.bf16 %v58_v36, %v54_v35  ;;  %2031 = vmatpush1.bf16.msra.mxu1 %v2889_v37  ;;  %v62_v47 = vld [vmem:[%s3512_s1 + $0x148] sm:$0xff]  ;;  %v2922_v48 = vpack.c.bf16 %v43_v41, %v39_v40  ;;  %v48_v49 = vld [vmem:[%s3512_s1 + $0xd8] sm:$0xff] }
   0xc   :  { %v57_v44 = vld [vmem:[%s3512_s1 + $0x120] sm:$0xff]  ;;  %v52_v50 = vld [vmem:[%s3512_s1 + $0xf8] sm:$0xff]  ;;  %v66_v51 = vld [vmem:[%s3512_s1 + $0x168] sm:$0xff] }
   0xd   :  { %2033 = vmatprep.subr.bf16.mxu1 %v2913_v45  ;;  %v2934_v52 = vpack.c.bf16 %v52_v50, %v48_v49  ;;  %v47_v53 = vld [vmem:[%s3512_s1 + $0xd0] sm:$0xff]  ;;  %v2943_v55 = vpack.c.bf16 %v57_v44, %v53_v43  ;;  %v56_v56 = vld [vmem:[%s3512_s1 + $0x118] sm:$0xff]  ;;  %v2952_v58 = vpack.c.bf16 %v66_v51, %v62_v47  ;;  %v61_v59 = vld [vmem:[%s3512_s1 + $0x140] sm:$0xff] }
   0xe   :  { %2003 = vmatpush1.bf16.msra.mxu0 %v2856_v26  ;;  %v51_v54 = vld [vmem:[%s3512_s1 + $0xf0] sm:$0xff]  ;;  %v60_v57 = vld [vmem:[%s3512_s1 + $0x138] sm:$0xff]  ;;  %v65_v60 = vld [vmem:[%s3512_s1 + $0x160] sm:$0xff] }
   0xf   :  { %2005 = vmatprep.subr.bf16.mxu0 %v2869_v30  ;;  %2035 = vmatpush1.bf16.msra.mxu1 %v2922_v48  ;;  %v70_v61 = vld [vmem:[%s3512_s1 + $0x188] sm:$0xff]  ;;  %v2964_v62 = vpack.c.bf16 %v51_v54, %v47_v53  ;;  %v2970_v0 = vpack.c.bf16 %v60_v57, %v56_v56  ;;  %v55_v1 = vld [vmem:[%s3512_s1 + $0x110] sm:$0xff]  ;;  %v64_v5 = vld [vmem:[%s3512_s1 + $0x158] sm:$0xff]  ;;  %v2985_v7 = vpack.c.bf16 %v65_v60, %v61_v59 }
  0x10   :  { %v74_v63 = vld [vmem:[%s3512_s1 + $0x1a8] sm:$0xff]  ;;  %2037 = vmatprep.subr.bf16.mxu1 %v2934_v52  ;;  %v59_v2 = vld [vmem:[%s3512_s1 + $0x130] sm:$0xff]  ;;  %v68_v6 = vld [vmem:[%s3512_s1 + $0x178] sm:$0xff] }
  0x11   :  { %v2988_v10 = vpack.c.bf16 %v74_v63, %v70_v61  ;;  %v69_v11 = vld [vmem:[%s3512_s1 + $0x180] sm:$0xff]  ;;  %v78_v13 = vld [vmem:[%s3512_s1 + $0x1c8] sm:$0xff]  ;;  %v3000_v15 = vpack.c.bf16 %v59_v2, %v55_v1  ;;  %v3006_v18 = vpack.c.bf16 %v68_v6, %v64_v5  ;;  %v63_v19 = vld [vmem:[%s3512_s1 + $0x150] sm:$0xff] }
  0x12   :  { %2007 = vmatpush1.bf16.msra.mxu0 %v2905_v42  ;;  %v73_v12 = vld [vmem:[%s3512_s1 + $0x1a0] sm:$0xff]  ;;  %v82_v16 = vld [vmem:[%s3512_s1 + $0x1e8] sm:$0xff]  ;;  %v67_v20 = vld [vmem:[%s3512_s1 + $0x170] sm:$0xff] }
  0x13   :  { %2009 = vmatprep.subr.bf16.mxu0 %v2916_v46  ;;  %2039 = vmatpush1.bf16.msra.mxu1 %v2964_v62  ;;  %v72_v21 = vld [vmem:[%s3512_s1 + $0x198] sm:$0xff]  ;;  %v3021_v24 = vpack.c.bf16 %v73_v12, %v69_v11  ;;  %v3024_v27 = vpack.c.bf16 %v82_v16, %v78_v13  ;;  %v77_v28 = vld [vmem:[%s3512_s1 + $0x1c0] sm:$0xff]  ;;  %v3033_v31 = vpack.c.bf16 %v67_v20, %v63_v19  ;;  %v71_v34 = vld [vmem:[%s3512_s1 + $0x190] sm:$0xff] }
  0x14   :  { %2041 = vmatprep.subr.bf16.mxu1 %v2970_v0  ;;  %v76_v23 = vld [vmem:[%s3512_s1 + $0x1b8] sm:$0xff]  ;;  %v81_v29 = vld [vmem:[%s3512_s1 + $0x1e0] sm:$0xff]  ;;  %v75_v35 = vld [vmem:[%s3512_s1 + $0x1b0] sm:$0xff] }
  0x15   :  { %v3036_v32 = vpack.c.bf16 %v76_v23, %v72_v21  ;;  %v80_v36 = vld [vmem:[%s3512_s1 + $0x1d8] sm:$0xff]  ;;  %v3051_v39 = vpack.c.bf16 %v81_v29, %v77_v28  ;;  %v3055_v40 = vpack.c.bf16 %v75_v35, %v71_v34  ;;  %v79_v43 = vld [vmem:[%s3512_s1 + $0x1d0] sm:$0xff]  ;;  %v89_v49 = vld [vmem:[%s3513_s0] sm:$0xff] }
  0x16   :  { %2011 = vmatpush1.bf16.msra.mxu0 %v2943_v55  ;;  %v84_v38 = vld [vmem:[%s3512_s1 + $0x1f8] sm:$0xff]  ;;  %v83_v44 = vld [vmem:[%s3512_s1 + $0x1f0] sm:$0xff]  ;;  %v93_v50 = vunpack.c.l.bf16 %v89_v49  ;;  %v94_v51 = vunpack.c.h.bf16 %v89_v49  ;;  %v90_v56 = vld [vmem:[%s3513_s0 + $0x8] sm:$0xff] }
  0x17   :  { %2013 = vmatprep.subr.bf16.mxu0 %v2952_v58  ;;  %2043 = vmatpush1.bf16.msra.mxu1 %v3000_v15  ;;  %v3058_v41 = vpack.c.bf16 %v84_v38, %v80_v36  ;;  %v3068_v47 = vpack.c.bf16 %v83_v44, %v79_v43  ;;  %v91_v53 = vld [vmem:[%s3513_s0 + $0x10] sm:$0xff]  ;;  %v96_v2 = vunpack.c.h.bf16 %v90_v56  ;;  %v92_v11 = vld [vmem:[%s3513_s0 + $0x18] sm:$0xff]  ;;  %v95_v34 = vunpack.c.l.bf16 %v90_v56 }
  0x18   :  { %2045 = vmatprep.subr.bf16.mxu1 %v3006_v18  ;;  %v97_v60 = vunpack.c.l.bf16 %v91_v53  ;;  %v98_v63 = vunpack.c.h.bf16 %v91_v53  ;;  %v100_v28 = vunpack.c.h.bf16 %v92_v11  ;;  %v99_v49 = vunpack.c.l.bf16 %v92_v11 }
  0x1a   :  { %2015 = vmatpush1.bf16.msra.mxu0 %v2985_v7 }
  0x1b   :  { %2017 = vmatprep.subr.bf16.mxu0 %v2988_v10  ;;  %2047 = vmatpush1.bf16.msra.mxu1 %v3033_v31 }
  0x1c   :  { %2049 = vmatprep.subr.bf16.mxu1 %v3036_v32 }
  0x1e   :  { %2019 = vmatpush1.bf16.msra.mxu0 %v3021_v24 }
  0x1f   :  { %2021 = vmatprep.subr.bf16.mxu0 %v3024_v27  ;;  %2051 = vmatpush1.bf16.msra.mxu1 %v3055_v40 }
  0x20   :  { %2053 = vmatprep.subr.bf16.mxu1 %v3058_v41 }
  0x22   :  { %2023 = vmatpush1.bf16.msra.mxu0 %v3051_v39 }
  0x23   :  { %2057 = vmatprep.subr.bf16.mxu0 %v2793_v4  ;;  %2055 = vmatpush1.bf16.msra.mxu1 %v3068_v47 }
  0x24   :  { %2089 = vmatprep.subr.bf16.mxu1 %v2845_v22 }
  0x25   :  { %166 = vmatmul.mubr.f32.vlgmr.msra.gmra.mrb[0].mxu0 %v2761_v3 }
  0x26   :  { %171 = vmatprep.mubr.f32.mxu0 %v2761_v3  ;;  %2059 = vmatpush1.bf16.msra.mxu0 %v2804_v8 }
  0x27   :  { %2061 = vmatprep.subr.bf16.mxu0 %v2806_v9  ;;  %243 = vmatmul.mubr.f32.vlgmr.msra.gmra.mrb[0].mxu1 %v2761_v3 }
  0x28   :  { %248 = vmatprep.mubr.f32.mxu1 %v2761_v3  ;;  %2091 = vmatpush1.bf16.msra.mxu1 %v2853_v25 }
  0x29   :  { %172 = vmatmul.mubr.f32.gmra.mrb[2].mxu0 %v2761_v3  ;;  %2093 = vmatprep.subr.bf16.mxu1 %v2878_v33 }
  0x2a   :  { %2063 = vmatpush1.bf16.msra.mxu0 %v2822_v14  ;;  %390 = vmatprep.mubr.f32.mxu0 %v2761_v3 }
  0x2b   :  { %2065 = vmatprep.subr.bf16.mxu0 %v2831_v17  ;;  %249 = vmatmul.mubr.f32.gmra.mrb[2].mxu1 %v2761_v3 }
  0x2c   :  { %2095 = vmatpush1.bf16.msra.mxu1 %v2889_v37  ;;  %467 = vmatprep.mubr.f32.mxu1 %v2761_v3 }
  0x2d   :  { %2097 = vmatprep.subr.bf16.mxu1 %v2913_v45 }
  0x2e   :  { %2067 = vmatpush1.bf16.msra.mxu0 %v2856_v26 }
  0x2f   :  { %2069 = vmatprep.subr.bf16.mxu0 %v2869_v30 }
  0x30   :  { %2099 = vmatpush1.bf16.msra.mxu1 %v2922_v48 }
  0x31   :  { %2101 = vmatprep.subr.bf16.mxu1 %v2934_v52 }
  0x32   :  { %2071 = vmatpush1.bf16.msra.mxu0 %v2905_v42 }
  0x33   :  { %2073 = vmatprep.subr.bf16.mxu0 %v2916_v46 }
  0x34   :  { %2103 = vmatpush1.bf16.msra.mxu1 %v2964_v62 }
  0x35   :  { %2105 = vmatprep.subr.bf16.mxu1 %v2970_v0 }
  0x36   :  { %2075 = vmatpush1.bf16.msra.mxu0 %v2943_v55 }
  0x37   :  { %2077 = vmatprep.subr.bf16.mxu0 %v2952_v58 }
  0x38   :  { %2107 = vmatpush1.bf16.msra.mxu1 %v3000_v15 }
  0x39   :  { %2109 = vmatprep.subr.bf16.mxu1 %v3006_v18 }
  0x3a   :  { %2079 = vmatpush1.bf16.msra.mxu0 %v2985_v7 }
  0x3b   :  { %2081 = vmatprep.subr.bf16.mxu0 %v2988_v10 }
  0x3c   :  { %2111 = vmatpush1.bf16.msra.mxu1 %v3033_v31 }
  0x3d   :  { %2113 = vmatprep.subr.bf16.mxu1 %v3036_v32 }
  0x3e   :  { %2083 = vmatpush1.bf16.msra.mxu0 %v3021_v24 }
  0x3f   :  { %2085 = vmatprep.subr.bf16.mxu0 %v3024_v27 }
  0x40   :  { %2115 = vmatpush1.bf16.msra.mxu1 %v3055_v40 }
  0x41   :  { %2117 = vmatprep.subr.bf16.mxu1 %v3058_v41 }
  0x42   :  { %2087 = vmatpush1.bf16.msra.mxu0 %v3051_v39 }
  0x43   :  { %2121 = vmatprep.subr.bf16.mxu0 %v2793_v4 }
  0x44   :  { %2119 = vmatpush1.bf16.msra.mxu1 %v3068_v47 }
  0x45   :  { %2153 = vmatprep.subr.bf16.mxu1 %v2845_v22 }
  0xf8   :  { %v167_v54 = vpop.f32.mrb[0].mxu0 }
  0xf9   :  { %v255_v57 = vadd.f32 %v167_v54, %v93_v50  ;;  %v169_v59 = vpop.f32.mrb[1].mxu0 }
  0xfa   :  { %v256_v61 = vadd.f32 %v169_v59, %v94_v51  ;;  %v244_v16 = vpop.f32.mrb[0].mxu1 }
  0xfb   :  { %v1909_v1 = vmul.f32 -1.442695, %v255_v57  ;;  %v246_v20 = vpop.f32.mrb[1].mxu1  ;;  %v257_v44 = vadd.f32 %v244_v16, %v95_v34 }
  0xfc   :  { %v1911_v5 = vmul.f32 -1.442695, %v256_v61  ;;  %v173_v6 = vpop.f32.mrb[2].mxu0  ;;  %v258_v23 = vadd.f32 %v246_v20, %v96_v2 }
  0xfd   :  { %2505 = vpow2.f32 %v1909_v1  ;;  %v259_v12 = vadd.f32 %v173_v6, %v97_v60  ;;  %v175_v13 = vpop.f32.mrb[3].mxu0 }
  0xfe   :  { %2507 = vpow2.f32 %v1911_v5  ;;  %v260_v19 = vadd.f32 %v175_v13, %v98_v63  ;;  %v250_v35 = vpop.f32.mrb[2].mxu1  ;;  %v1913_v38 = vmul.f32 -1.442695, %v258_v23 }
  0xff   :  { %v1910_v21 = vmul.f32 -1.442695, %v259_v12  ;;  %v252_v36 = vpop.f32.mrb[3].mxu1  ;;  %v261_v57 = vadd.f32 %v250_v35, %v99_v49 }
 0x100   :  { %v1912_v29 = vmul.f32 -1.442695, %v260_v19  ;;  %v262_v43 = vadd.f32 %v252_v36, %v100_v28 }
 0x101   :  { %2509 = vpow2.f32 %v1910_v21 }
 0x102   :  { %2511 = vpow2.f32 %v1912_v29  ;;  %v1914_v50 = vmul.f32 -1.442695, %v262_v43 }
 0x103   :  { %2513 = vpow2.f32 %v1913_v38 }
 0x104   :  { %2515 = vtanh.f32 %v257_v44 }
 0x105   :  { %2517 = vpow2.f32 %v1914_v50 }
 0x107   :  { %v2506_v51 = vpop.eup %2505 }
 0x108   :  { %v2508_v53 = vpop.eup %2507  ;;  %v269_v54 = vadd.f32 1.0, %v2506_v51 }
 0x109   :  { %v281_v59 = vadd.f32 1.0, %v2508_v53  ;;  %v1915_v53 = vld [vmem:[%s3513_s0 + $0x20] sm:$0xff] }
 0x10a   :  { %2519 = vrcp.f32 %v269_v54  ;;  %v318_v54 = vunpack.c.l.bf16 %v1915_v53 }
 0x10b   :  { %v2510_v60 = vpop.eup %2509  ;;  %2521 = vrcp.f32 %v281_v59  ;;  %v1917_v59 = vld [vmem:[%s3513_s0 + $0x30] sm:$0xff] }
 0x10c   :  { %v2512_v56 = vpop.eup %2511  ;;  %v270_v61 = vadd.f32 1.0, %v2510_v60  ;;  %2523 = vtanh.f32 %v261_v57  ;;  %v319_v57 = vunpack.c.h.bf16 %v1915_v53 }
 0x10d   :  { %v282_v63 = vadd.f32 1.0, %v2512_v56  ;;  %v2514_v1 = vpop.eup %2513 }
 0x10e   :  { %2525 = vrcp.f32 %v270_v61  ;;  %v2516_v2 = vpop.eup %2515  ;;  %v295_v11 = vadd.f32 1.0, %v2514_v1 }
 0x10f   :  { %2527 = vrcp.f32 %v282_v63  ;;  %v2518_v5 = vpop.eup %2517  ;;  %v1916_v63 = vld [vmem:[%s3513_s0 + $0x28] sm:$0xff] }
 0x110   :  { %2529 = vrcp.f32 %v295_v11  ;;  %v296_v23 = vadd.f32 1.0, %v2518_v5  ;;  %v322_v5 = vunpack.c.l.bf16 %v1917_v59  ;;  %v323_v11 = vunpack.c.h.bf16 %v1917_v59 }
 0x114   :  { %v2520_v6 = vpop.eup %2519 }
 0x115   :  { %v2522_v12 = vpop.eup %2521  ;;  %v303_v13 = vmul.f32 %v2520_v6, %v2516_v2 }
 0x116   :  { %v2524_v16 = vpop.eup %2523  ;;  %v301_v19 = vmul.f32 0.0, %v2522_v12 }
 0x118   :  { %v2526_v20 = vpop.eup %2525  ;;  %v3126_v21 = vadd.f32 %v303_v13, %v301_v19 }
 0x119   :  { %v2528_v28 = vpop.eup %2527  ;;  %v304_v29 = vmul.f32 %v2526_v20, %v2524_v16  ;;  %v321_v16 = vunpack.c.h.bf16 %v1916_v63 }
 0x11a   :  { %v302_v34 = vmul.f32 0.0, %v2528_v28  ;;  %2531 = vtanh.f32 %v3126_v21  ;;  %v2530_v36 = vpop.eup %2529  ;;  %v1918_v28 = vld [vmem:[%s3513_s0 + $0x38] sm:$0xff] }
 0x11b   :  { %2533 = vrcp.f32 %v296_v23 }
 0x11c   :  { %v3129_v35 = vadd.f32 %v304_v29, %v302_v34 }
 0x11e   :  { %2535 = vtanh.f32 %v3129_v35 }
 0x124   :  { %v2532_v38 = vpop.eup %2531 }
 0x125   :  { %v309_v43 = vmul.f32 %v2532_v38, %v2530_v36  ;;  %v2534_v44 = vpop.eup %2533 }
 0x127   :  { %391 = vmatmul.mubr.f32.vlgmr.msra.gmra.mrb[4].mxu0 %v309_v43  ;;  %468 = vmatmul.mubr.f32.vlgmr.msra.gmra.mrb[4].mxu1 %v309_v43 }
 0x128   :  { %v2536_v49 = vpop.eup %2535  ;;  %396 = vmatprep.mubr.f32.mxu0 %v2761_v3  ;;  %473 = vmatprep.mubr.f32.mxu1 %v2761_v3 }
 0x129   :  { %v310_v50 = vmul.f32 %v2536_v49, %v2534_v44  ;;  %2123 = vmatpush1.bf16.msra.mxu0 %v2804_v8  ;;  %2155 = vmatpush1.bf16.msra.mxu1 %v2853_v25  ;;  %v325_v49 = vunpack.c.h.bf16 %v1918_v28 }
 0x12a   :  { %2125 = vmatprep.subr.bf16.mxu0 %v2806_v9  ;;  %2157 = vmatprep.subr.bf16.mxu1 %v2878_v33 }
 0x12b   :  { %v311_v51 = vpack.c.bf16 %v310_v50, %v309_v43  ;;  %397 = vmatmul.mubr.f32.gmra.mrb[6].mxu0 %v310_v50  ;;  %474 = vmatmul.mubr.f32.gmra.mrb[6].mxu1 %v310_v50  ;;  %v320_v50 = vunpack.c.l.bf16 %v1916_v63 }
 0x12c   :  { %616 = vmatprep.mubr.f32.mxu0 %v2761_v3  ;;  %693 = vmatprep.mubr.f32.mxu1 %v2761_v3 }
 0x12d   :  { %312 = vst [vmem:[%s3514_s2] sm:$0xff] %v311_v51  ;;  %2127 = vmatpush1.bf16.msra.mxu0 %v2822_v14  ;;  %2159 = vmatpush1.bf16.msra.mxu1 %v2889_v37 }
 0x12e   :  { %2129 = vmatprep.subr.bf16.mxu0 %v2831_v17  ;;  %2161 = vmatprep.subr.bf16.mxu1 %v2913_v45 }
 0x131   :  { %2131 = vmatpush1.bf16.msra.mxu0 %v2856_v26  ;;  %2163 = vmatpush1.bf16.msra.mxu1 %v2922_v48 }
 0x132   :  { %2133 = vmatprep.subr.bf16.mxu0 %v2869_v30  ;;  %2165 = vmatprep.subr.bf16.mxu1 %v2934_v52 }
 0x135   :  { %2135 = vmatpush1.bf16.msra.mxu0 %v2905_v42  ;;  %2167 = vmatpush1.bf16.msra.mxu1 %v2964_v62 }
 0x136   :  { %2137 = vmatprep.subr.bf16.mxu0 %v2916_v46  ;;  %2169 = vmatprep.subr.bf16.mxu1 %v2970_v0 }
 0x139   :  { %2139 = vmatpush1.bf16.msra.mxu0 %v2943_v55  ;;  %2171 = vmatpush1.bf16.msra.mxu1 %v3000_v15 }
 0x13a   :  { %2141 = vmatprep.subr.bf16.mxu0 %v2952_v58  ;;  %2173 = vmatprep.subr.bf16.mxu1 %v3006_v18 }
 0x13d   :  { %2143 = vmatpush1.bf16.msra.mxu0 %v2985_v7  ;;  %2175 = vmatpush1.bf16.msra.mxu1 %v3033_v31 }
 0x13e   :  { %2145 = vmatprep.subr.bf16.mxu0 %v2988_v10  ;;  %2177 = vmatprep.subr.bf16.mxu1 %v3036_v32 }
 0x141   :  { %2147 = vmatpush1.bf16.msra.mxu0 %v3021_v24  ;;  %2179 = vmatpush1.bf16.msra.mxu1 %v3055_v40 }
 0x142   :  { %2149 = vmatprep.subr.bf16.mxu0 %v3024_v27  ;;  %2181 = vmatprep.subr.bf16.mxu1 %v3058_v41 }
 0x145   :  { %2151 = vmatpush1.bf16.msra.mxu0 %v3051_v39  ;;  %2183 = vmatpush1.bf16.msra.mxu1 %v3068_v47 }
 0x146   :  { %2185 = vmatprep.subr.bf16.mxu0 %v2793_v4  ;;  %2217 = vmatprep.subr.bf16.mxu1 %v2845_v22 }
 0x1fa   :  { %v392_v60 = vpop.f32.mrb[4].mxu0  ;;  %v469_v56 = vpop.f32.mrb[4].mxu1 }
 0x1fb   :  { %v480_v61 = vadd.f32 %v392_v60, %v318_v54  ;;  %v394_v1 = vpop.f32.mrb[5].mxu0  ;;  %v471_v2 = vpop.f32.mrb[5].mxu1  ;;  %v482_v54 = vadd.f32 %v469_v56, %v320_v50 }
 0x1fc   :  { %v481_v6 = vadd.f32 %v394_v1, %v319_v57  ;;  %v483_v43 = vadd.f32 %v471_v2, %v321_v16  ;;  %v324_v57 = vunpack.c.l.bf16 %v1918_v28 }
 0x1fd   :  { %v1919_v12 = vmul.f32 -1.442695, %v480_v61 }
 0x1fe   :  { %v1921_v13 = vmul.f32 -1.442695, %v481_v6  ;;  %v398_v19 = vpop.f32.mrb[6].mxu0  ;;  %v475_v20 = vpop.f32.mrb[6].mxu1  ;;  %v1923_v51 = vmul.f32 -1.442695, %v483_v43 }
 0x1ff   :  { %2537 = vpow2.f32 %v1919_v12  ;;  %v484_v23 = vadd.f32 %v398_v19, %v322_v5  ;;  %v400_v29 = vpop.f32.mrb[7].mxu0  ;;  %v477_v34 = vpop.f32.mrb[7].mxu1  ;;  %v486_v6 = vadd.f32 %v475_v20, %v324_v57 }
 0x200   :  { %2539 = vpow2.f32 %v1921_v13  ;;  %v485_v36 = vadd.f32 %v400_v29, %v323_v11  ;;  %v487_v53 = vadd.f32 %v477_v34, %v325_v49 }
 0x201   :  { %v1920_v38 = vmul.f32 -1.442695, %v484_v23 }
 0x202   :  { %v1922_v44 = vmul.f32 -1.442695, %v485_v36  ;;  %v1924_v1 = vmul.f32 -1.442695, %v487_v53 }
 0x203   :  { %2541 = vpow2.f32 %v1920_v38 }
 0x204   :  { %2543 = vpow2.f32 %v1922_v44 }
 0x205   :  { %2545 = vpow2.f32 %v1923_v51 }
 0x206   :  { %2547 = vtanh.f32 %v482_v54 }
 0x209   :  { %v2538_v59 = vpop.eup %2537 }
 0x20a   :  { %v2540_v60 = vpop.eup %2539  ;;  %v494_v61 = vadd.f32 1.0, %v2538_v59 }
 0x20b   :  { %v506_v5 = vadd.f32 1.0, %v2540_v60 }
 0x20c   :  { %2549 = vrcp.f32 %v494_v61  ;;  %v1926_v61 = vld [vmem:[%s3513_s0 + $0x40] sm:$0xff] }
 0x20d   :  { %v2542_v11 = vpop.eup %2541  ;;  %2551 = vrcp.f32 %v506_v5  ;;  %v545_v5 = vunpack.c.h.bf16 %v1926_v61 }
 0x20e   :  { %v2544_v2 = vpop.eup %2543  ;;  %v495_v12 = vadd.f32 1.0, %v2542_v11  ;;  %2553 = vpow2.f32 %v1924_v1  ;;  %v544_v1 = vunpack.c.l.bf16 %v1926_v61 }
 0x20f   :  { %2555 = vtanh.f32 %v486_v6  ;;  %v507_v63 = vadd.f32 1.0, %v2544_v2  ;;  %v2546_v56 = vpop.eup %2545  ;;  %v1928_v6 = vld [vmem:[%s3513_s0 + $0x50] sm:$0xff] }
 0x210   :  { %2557 = vrcp.f32 %v495_v12  ;;  %v2548_v13 = vpop.eup %2547  ;;  %v520_v28 = vadd.f32 1.0, %v2546_v56 }
 0x211   :  { %2559 = vrcp.f32 %v507_v63  ;;  %v1927_v63 = vld [vmem:[%s3513_s0 + $0x48] sm:$0xff] }
 0x212   :  { %2561 = vrcp.f32 %v520_v28 }
 0x216   :  { %v2550_v16 = vpop.eup %2549 }
 0x217   :  { %v2552_v19 = vpop.eup %2551  ;;  %v528_v23 = vmul.f32 %v2550_v16, %v2548_v13  ;;  %v548_v16 = vunpack.c.l.bf16 %v1928_v6 }
 0x218   :  { %v2554_v29 = vpop.eup %2553  ;;  %v526_v34 = vmul.f32 %v2552_v19, %v3126_v21 }
 0x219   :  { %v2556_v20 = vpop.eup %2555  ;;  %v521_v49 = vadd.f32 1.0, %v2554_v29 }
 0x21a   :  { %v2558_v36 = vpop.eup %2557  ;;  %v3184_v38 = vadd.f32 %v528_v23, %v526_v34  ;;  %v549_v23 = vunpack.c.h.bf16 %v1928_v6  ;;  %v547_v34 = vunpack.c.h.bf16 %v1927_v63 }
 0x21b   :  { %v2560_v43 = vpop.eup %2559  ;;  %v529_v44 = vmul.f32 %v2558_v36, %v2556_v20 }
 0x21c   :  { %2563 = vtanh.f32 %v3184_v38  ;;  %v527_v50 = vmul.f32 %v2560_v43, %v3129_v35  ;;  %v2562_v53 = vpop.eup %2561 }
 0x21d   :  { %2565 = vrcp.f32 %v521_v49 }
 0x21e   :  { %v3188_v51 = vadd.f32 %v529_v44, %v527_v50  ;;  %v1929_v44 = vld [vmem:[%s3513_s0 + $0x58] sm:$0xff] }
 0x220   :  { %2567 = vtanh.f32 %v3188_v51 }
 0x226   :  { %v2564_v54 = vpop.eup %2563 }
 0x227   :  { %v534_v21 = vmul.f32 %v2564_v54, %v2562_v53  ;;  %v2566_v57 = vpop.eup %2565 }
 0x229   :  { %617 = vmatmul.mubr.f32.vlgmr.msra.gmra.mrb[8].mxu0 %v534_v21  ;;  %694 = vmatmul.mubr.f32.vlgmr.msra.gmra.mrb[8].mxu1 %v534_v21 }
 0x22a   :  { %v2568_v59 = vpop.eup %2567  ;;  %622 = vmatprep.mubr.f32.mxu0 %v2761_v3  ;;  %699 = vmatprep.mubr.f32.mxu1 %v2761_v3 }
 0x22b   :  { %v535_v60 = vmul.f32 %v2568_v59, %v2566_v57  ;;  %2187 = vmatpush1.bf16.msra.mxu0 %v2804_v8  ;;  %2219 = vmatpush1.bf16.msra.mxu1 %v2853_v25  ;;  %v551_v59 = vunpack.c.h.bf16 %v1929_v44 }
 0x22c   :  { %2189 = vmatprep.subr.bf16.mxu0 %v2806_v9  ;;  %2221 = vmatprep.subr.bf16.mxu1 %v2878_v33 }
 0x22d   :  { %v536_v35 = vpack.c.bf16 %v535_v60, %v534_v21  ;;  %623 = vmatmul.mubr.f32.gmra.mrb[10].mxu0 %v535_v60  ;;  %700 = vmatmul.mubr.f32.gmra.mrb[10].mxu1 %v535_v60  ;;  %v546_v60 = vunpack.c.l.bf16 %v1927_v63 }
 0x22e   :  { %842 = vmatprep.mubr.f32.mxu0 %v2761_v3  ;;  %919 = vmatprep.mubr.f32.mxu1 %v2761_v3 }
 0x22f   :  { %1925 = vst [vmem:[%s3514_s2 + $0x8] sm:$0xff] %v536_v35  ;;  %2191 = vmatpush1.bf16.msra.mxu0 %v2822_v14  ;;  %2223 = vmatpush1.bf16.msra.mxu1 %v2889_v37 }
 0x230   :  { %2193 = vmatprep.subr.bf16.mxu0 %v2831_v17  ;;  %2225 = vmatprep.subr.bf16.mxu1 %v2913_v45 }
 0x233   :  { %2195 = vmatpush1.bf16.msra.mxu0 %v2856_v26  ;;  %2227 = vmatpush1.bf16.msra.mxu1 %v2922_v48 }
 0x234   :  { %2197 = vmatprep.subr.bf16.mxu0 %v2869_v30  ;;  %2229 = vmatprep.subr.bf16.mxu1 %v2934_v52 }
 0x237   :  { %2199 = vmatpush1.bf16.msra.mxu0 %v2905_v42  ;;  %2231 = vmatpush1.bf16.msra.mxu1 %v2964_v62 }
 0x238   :  { %2201 = vmatprep.subr.bf16.mxu0 %v2916_v46  ;;  %2233 = vmatprep.subr.bf16.mxu1 %v2970_v0 }
 0x23b   :  { %2203 = vmatpush1.bf16.msra.mxu0 %v2943_v55  ;;  %2235 = vmatpush1.bf16.msra.mxu1 %v3000_v15 }
 0x23c   :  { %2205 = vmatprep.subr.bf16.mxu0 %v2952_v58  ;;  %2237 = vmatprep.subr.bf16.mxu1 %v3006_v18 }
 0x23f   :  { %2207 = vmatpush1.bf16.msra.mxu0 %v2985_v7  ;;  %2239 = vmatpush1.bf16.msra.mxu1 %v3033_v31 }
 0x240   :  { %2209 = vmatprep.subr.bf16.mxu0 %v2988_v10  ;;  %2241 = vmatprep.subr.bf16.mxu1 %v3036_v32 }
 0x243   :  { %2211 = vmatpush1.bf16.msra.mxu0 %v3021_v24  ;;  %2243 = vmatpush1.bf16.msra.mxu1 %v3055_v40 }
 0x244   :  { %2213 = vmatprep.subr.bf16.mxu0 %v3024_v27  ;;  %2245 = vmatprep.subr.bf16.mxu1 %v3058_v41 }
 0x247   :  { %2215 = vmatpush1.bf16.msra.mxu0 %v3051_v39  ;;  %2247 = vmatpush1.bf16.msra.mxu1 %v3068_v47 }
 0x248   :  { %2249 = vmatprep.subr.bf16.mxu0 %v2793_v4  ;;  %2281 = vmatprep.subr.bf16.mxu1 %v2845_v22 }
 0x2fc   :  { %v618_v11 = vpop.f32.mrb[8].mxu0  ;;  %v695_v2 = vpop.f32.mrb[8].mxu1 }
 0x2fd   :  { %v706_v12 = vadd.f32 %v618_v11, %v544_v1  ;;  %v620_v56 = vpop.f32.mrb[9].mxu0  ;;  %v697_v13 = vpop.f32.mrb[9].mxu1  ;;  %v708_v1 = vadd.f32 %v695_v2, %v546_v60 }
 0x2fe   :  { %v707_v19 = vadd.f32 %v620_v56, %v545_v5  ;;  %v709_v21 = vadd.f32 %v697_v13, %v547_v34  ;;  %v550_v5 = vunpack.c.l.bf16 %v1929_v44 }
 0x2ff   :  { %v1930_v28 = vmul.f32 -1.442695, %v706_v12 }
 0x300   :  { %v1932_v29 = vmul.f32 -1.442695, %v707_v19  ;;  %v624_v20 = vpop.f32.mrb[10].mxu0  ;;  %v701_v36 = vpop.f32.mrb[10].mxu1  ;;  %v1934_v35 = vmul.f32 -1.442695, %v709_v21 }
 0x301   :  { %2569 = vpow2.f32 %v1930_v28  ;;  %v710_v43 = vadd.f32 %v624_v20, %v548_v16  ;;  %v626_v49 = vpop.f32.mrb[11].mxu0  ;;  %v703_v50 = vpop.f32.mrb[11].mxu1  ;;  %v712_v19 = vadd.f32 %v701_v36, %v550_v5 }
 0x302   :  { %2571 = vpow2.f32 %v1932_v29  ;;  %v711_v53 = vadd.f32 %v626_v49, %v549_v23  ;;  %v713_v61 = vadd.f32 %v703_v50, %v551_v59 }
 0x303   :  { %v1931_v54 = vmul.f32 -1.442695, %v710_v43 }
 0x304   :  { %v1933_v57 = vmul.f32 -1.442695, %v711_v53  ;;  %v1935_v56 = vmul.f32 -1.442695, %v713_v61 }
 0x305   :  { %2573 = vpow2.f32 %v1931_v54 }
 0x306   :  { %2575 = vpow2.f32 %v1933_v57 }
 0x307   :  { %2577 = vpow2.f32 %v1934_v35 }
 0x308   :  { %2579 = vtanh.f32 %v708_v1 }
 0x30b   :  { %v2570_v6 = vpop.eup %2569 }
 0x30c   :  { %v2572_v11 = vpop.eup %2571  ;;  %v720_v12 = vadd.f32 1.0, %v2570_v6 }
 0x30d   :  { %v732_v16 = vadd.f32 1.0, %v2572_v11 }
 0x30e   :  { %2581 = vrcp.f32 %v720_v12  ;;  %v1937_v12 = vld [vmem:[%s3513_s0 + $0x60] sm:$0xff] }
 0x30f   :  { %v2574_v23 = vpop.eup %2573  ;;  %2583 = vrcp.f32 %v732_v16  ;;  %v771_v16 = vunpack.c.h.bf16 %v1937_v12 }
 0x310   :  { %v2576_v13 = vpop.eup %2575  ;;  %v721_v28 = vadd.f32 1.0, %v2574_v23  ;;  %2585 = vpow2.f32 %v1935_v56  ;;  %v770_v56 = vunpack.c.l.bf16 %v1937_v12 }
 0x311   :  { %2587 = vtanh.f32 %v712_v19  ;;  %v733_v63 = vadd.f32 1.0, %v2576_v13  ;;  %v2578_v2 = vpop.eup %2577  ;;  %v1939_v19 = vld [vmem:[%s3513_s0 + $0x70] sm:$0xff] }
 0x312   :  { %2589 = vrcp.f32 %v721_v28  ;;  %v2580_v29 = vpop.eup %2579  ;;  %v746_v44 = vadd.f32 1.0, %v2578_v2 }
 0x313   :  { %2591 = vrcp.f32 %v733_v63  ;;  %v1938_v63 = vld [vmem:[%s3513_s0 + $0x68] sm:$0xff] }
 0x314   :  { %2593 = vrcp.f32 %v746_v44 }
 0x318   :  { %v2582_v34 = vpop.eup %2581 }
 0x319   :  { %v2584_v20 = vpop.eup %2583  ;;  %v754_v43 = vmul.f32 %v2582_v34, %v2580_v29  ;;  %v774_v34 = vunpack.c.l.bf16 %v1939_v19 }
 0x31a   :  { %v2586_v49 = vpop.eup %2585  ;;  %v752_v50 = vmul.f32 %v2584_v20, %v3184_v38 }
 0x31b   :  { %v2588_v36 = vpop.eup %2587  ;;  %v747_v59 = vadd.f32 1.0, %v2586_v49 }
 0x31c   :  { %v2590_v53 = vpop.eup %2589  ;;  %v3243_v54 = vadd.f32 %v754_v43, %v752_v50  ;;  %v775_v43 = vunpack.c.h.bf16 %v1939_v19  ;;  %v773_v50 = vunpack.c.h.bf16 %v1938_v63 }
 0x31d   :  { %v2592_v21 = vpop.eup %2591  ;;  %v755_v57 = vmul.f32 %v2590_v53, %v2588_v36 }
 0x31e   :  { %2595 = vtanh.f32 %v3243_v54  ;;  %v753_v60 = vmul.f32 %v2592_v21, %v3188_v51  ;;  %v2594_v61 = vpop.eup %2593 }
 0x31f   :  { %2597 = vrcp.f32 %v747_v59 }
 0x320   :  { %v3247_v35 = vadd.f32 %v755_v57, %v753_v60  ;;  %v1940_v57 = vld [vmem:[%s3513_s0 + $0x78] sm:$0xff] }
 0x322   :  { %2599 = vtanh.f32 %v3247_v35 }
 0x328   :  { %v2596_v1 = vpop.eup %2595 }
 0x329   :  { %v760_v38 = vmul.f32 %v2596_v1, %v2594_v61  ;;  %v2598_v5 = vpop.eup %2597 }
 0x32b   :  { %843 = vmatmul.mubr.f32.vlgmr.msra.gmra.mrb[12].mxu0 %v760_v38  ;;  %920 = vmatmul.mubr.f32.vlgmr.msra.gmra.mrb[12].mxu1 %v760_v38 }
 0x32c   :  { %v2600_v6 = vpop.eup %2599  ;;  %848 = vmatprep.mubr.f32.mxu0 %v2761_v3  ;;  %925 = vmatprep.mubr.f32.mxu1 %v2761_v3 }
 0x32d   :  { %v761_v11 = vmul.f32 %v2600_v6, %v2598_v5  ;;  %2251 = vmatpush1.bf16.msra.mxu0 %v2804_v8  ;;  %2283 = vmatpush1.bf16.msra.mxu1 %v2853_v25  ;;  %v777_v6 = vunpack.c.h.bf16 %v1940_v57 }
 0x32e   :  { %2253 = vmatprep.subr.bf16.mxu0 %v2806_v9  ;;  %2285 = vmatprep.subr.bf16.mxu1 %v2878_v33 }
 0x32f   :  { %v762_v51 = vpack.c.bf16 %v761_v11, %v760_v38  ;;  %849 = vmatmul.mubr.f32.gmra.mrb[14].mxu0 %v761_v11  ;;  %926 = vmatmul.mubr.f32.gmra.mrb[14].mxu1 %v761_v11  ;;  %v772_v11 = vunpack.c.l.bf16 %v1938_v63 }
 0x330   :  { %1068 = vmatprep.mubr.f32.mxu0 %v2761_v3  ;;  %1145 = vmatprep.mubr.f32.mxu1 %v2761_v3 }
 0x331   :  { %1936 = vst [vmem:[%s3514_s2 + $0x10] sm:$0xff] %v762_v51  ;;  %2255 = vmatpush1.bf16.msra.mxu0 %v2822_v14  ;;  %2287 = vmatpush1.bf16.msra.mxu1 %v2889_v37 }
 0x332   :  { %2257 = vmatprep.subr.bf16.mxu0 %v2831_v17  ;;  %2289 = vmatprep.subr.bf16.mxu1 %v2913_v45 }
 0x335   :  { %2259 = vmatpush1.bf16.msra.mxu0 %v2856_v26  ;;  %2291 = vmatpush1.bf16.msra.mxu1 %v2922_v48 }
 0x336   :  { %2261 = vmatprep.subr.bf16.mxu0 %v2869_v30  ;;  %2293 = vmatprep.subr.bf16.mxu1 %v2934_v52 }
 0x339   :  { %2263 = vmatpush1.bf16.msra.mxu0 %v2905_v42  ;;  %2295 = vmatpush1.bf16.msra.mxu1 %v2964_v62 }
 0x33a   :  { %2265 = vmatprep.subr.bf16.mxu0 %v2916_v46  ;;  %2297 = vmatprep.subr.bf16.mxu1 %v2970_v0 }
 0x33d   :  { %2267 = vmatpush1.bf16.msra.mxu0 %v2943_v55  ;;  %2299 = vmatpush1.bf16.msra.mxu1 %v3000_v15 }
 0x33e   :  { %2269 = vmatprep.subr.bf16.mxu0 %v2952_v58  ;;  %2301 = vmatprep.subr.bf16.mxu1 %v3006_v18 }
 0x341   :  { %2271 = vmatpush1.bf16.msra.mxu0 %v2985_v7  ;;  %2303 = vmatpush1.bf16.msra.mxu1 %v3033_v31 }
 0x342   :  { %2273 = vmatprep.subr.bf16.mxu0 %v2988_v10  ;;  %2305 = vmatprep.subr.bf16.mxu1 %v3036_v32 }
 0x345   :  { %2275 = vmatpush1.bf16.msra.mxu0 %v3021_v24  ;;  %2307 = vmatpush1.bf16.msra.mxu1 %v3055_v40 }
 0x346   :  { %2277 = vmatprep.subr.bf16.mxu0 %v3024_v27  ;;  %2309 = vmatprep.subr.bf16.mxu1 %v3058_v41 }
 0x349   :  { %2279 = vmatpush1.bf16.msra.mxu0 %v3051_v39  ;;  %2311 = vmatpush1.bf16.msra.mxu1 %v3068_v47 }
 0x34a   :  { %2313 = vmatprep.subr.bf16.mxu0 %v2793_v4  ;;  %2345 = vmatprep.subr.bf16.mxu1 %v2845_v22 }
 0x3fe   :  { %v844_v23 = vpop.f32.mrb[12].mxu0  ;;  %v921_v13 = vpop.f32.mrb[12].mxu1 }
 0x3ff   :  { %v932_v28 = vadd.f32 %v844_v23, %v770_v56  ;;  %v846_v2 = vpop.f32.mrb[13].mxu0  ;;  %v923_v29 = vpop.f32.mrb[13].mxu1  ;;  %v934_v56 = vadd.f32 %v921_v13, %v772_v11 }
 0x400   :  { %v933_v20 = vadd.f32 %v846_v2, %v771_v16  ;;  %v935_v38 = vadd.f32 %v923_v29, %v773_v50  ;;  %v776_v16 = vunpack.c.l.bf16 %v1940_v57 }
 0x401   :  { %v1941_v44 = vmul.f32 -1.442695, %v932_v28 }
 0x402   :  { %v1943_v49 = vmul.f32 -1.442695, %v933_v20  ;;  %v850_v36 = vpop.f32.mrb[14].mxu0  ;;  %v927_v53 = vpop.f32.mrb[14].mxu1  ;;  %v1945_v51 = vmul.f32 -1.442695, %v935_v38 }
 0x403   :  { %2601 = vpow2.f32 %v1941_v44  ;;  %v936_v21 = vadd.f32 %v850_v36, %v774_v34  ;;  %v852_v59 = vpop.f32.mrb[15].mxu0  ;;  %v929_v60 = vpop.f32.mrb[15].mxu1  ;;  %v938_v20 = vadd.f32 %v927_v53, %v776_v16 }
 0x404   :  { %2603 = vpow2.f32 %v1943_v49  ;;  %v937_v61 = vadd.f32 %v852_v59, %v775_v43  ;;  %v939_v12 = vadd.f32 %v929_v60, %v777_v6 }
 0x405   :  { %v1942_v1 = vmul.f32 -1.442695, %v936_v21 }
 0x406   :  { %v1944_v5 = vmul.f32 -1.442695, %v937_v61  ;;  %v1946_v2 = vmul.f32 -1.442695, %v939_v12 }
 0x407   :  { %2605 = vpow2.f32 %v1942_v1 }
 0x408   :  { %2607 = vpow2.f32 %v1944_v5 }
 0x409   :  { %2609 = vpow2.f32 %v1945_v51 }
 0x40a   :  { %2611 = vtanh.f32 %v934_v56 }
 0x40d   :  { %v2602_v19 = vpop.eup %2601 }
 0x40e   :  { %v2604_v23 = vpop.eup %2603  ;;  %v946_v28 = vadd.f32 1.0, %v2602_v19 }
 0x40f   :  { %v958_v34 = vadd.f32 1.0, %v2604_v23 }
 0x410   :  { %2613 = vrcp.f32 %v946_v28  ;;  %v1948_v28 = vld [vmem:[%s3513_s0 + $0x80] sm:$0xff] }
 0x411   :  { %v2606_v43 = vpop.eup %2605  ;;  %2615 = vrcp.f32 %v958_v34  ;;  %v997_v34 = vunpack.c.h.bf16 %v1948_v28 }
 0x412   :  { %v2608_v29 = vpop.eup %2607  ;;  %v947_v44 = vadd.f32 1.0, %v2606_v43  ;;  %2617 = vpow2.f32 %v1946_v2  ;;  %v996_v2 = vunpack.c.l.bf16 %v1948_v28 }
 0x413   :  { %2619 = vtanh.f32 %v938_v20  ;;  %v959_v63 = vadd.f32 1.0, %v2608_v29  ;;  %v2610_v13 = vpop.eup %2609  ;;  %v1950_v20 = vld [vmem:[%s3513_s0 + $0x90] sm:$0xff] }
 0x414   :  { %2621 = vrcp.f32 %v947_v44  ;;  %v2612_v49 = vpop.eup %2611  ;;  %v972_v57 = vadd.f32 1.0, %v2610_v13 }
 0x415   :  { %2623 = vrcp.f32 %v959_v63  ;;  %v1949_v63 = vld [vmem:[%s3513_s0 + $0x88] sm:$0xff] }
 0x416   :  { %2625 = vrcp.f32 %v972_v57 }
 0x41a   :  { %v2614_v50 = vpop.eup %2613 }
 0x41b   :  { %v2616_v36 = vpop.eup %2615  ;;  %v980_v21 = vmul.f32 %v2614_v50, %v2612_v49  ;;  %v1000_v50 = vunpack.c.l.bf16 %v1950_v20 }
 0x41c   :  { %v2618_v59 = vpop.eup %2617  ;;  %v978_v60 = vmul.f32 %v2616_v36, %v3243_v54 }
 0x41d   :  { %v2620_v53 = vpop.eup %2619  ;;  %v973_v6 = vadd.f32 1.0, %v2618_v59 }
 0x41e   :  { %v2622_v61 = vpop.eup %2621  ;;  %v3302_v1 = vadd.f32 %v980_v21, %v978_v60  ;;  %v1001_v21 = vunpack.c.h.bf16 %v1950_v20  ;;  %v999_v60 = vunpack.c.h.bf16 %v1949_v63 }
 0x41f   :  { %v2624_v38 = vpop.eup %2623  ;;  %v981_v5 = vmul.f32 %v2622_v61, %v2620_v53 }
 0x420   :  { %2627 = vtanh.f32 %v3302_v1  ;;  %v979_v11 = vmul.f32 %v2624_v38, %v3247_v35  ;;  %v2626_v12 = vpop.eup %2625 }
 0x421   :  { %2629 = vrcp.f32 %v973_v6 }
 0x422   :  { %v3306_v51 = vadd.f32 %v981_v5, %v979_v11  ;;  %v1951_v5 = vld [vmem:[%s3513_s0 + $0x98] sm:$0xff] }
 0x424   :  { %2631 = vtanh.f32 %v3306_v51 }
 0x42a   :  { %v2628_v56 = vpop.eup %2627 }
 0x42b   :  { %v986_v54 = vmul.f32 %v2628_v56, %v2626_v12  ;;  %v2630_v16 = vpop.eup %2629 }
 0x42d   :  { %1069 = vmatmul.mubr.f32.vlgmr.msra.gmra.mrb[16].mxu0 %v986_v54  ;;  %1146 = vmatmul.mubr.f32.vlgmr.msra.gmra.mrb[16].mxu1 %v986_v54 }
 0x42e   :  { %v2632_v19 = vpop.eup %2631  ;;  %1074 = vmatprep.mubr.f32.mxu0 %v2761_v3  ;;  %1151 = vmatprep.mubr.f32.mxu1 %v2761_v3 }
 0x42f   :  { %v987_v23 = vmul.f32 %v2632_v19, %v2630_v16  ;;  %2315 = vmatpush1.bf16.msra.mxu0 %v2804_v8  ;;  %2347 = vmatpush1.bf16.msra.mxu1 %v2853_v25  ;;  %v1003_v19 = vunpack.c.h.bf16 %v1951_v5 }
 0x430   :  { %2317 = vmatprep.subr.bf16.mxu0 %v2806_v9  ;;  %2349 = vmatprep.subr.bf16.mxu1 %v2878_v33 }
 0x431   :  { %v988_v35 = vpack.c.bf16 %v987_v23, %v986_v54  ;;  %1075 = vmatmul.mubr.f32.gmra.mrb[18].mxu0 %v987_v23  ;;  %1152 = vmatmul.mubr.f32.gmra.mrb[18].mxu1 %v987_v23  ;;  %v998_v23 = vunpack.c.l.bf16 %v1949_v63 }
 0x432   :  { %1294 = vmatprep.mubr.f32.mxu0 %v2761_v3  ;;  %1371 = vmatprep.mubr.f32.mxu1 %v2761_v3 }
 0x433   :  { %1947 = vst [vmem:[%s3514_s2 + $0x18] sm:$0xff] %v988_v35  ;;  %2319 = vmatpush1.bf16.msra.mxu0 %v2822_v14  ;;  %2351 = vmatpush1.bf16.msra.mxu1 %v2889_v37 }
 0x434   :  { %2321 = vmatprep.subr.bf16.mxu0 %v2831_v17  ;;  %2353 = vmatprep.subr.bf16.mxu1 %v2913_v45 }
 0x437   :  { %2323 = vmatpush1.bf16.msra.mxu0 %v2856_v26  ;;  %2355 = vmatpush1.bf16.msra.mxu1 %v2922_v48 }
 0x438   :  { %2325 = vmatprep.subr.bf16.mxu0 %v2869_v30  ;;  %2357 = vmatprep.subr.bf16.mxu1 %v2934_v52 }
 0x43b   :  { %2327 = vmatpush1.bf16.msra.mxu0 %v2905_v42  ;;  %2359 = vmatpush1.bf16.msra.mxu1 %v2964_v62 }
 0x43c   :  { %2329 = vmatprep.subr.bf16.mxu0 %v2916_v46  ;;  %2361 = vmatprep.subr.bf16.mxu1 %v2970_v0 }
 0x43f   :  { %2331 = vmatpush1.bf16.msra.mxu0 %v2943_v55  ;;  %2363 = vmatpush1.bf16.msra.mxu1 %v3000_v15 }
 0x440   :  { %2333 = vmatprep.subr.bf16.mxu0 %v2952_v58  ;;  %2365 = vmatprep.subr.bf16.mxu1 %v3006_v18 }
 0x443   :  { %2335 = vmatpush1.bf16.msra.mxu0 %v2985_v7  ;;  %2367 = vmatpush1.bf16.msra.mxu1 %v3033_v31 }
 0x444   :  { %2337 = vmatprep.subr.bf16.mxu0 %v2988_v10  ;;  %2369 = vmatprep.subr.bf16.mxu1 %v3036_v32 }
 0x447   :  { %2339 = vmatpush1.bf16.msra.mxu0 %v3021_v24  ;;  %2371 = vmatpush1.bf16.msra.mxu1 %v3055_v40 }
 0x448   :  { %2341 = vmatprep.subr.bf16.mxu0 %v3024_v27  ;;  %2373 = vmatprep.subr.bf16.mxu1 %v3058_v41 }
 0x44b   :  { %2343 = vmatpush1.bf16.msra.mxu0 %v3051_v39  ;;  %2375 = vmatpush1.bf16.msra.mxu1 %v3068_v47 }
 0x44c   :  { %2377 = vmatprep.subr.bf16.mxu0 %v2793_v4  ;;  %2409 = vmatprep.subr.bf16.mxu1 %v2845_v22 }
 0x500   :  { %v1070_v43 = vpop.f32.mrb[16].mxu0  ;;  %v1147_v29 = vpop.f32.mrb[16].mxu1 }
 0x501   :  { %v1158_v44 = vadd.f32 %v1070_v43, %v996_v2  ;;  %v1072_v13 = vpop.f32.mrb[17].mxu0  ;;  %v1149_v49 = vpop.f32.mrb[17].mxu1  ;;  %v1160_v2 = vadd.f32 %v1147_v29, %v998_v23 }
 0x502   :  { %v1159_v36 = vadd.f32 %v1072_v13, %v997_v34  ;;  %v1161_v54 = vadd.f32 %v1149_v49, %v999_v60  ;;  %v1002_v34 = vunpack.c.l.bf16 %v1951_v5 }
 0x503   :  { %v1952_v57 = vmul.f32 -1.442695, %v1158_v44 }
 0x504   :  { %v1954_v59 = vmul.f32 -1.442695, %v1159_v36  ;;  %v1076_v53 = vpop.f32.mrb[18].mxu0  ;;  %v1153_v61 = vpop.f32.mrb[18].mxu1  ;;  %v1956_v35 = vmul.f32 -1.442695, %v1161_v54 }
 0x505   :  { %2633 = vpow2.f32 %v1952_v57  ;;  %v1162_v38 = vadd.f32 %v1076_v53, %v1000_v50  ;;  %v1078_v6 = vpop.f32.mrb[19].mxu0  ;;  %v1155_v11 = vpop.f32.mrb[19].mxu1  ;;  %v1164_v36 = vadd.f32 %v1153_v61, %v1002_v34 }
 0x506   :  { %2635 = vpow2.f32 %v1954_v59  ;;  %v1163_v12 = vadd.f32 %v1078_v6, %v1001_v21  ;;  %v1165_v28 = vadd.f32 %v1155_v11, %v1003_v19 }
 0x507   :  { %v1953_v56 = vmul.f32 -1.442695, %v1162_v38 }
 0x508   :  { %v1955_v16 = vmul.f32 -1.442695, %v1163_v12  ;;  %v1957_v13 = vmul.f32 -1.442695, %v1165_v28 }
 0x509   :  { %2637 = vpow2.f32 %v1953_v56 }
 0x50a   :  { %2639 = vpow2.f32 %v1955_v16 }
 0x50b   :  { %2641 = vpow2.f32 %v1956_v35 }
 0x50c   :  { %2643 = vtanh.f32 %v1160_v2 }
 0x50f   :  { %v2634_v20 = vpop.eup %2633 }
 0x510   :  { %v2636_v43 = vpop.eup %2635  ;;  %v1172_v44 = vadd.f32 1.0, %v2634_v20 }
 0x511   :  { %v1184_v50 = vadd.f32 1.0, %v2636_v43 }
 0x512   :  { %2645 = vrcp.f32 %v1172_v44  ;;  %v1959_v44 = vld [vmem:[%s3513_s0 + $0xa0] sm:$0xff] }
 0x513   :  { %v2638_v21 = vpop.eup %2637  ;;  %2647 = vrcp.f32 %v1184_v50  ;;  %v1223_v50 = vunpack.c.h.bf16 %v1959_v44 }
 0x514   :  { %v2640_v49 = vpop.eup %2639  ;;  %v1173_v57 = vadd.f32 1.0, %v2638_v21  ;;  %2649 = vpow2.f32 %v1957_v13  ;;  %v1222_v13 = vunpack.c.l.bf16 %v1959_v44 }
 0x515   :  { %2651 = vtanh.f32 %v1164_v36  ;;  %v1185_v63 = vadd.f32 1.0, %v2640_v49  ;;  %v2642_v29 = vpop.eup %2641  ;;  %v1961_v36 = vld [vmem:[%s3513_s0 + $0xb0] sm:$0xff] }
 0x516   :  { %2653 = vrcp.f32 %v1173_v57  ;;  %v2644_v59 = vpop.eup %2643  ;;  %v1198_v5 = vadd.f32 1.0, %v2642_v29 }
 0x517   :  { %2655 = vrcp.f32 %v1185_v63  ;;  %v1960_v63 = vld [vmem:[%s3513_s0 + $0xa8] sm:$0xff] }
 0x518   :  { %2657 = vrcp.f32 %v1198_v5  ;;  %v1225_v5 = vunpack.c.h.bf16 %v1960_v63 }
 0x51c   :  { %v2646_v60 = vpop.eup %2645 }
 0x51d   :  { %v2648_v53 = vpop.eup %2647  ;;  %v1206_v38 = vmul.f32 %v2646_v60, %v2644_v59  ;;  %v1227_v60 = vunpack.c.h.bf16 %v1961_v36 }
 0x51e   :  { %v2650_v6 = vpop.eup %2649  ;;  %v1204_v11 = vmul.f32 %v2648_v53, %v3302_v1 }
 0x51f   :  { %v2652_v61 = vpop.eup %2651  ;;  %v1199_v19 = vadd.f32 1.0, %v2650_v6 }
 0x520   :  { %v2654_v12 = vpop.eup %2653  ;;  %v3361_v56 = vadd.f32 %v1206_v38, %v1204_v11 }
 0x521   :  { %v2656_v54 = vpop.eup %2655  ;;  %v1207_v16 = vmul.f32 %v2654_v12, %v2652_v61  ;;  %v1962_v12 = vld [vmem:[%s3513_s0 + $0xb8] sm:$0xff] }
 0x522   :  { %2659 = vtanh.f32 %v3361_v56  ;;  %v1205_v23 = vmul.f32 %v2656_v54, %v3306_v51  ;;  %v2658_v28 = vpop.eup %2657  ;;  %v1228_v44 = vunpack.c.l.bf16 %v1962_v12 }
 0x523   :  { %2661 = vrcp.f32 %v1199_v19 }
 0x524   :  { %v3365_v35 = vadd.f32 %v1207_v16, %v1205_v23 }
 0x526   :  { %2663 = vtanh.f32 %v3365_v35 }
 0x52c   :  { %v2660_v2 = vpop.eup %2659 }
 0x52d   :  { %v1212_v1 = vmul.f32 %v2660_v2, %v2658_v28  ;;  %v2662_v34 = vpop.eup %2661 }
 0x52f   :  { %1295 = vmatmul.mubr.f32.vlgmr.msra.gmra.mrb[20].mxu0 %v1212_v1  ;;  %1372 = vmatmul.mubr.f32.vlgmr.msra.gmra.mrb[20].mxu1 %v1212_v1 }
 0x530   :  { %v2664_v20 = vpop.eup %2663  ;;  %1300 = vmatprep.mubr.f32.mxu0 %v2761_v3  ;;  %1377 = vmatprep.mubr.f32.mxu1 %v2761_v3 }
 0x531   :  { %v1213_v43 = vmul.f32 %v2664_v20, %v2662_v34  ;;  %2379 = vmatpush1.bf16.msra.mxu0 %v2804_v8  ;;  %2411 = vmatpush1.bf16.msra.mxu1 %v2853_v25  ;;  %v1224_v34 = vunpack.c.l.bf16 %v1960_v63 }
 0x532   :  { %2381 = vmatprep.subr.bf16.mxu0 %v2806_v9  ;;  %2413 = vmatprep.subr.bf16.mxu1 %v2878_v33 }
 0x533   :  { %v1214_v51 = vpack.c.bf16 %v1213_v43, %v1212_v1  ;;  %1301 = vmatmul.mubr.f32.gmra.mrb[22].mxu0 %v1213_v43  ;;  %1378 = vmatmul.mubr.f32.gmra.mrb[22].mxu1 %v1213_v43  ;;  %v1229_v1 = vunpack.c.h.bf16 %v1962_v12 }
 0x534   :  { %1520 = vmatprep.mubr.f32.mxu0 %v2761_v3  ;;  %1597 = vmatprep.mubr.f32.mxu1 %v2761_v3 }
 0x535   :  { %1958 = vst [vmem:[%s3514_s2 + $0x20] sm:$0xff] %v1214_v51  ;;  %2383 = vmatpush1.bf16.msra.mxu0 %v2822_v14  ;;  %2415 = vmatpush1.bf16.msra.mxu1 %v2889_v37 }
 0x536   :  { %2385 = vmatprep.subr.bf16.mxu0 %v2831_v17  ;;  %2417 = vmatprep.subr.bf16.mxu1 %v2913_v45 }
 0x539   :  { %2387 = vmatpush1.bf16.msra.mxu0 %v2856_v26  ;;  %2419 = vmatpush1.bf16.msra.mxu1 %v2922_v48 }
 0x53a   :  { %2389 = vmatprep.subr.bf16.mxu0 %v2869_v30  ;;  %2421 = vmatprep.subr.bf16.mxu1 %v2934_v52 }
 0x53d   :  { %2391 = vmatpush1.bf16.msra.mxu0 %v2905_v42  ;;  %2423 = vmatpush1.bf16.msra.mxu1 %v2964_v62 }
 0x53e   :  { %2393 = vmatprep.subr.bf16.mxu0 %v2916_v46  ;;  %2425 = vmatprep.subr.bf16.mxu1 %v2970_v0 }
 0x541   :  { %2395 = vmatpush1.bf16.msra.mxu0 %v2943_v55  ;;  %2427 = vmatpush1.bf16.msra.mxu1 %v3000_v15 }
 0x542   :  { %2397 = vmatprep.subr.bf16.mxu0 %v2952_v58  ;;  %2429 = vmatprep.subr.bf16.mxu1 %v3006_v18 }
 0x545   :  { %2399 = vmatpush1.bf16.msra.mxu0 %v2985_v7  ;;  %2431 = vmatpush1.bf16.msra.mxu1 %v3033_v31 }
 0x546   :  { %2401 = vmatprep.subr.bf16.mxu0 %v2988_v10  ;;  %2433 = vmatprep.subr.bf16.mxu1 %v3036_v32 }
 0x549   :  { %2403 = vmatpush1.bf16.msra.mxu0 %v3021_v24  ;;  %2435 = vmatpush1.bf16.msra.mxu1 %v3055_v40 }
 0x54a   :  { %2405 = vmatprep.subr.bf16.mxu0 %v3024_v27  ;;  %2437 = vmatprep.subr.bf16.mxu1 %v3058_v41 }
 0x54d   :  { %2407 = vmatpush1.bf16.msra.mxu0 %v3051_v39  ;;  %2439 = vmatpush1.bf16.msra.mxu1 %v3068_v47 }
 0x54e   :  { %2441 = vmatprep.subr.bf16.mxu0 %v2793_v4  ;;  %2473 = vmatprep.subr.bf16.mxu1 %v2845_v22  ;;  %v1226_v22 = vunpack.c.l.bf16 %v1961_v36 }
 0x602   :  { %v1296_v21 = vpop.f32.mrb[20].mxu0  ;;  %v1373_v49 = vpop.f32.mrb[20].mxu1 }
 0x603   :  { %v1384_v57 = vadd.f32 %v1296_v21, %v1222_v13  ;;  %v1298_v4 = vpop.f32.mrb[21].mxu0  ;;  %v1375_v29 = vpop.f32.mrb[21].mxu1  ;;  %v1386_v51 = vadd.f32 %v1373_v49, %v1224_v34 }
 0x604   :  { %v1385_v59 = vadd.f32 %v1298_v4, %v1223_v50  ;;  %v1387_v28 = vadd.f32 %v1375_v29, %v1225_v5 }
 0x605   :  { %v1963_v53 = vmul.f32 -1.442695, %v1384_v57 }
 0x606   :  { %v1965_v38 = vmul.f32 -1.442695, %v1385_v59  ;;  %v1302_v6 = vpop.f32.mrb[22].mxu0  ;;  %v1379_v11 = vpop.f32.mrb[22].mxu1  ;;  %v1967_v20 = vmul.f32 -1.442695, %v1387_v28 }
 0x607   :  { %2665 = vpow2.f32 %v1963_v53  ;;  %v1388_v61 = vadd.f32 %v1302_v6, %v1226_v22  ;;  %v1304_v54 = vpop.f32.mrb[23].mxu0  ;;  %v1381_v16 = vpop.f32.mrb[23].mxu1  ;;  %v1390_v4 = vadd.f32 %v1379_v11, %v1228_v44 }
 0x608   :  { %2667 = vpow2.f32 %v1965_v38  ;;  %v1389_v19 = vadd.f32 %v1304_v54, %v1227_v60  ;;  %v1391_v43 = vadd.f32 %v1381_v16, %v1229_v1 }
 0x609   :  { %v1964_v23 = vmul.f32 -1.442695, %v1388_v61 }
 0x60a   :  { %v1966_v2 = vmul.f32 -1.442695, %v1389_v19  ;;  %v1968_v21 = vmul.f32 -1.442695, %v1391_v43 }
 0x60b   :  { %2669 = vpow2.f32 %v1964_v23 }
 0x60c   :  { %2671 = vpow2.f32 %v1966_v2 }
 0x60d   :  { %2673 = vpow2.f32 %v1967_v20 }
 0x60e   :  { %2675 = vtanh.f32 %v1386_v51 }
 0x611   :  { %v2666_v13 = vpop.eup %2665 }
 0x612   :  { %v2668_v50 = vpop.eup %2667  ;;  %v1398_v36 = vadd.f32 1.0, %v2666_v13 }
 0x613   :  { %v1410_v57 = vadd.f32 1.0, %v2668_v50 }
 0x614   :  { %2677 = vrcp.f32 %v1398_v36 }
 0x615   :  { %v2670_v22 = vpop.eup %2669  ;;  %2679 = vrcp.f32 %v1410_v57 }
 0x616   :  { %v2672_v29 = vpop.eup %2671  ;;  %v1399_v59 = vadd.f32 1.0, %v2670_v22  ;;  %2681 = vpow2.f32 %v1968_v21 }
 0x617   :  { %2683 = vtanh.f32 %v1390_v4  ;;  %v1411_v63 = vadd.f32 1.0, %v2672_v29  ;;  %v2674_v49 = vpop.eup %2673 }
 0x618   :  { %2685 = vrcp.f32 %v1399_v59  ;;  %v2676_v60 = vpop.eup %2675  ;;  %v1424_v6 = vadd.f32 1.0, %v2674_v49 }
 0x619   :  { %2687 = vrcp.f32 %v1411_v63 }
 0x61a   :  { %2689 = vrcp.f32 %v1424_v6 }
 0x61e   :  { %v2678_v53 = vpop.eup %2677 }
 0x61f   :  { %v2680_v38 = vpop.eup %2679  ;;  %v1432_v5 = vmul.f32 %v2678_v53, %v2676_v60 }
 0x620   :  { %v2682_v61 = vpop.eup %2681  ;;  %v1430_v12 = vmul.f32 %v2680_v38, %v3361_v56 }
 0x621   :  { %v2684_v11 = vpop.eup %2683  ;;  %v1425_v28 = vadd.f32 1.0, %v2682_v61 }
 0x622   :  { %v2686_v54 = vpop.eup %2685  ;;  %v3420_v16 = vadd.f32 %v1432_v5, %v1430_v12 }
 0x623   :  { %v2688_v19 = vpop.eup %2687  ;;  %v1433_v23 = vmul.f32 %v2686_v54, %v2684_v11 }
 0x624   :  { %2691 = vtanh.f32 %v3420_v16  ;;  %v1431_v2 = vmul.f32 %v2688_v19, %v3365_v35  ;;  %v2690_v34 = vpop.eup %2689 }
 0x625   :  { %2693 = vrcp.f32 %v1425_v28 }
 0x626   :  { %v3424_v1 = vadd.f32 %v1433_v23, %v1431_v2 }
 0x628   :  { %2695 = vtanh.f32 %v3424_v1 }
 0x62e   :  { %v2692_v20 = vpop.eup %2691 }
 0x62f   :  { %v1438_v56 = vmul.f32 %v2692_v20, %v2690_v34  ;;  %v2694_v43 = vpop.eup %2693 }
 0x631   :  { %1521 = vmatmul.mubr.f32.vlgmr.msra.gmra.mrb[24].mxu0 %v1438_v56  ;;  %1598 = vmatmul.mubr.f32.vlgmr.msra.gmra.mrb[24].mxu1 %v1438_v56 }
 0x632   :  { %v2696_v51 = vpop.eup %2695  ;;  %1526 = vmatprep.mubr.f32.mxu0 %v2761_v3  ;;  %1603 = vmatprep.mubr.f32.mxu1 %v2761_v3 }
 0x633   :  { %v1439_v44 = vmul.f32 %v2696_v51, %v2694_v43  ;;  %2443 = vmatpush1.bf16.msra.mxu0 %v2804_v8  ;;  %2475 = vmatpush1.bf16.msra.mxu1 %v2853_v25  ;;  %v1970_v8 = vld [vmem:[%s3513_s0 + $0xc0] sm:$0xff] }
 0x634   :  { %2445 = vmatprep.subr.bf16.mxu0 %v2806_v9  ;;  %2477 = vmatprep.subr.bf16.mxu1 %v2878_v33  ;;  %v1448_v9 = vunpack.c.l.bf16 %v1970_v8  ;;  %v1971_v33 = vld [vmem:[%s3513_s0 + $0xc8] sm:$0xff] }
 0x635   :  { %v1440_v35 = vpack.c.bf16 %v1439_v44, %v1438_v56  ;;  %1527 = vmatmul.mubr.f32.gmra.mrb[26].mxu0 %v1439_v44  ;;  %1604 = vmatmul.mubr.f32.gmra.mrb[26].mxu1 %v1439_v44 }
 0x636   :  { %1746 = vmatprep.mubr.f32.mxu0 %v2761_v3  ;;  %1823 = vmatprep.mubr.f32.mxu1 %v2761_v3 }
 0x637   :  { %1969 = vst [vmem:[%s3514_s2 + $0x28] sm:$0xff] %v1440_v35  ;;  %2447 = vmatpush1.bf16.msra.mxu0 %v2822_v14  ;;  %2479 = vmatpush1.bf16.msra.mxu1 %v2889_v37  ;;  %v1449_v14 = vunpack.c.h.bf16 %v1970_v8 }
 0x638   :  { %2449 = vmatprep.subr.bf16.mxu0 %v2831_v17  ;;  %2481 = vmatprep.subr.bf16.mxu1 %v2913_v45  ;;  %v1972_v17 = vld [vmem:[%s3513_s0 + $0xd0] sm:$0xff] }
 0x639   :  { %v1452_v45 = vunpack.c.l.bf16 %v1972_v17 }
 0x63b   :  { %2451 = vmatpush1.bf16.msra.mxu0 %v2856_v26  ;;  %2483 = vmatpush1.bf16.msra.mxu1 %v2922_v48  ;;  %v1453_v48 = vunpack.c.h.bf16 %v1972_v17 }
 0x63c   :  { %2453 = vmatprep.subr.bf16.mxu0 %v2869_v30  ;;  %2485 = vmatprep.subr.bf16.mxu1 %v2934_v52 }
 0x63f   :  { %2455 = vmatpush1.bf16.msra.mxu0 %v2905_v42  ;;  %2487 = vmatpush1.bf16.msra.mxu1 %v2964_v62 }
 0x640   :  { %2457 = vmatprep.subr.bf16.mxu0 %v2916_v46  ;;  %2489 = vmatprep.subr.bf16.mxu1 %v2970_v0 }
 0x643   :  { %2459 = vmatpush1.bf16.msra.mxu0 %v2943_v55  ;;  %2491 = vmatpush1.bf16.msra.mxu1 %v3000_v15 }
 0x644   :  { %2461 = vmatprep.subr.bf16.mxu0 %v2952_v58  ;;  %2493 = vmatprep.subr.bf16.mxu1 %v3006_v18  ;;  %v1451_v58 = vunpack.c.h.bf16 %v1971_v33 }
 0x647   :  { %2463 = vmatpush1.bf16.msra.mxu0 %v2985_v7  ;;  %2495 = vmatpush1.bf16.msra.mxu1 %v3033_v31 }
 0x648   :  { %2465 = vmatprep.subr.bf16.mxu0 %v2988_v10  ;;  %2497 = vmatprep.subr.bf16.mxu1 %v3036_v32  ;;  %v1973_v10 = vld [vmem:[%s3513_s0 + $0xd8] sm:$0xff] }
 0x649   :  { %v1454_v50 = vunpack.c.l.bf16 %v1973_v10 }
 0x64b   :  { %2467 = vmatpush1.bf16.msra.mxu0 %v3021_v24  ;;  %2499 = vmatpush1.bf16.msra.mxu1 %v3055_v40  ;;  %v1450_v40 = vunpack.c.l.bf16 %v1971_v33 }
 0x64c   :  { %2469 = vmatprep.subr.bf16.mxu0 %v3024_v27  ;;  %2501 = vmatprep.subr.bf16.mxu1 %v3058_v41 }
 0x64f   :  { %2471 = vmatpush1.bf16.msra.mxu0 %v3051_v39  ;;  %2503 = vmatpush1.bf16.msra.mxu1 %v3068_v47  ;;  %v1455_v39 = vunpack.c.h.bf16 %v1973_v10 }
 0x704   :  { %v1522_v25 = vpop.f32.mrb[24].mxu0  ;;  %v1599_v26 = vpop.f32.mrb[24].mxu1 }
 0x705   :  { %v1610_v30 = vadd.f32 %v1522_v25, %v1448_v9  ;;  %v1524_v37 = vpop.f32.mrb[25].mxu0  ;;  %v1601_v42 = vpop.f32.mrb[25].mxu1  ;;  %v1612_v13 = vadd.f32 %v1599_v26, %v1450_v40  ;;  %v1983_v26 = vld [vmem:[%s3513_s0 + $0xf0] sm:$0xff] }
 0x706   :  { %v1611_v46 = vadd.f32 %v1524_v37, %v1449_v14  ;;  %v1613_v31 = vadd.f32 %v1601_v42, %v1451_v58  ;;  %v1982_v37 = vld [vmem:[%s3513_s0 + $0xe8] sm:$0xff] }
 0x707   :  { %v1974_v52 = vmul.f32 -1.442695, %v1610_v30 }
 0x708   :  { %v1976_v55 = vmul.f32 -1.442695, %v1611_v46  ;;  %v1528_v62 = vpop.f32.mrb[26].mxu0  ;;  %v1605_v0 = vpop.f32.mrb[26].mxu1  ;;  %v1978_v41 = vmul.f32 -1.442695, %v1613_v31  ;;  %v1678_v46 = vunpack.c.l.bf16 %v1983_v26 }
 0x709   :  { %2697 = vpow2.f32 %v1974_v52  ;;  %v1614_v7 = vadd.f32 %v1528_v62, %v1452_v45  ;;  %v1530_v15 = vpop.f32.mrb[27].mxu0  ;;  %v1607_v18 = vpop.f32.mrb[27].mxu1  ;;  %v1616_v29 = vadd.f32 %v1605_v0, %v1454_v50  ;;  %v1679_v52 = vunpack.c.h.bf16 %v1983_v26 }
 0x70a   :  { %2699 = vpow2.f32 %v1976_v55  ;;  %v1615_v24 = vadd.f32 %v1530_v15, %v1453_v48  ;;  %v1617_v47 = vadd.f32 %v1607_v18, %v1455_v39  ;;  %v1677_v62 = vunpack.c.h.bf16 %v1982_v37  ;;  %v1984_v15 = vld [vmem:[%s3513_s0 + $0xf8] sm:$0xff] }
 0x70b   :  { %v1975_v27 = vmul.f32 -1.442695, %v1614_v7  ;;  %v1681_v40 = vunpack.c.h.bf16 %v1984_v15 }
 0x70c   :  { %v1977_v32 = vmul.f32 -1.442695, %v1615_v24  ;;  %v1979_v4 = vmul.f32 -1.442695, %v1617_v47 }
 0x70d   :  { %2701 = vpow2.f32 %v1975_v27 }
 0x70e   :  { %2703 = vpow2.f32 %v1977_v32 }
 0x70f   :  { %2705 = vpow2.f32 %v1978_v41  ;;  %v1676_v41 = vunpack.c.l.bf16 %v1982_v37 }
 0x710   :  { %2707 = vtanh.f32 %v1612_v13 }
 0x713   :  { %v2698_v36 = vpop.eup %2697 }
 0x714   :  { %v2700_v21 = vpop.eup %2699  ;;  %v1624_v57 = vadd.f32 1.0, %v2698_v36  ;;  %v1680_v36 = vunpack.c.l.bf16 %v1984_v15 }
 0x715   :  { %v1636_v22 = vadd.f32 1.0, %v2700_v21 }
 0x716   :  { %2709 = vrcp.f32 %v1624_v57 }
 0x717   :  { %v2702_v59 = vpop.eup %2701  ;;  %2711 = vrcp.f32 %v1636_v22 }
 0x718   :  { %v2704_v63 = vpop.eup %2703  ;;  %v1625_v49 = vadd.f32 1.0, %v2702_v59  ;;  %2713 = vpow2.f32 %v1979_v4 }
 0x719   :  { %2715 = vtanh.f32 %v1616_v29  ;;  %v1637_v60 = vadd.f32 1.0, %v2704_v63  ;;  %v2706_v53 = vpop.eup %2705 }
 0x71a   :  { %2717 = vrcp.f32 %v1625_v49  ;;  %v2708_v38 = vpop.eup %2707  ;;  %v1650_v12 = vadd.f32 1.0, %v2706_v53 }
 0x71b   :  { %2719 = vrcp.f32 %v1637_v60 }
 0x71c   :  { %2721 = vrcp.f32 %v1650_v12 }
 0x720   :  { %v2710_v5 = vpop.eup %2709 }
 0x721   :  { %v2712_v6 = vpop.eup %2711  ;;  %v1658_v61 = vmul.f32 %v2710_v5, %v2708_v38 }
 0x722   :  { %v2714_v11 = vpop.eup %2713  ;;  %v1656_v54 = vmul.f32 %v2712_v6, %v3420_v16 }
 0x723   :  { %v2716_v19 = vpop.eup %2715  ;;  %v1651_v20 = vadd.f32 1.0, %v2714_v11 }
 0x724   :  { %v2718_v23 = vpop.eup %2717  ;;  %v3477_v28 = vadd.f32 %v1658_v61, %v1656_v54 }
 0x725   :  { %v2720_v2 = vpop.eup %2719  ;;  %v1659_v34 = vmul.f32 %v2718_v23, %v2716_v19 }
 0x726   :  { %2723 = vtanh.f32 %v3477_v28  ;;  %v1657_v56 = vmul.f32 %v2720_v2, %v3424_v1  ;;  %v2722_v51 = vpop.eup %2721  ;;  %v1981_v1 = vld [vmem:[%s3513_s0 + $0xe0] sm:$0xff] }
 0x727   :  { %2725 = vrcp.f32 %v1651_v20  ;;  %v1674_v17 = vunpack.c.l.bf16 %v1981_v1  ;;  %v1675_v25 = vunpack.c.h.bf16 %v1981_v1 }
 0x728   :  { %v3481_v43 = vadd.f32 %v1659_v34, %v1657_v56 }
 0x72a   :  { %2727 = vtanh.f32 %v3481_v43 }
 0x730   :  { %v2724_v44 = vpop.eup %2723 }
 0x731   :  { %v1664_v16 = vmul.f32 %v2724_v44, %v2722_v51  ;;  %v2726_v35 = vpop.eup %2725 }
 0x733   :  { %1747 = vmatmul.mubr.f32.vlgmr.msra.gmra.mrb[28].mxu0 %v1664_v16  ;;  %1824 = vmatmul.mubr.f32.vlgmr.msra.gmra.mrb[28].mxu1 %v1664_v16 }
 0x734   :  { %v2728_v8 = vpop.eup %2727  ;;  %1752 = vmatprep.mubr.f32.mxu0 %v2761_v3  ;;  %1829 = vmatprep.mubr.f32.mxu1 %v2761_v3 }
 0x735   :  { %v1665_v9 = vmul.f32 %v2728_v8, %v2726_v35 }
 0x737   :  { %v1666_v14 = vpack.c.bf16 %v1665_v9, %v1664_v16  ;;  %1753 = vmatmul.mubr.f32.gmra.mrb[30].mxu0 %v1665_v9  ;;  %1830 = vmatmul.mubr.f32.gmra.mrb[30].mxu1 %v1665_v9 }
 0x739   :  { %1980 = vst [vmem:[%s3514_s2 + $0x30] sm:$0xff] %v1666_v14 }
 0x806   :  { %v1748_v30 = vpop.f32.mrb[28].mxu0  ;;  %v1825_v3 = vpop.f32.mrb[28].mxu1 }
 0x807   :  { %v1836_v33 = vadd.f32 %v1748_v30, %v1674_v17  ;;  %v1750_v42 = vpop.f32.mrb[29].mxu0  ;;  %v1827_v45 = vpop.f32.mrb[29].mxu1  ;;  %v1838_v50 = vadd.f32 %v1825_v3, %v1676_v41 }
 0x808   :  { %v1837_v48 = vadd.f32 %v1750_v42, %v1675_v25  ;;  %v1839_v32 = vadd.f32 %v1827_v45, %v1677_v62 }
 0x809   :  { %v1985_v55 = vmul.f32 -1.442695, %v1836_v33 }
 0x80a   :  { %v1987_v58 = vmul.f32 -1.442695, %v1837_v48  ;;  %v1754_v0 = vpop.f32.mrb[30].mxu0  ;;  %v1831_v7 = vpop.f32.mrb[30].mxu1  ;;  %v1989_v47 = vmul.f32 -1.442695, %v1839_v32 }
 0x80b   :  { %2729 = vpow2.f32 %v1985_v55  ;;  %v1840_v10 = vadd.f32 %v1754_v0, %v1678_v46  ;;  %v1756_v18 = vpop.f32.mrb[31].mxu0  ;;  %v1833_v24 = vpop.f32.mrb[31].mxu1  ;;  %v1842_v59 = vadd.f32 %v1831_v7, %v1680_v36 }
 0x80c   :  { %2731 = vpow2.f32 %v1987_v58  ;;  %v1841_v27 = vadd.f32 %v1756_v18, %v1679_v52  ;;  %v1843_v13 = vadd.f32 %v1833_v24, %v1681_v40 }
 0x80d   :  { %v1986_v31 = vmul.f32 -1.442695, %v1840_v10 }
 0x80e   :  { %v1988_v39 = vmul.f32 -1.442695, %v1841_v27  ;;  %v1990_v22 = vmul.f32 -1.442695, %v1843_v13 }
 0x80f   :  { %2733 = vpow2.f32 %v1986_v31 }
 0x810   :  { %2735 = vpow2.f32 %v1988_v39 }
 0x811   :  { %2737 = vpow2.f32 %v1989_v47 }
 0x812   :  { %2739 = vtanh.f32 %v1838_v50 }
 0x815   :  { %v2730_v21 = vpop.eup %2729 }
 0x816   :  { %v2732_v57 = vpop.eup %2731  ;;  %v1850_v4 = vadd.f32 1.0, %v2730_v21 }
 0x817   :  { %v1862_v29 = vadd.f32 1.0, %v2732_v57 }
 0x818   :  { %2741 = vrcp.f32 %v1850_v4 }
 0x819   :  { %v2734_v63 = vpop.eup %2733  ;;  %2743 = vrcp.f32 %v1862_v29 }
 0x81a   :  { %v2736_v49 = vpop.eup %2735  ;;  %v1851_v60 = vadd.f32 1.0, %v2734_v63  ;;  %2745 = vpow2.f32 %v1990_v22 }
 0x81b   :  { %2747 = vtanh.f32 %v1842_v59  ;;  %v1863_v53 = vadd.f32 1.0, %v2736_v49  ;;  %v2738_v38 = vpop.eup %2737 }
 0x81c   :  { %2749 = vrcp.f32 %v1851_v60  ;;  %v2740_v5 = vpop.eup %2739  ;;  %v1876_v11 = vadd.f32 1.0, %v2738_v38 }
 0x81d   :  { %2751 = vrcp.f32 %v1863_v53 }
 0x81e   :  { %2753 = vrcp.f32 %v1876_v11 }
 0x822   :  { %v2742_v6 = vpop.eup %2741 }
 0x823   :  { %v2744_v61 = vpop.eup %2743  ;;  %v1884_v12 = vmul.f32 %v2742_v6, %v2740_v5 }
 0x824   :  { %v2746_v54 = vpop.eup %2745  ;;  %v1882_v19 = vmul.f32 %v2744_v61, %v3477_v28 }
 0x825   :  { %v2748_v23 = vpop.eup %2747  ;;  %v1877_v51 = vadd.f32 1.0, %v2746_v54 }
 0x826   :  { %v2750_v2 = vpop.eup %2749  ;;  %v1886_v34 = vadd.f32 %v1884_v12, %v1882_v19 }
 0x827   :  { %v2752_v20 = vpop.eup %2751  ;;  %v1885_v56 = vmul.f32 %v2750_v2, %v2748_v23 }
 0x828   :  { %2755 = vtanh.f32 %v1886_v34  ;;  %1899 = vst [vmem:[%s3515_s3] sm:$0xff] %v1886_v34  ;;  %v1883_v44 = vmul.f32 %v2752_v20, %v3481_v43  ;;  %v2754_v28 = vpop.eup %2753 }
 0x829   :  { %2757 = vrcp.f32 %v1877_v51 }
 0x82a   :  { %v1887_v16 = vadd.f32 %v1885_v56, %v1883_v44 }
 0x82c   :  { %2759 = vtanh.f32 %v1887_v16  ;;  %1900 = vst [vmem:[%s3515_s3 + $0x8] sm:$0xff] %v1887_v16 }
 0x832   :  { %v2756_v35 = vpop.eup %2755 }
 0x833   :  { %v1890_v8 = vmul.f32 %v2756_v35, %v2754_v28  ;;  %v2758_v9 = vpop.eup %2757 }
 0x836   :  { %v2760_v14 = vpop.eup %2759 }
 0x837   :  { %v1891_v1 = vmul.f32 %v2760_v14, %v2758_v9 }
 0x839   :  { %v1892_v17 = vpack.c.bf16 %v1891_v1, %v1890_v8 }
 0x83b   :  { %1991 = vst [vmem:[%s3514_s2 + $0x38] sm:$0xff] %v1892_v17 }

// kernel: lstmf_forward.3
= control target key start
LH: loop header
LB: loop body
LE: loop exit
PB: predicated region body
PF: predicated region fallthrough
CT: control target
= control target key end

     0   :  { %v2911_v3 = vmov 0.0   ;;  %s3662_s1 = inlined_call_operand.vmem [shape: f32[128,512], index: 1, kind: input, shape index: {}]   ;;  %s3663_s0 = inlined_call_operand.vmem [shape: bf16[8,16,512], index: 0, kind: input, shape index: {}]   ;;  %s3664_s2 = inlined_call_operand.vmem [shape: bf16[8,16,128], index: 2, kind: output, shape index: {0}]   ;;  %s3665_s3 = inlined_call_operand.vmem [shape: f32[16,128], index: 3, kind: output, shape index: {1}]  }
   0x1   :  { %v22_v0 = vld [vmem:[%s3662_s1 + $0x8] sm:$0xff]  ;;  %v21_v2 = vld [vmem:[%s3662_s1] sm:$0xff]  ;;  %165 = vmatprep.mubr.f32.mxu0 %v2911_v3  ;;  %242 = vmatprep.mubr.f32.mxu1 %v2911_v3  ;;  %v24_v19 = vld [vmem:[%s3662_s1 + $0x18] sm:$0xff] }
   0x2   :  { %v26_v1 = vld [vmem:[%s3662_s1 + $0x28] sm:$0xff]  ;;  %v25_v5 = vld [vmem:[%s3662_s1 + $0x20] sm:$0xff]  ;;  %v28_v20 = vld [vmem:[%s3662_s1 + $0x38] sm:$0xff] }
   0x3   :  { %v2943_v4 = vpack.c.bf16 %v26_v1, %v22_v0  ;;  %v30_v6 = vld [vmem:[%s3662_s1 + $0x48] sm:$0xff]  ;;  %v2954_v8 = vpack.c.bf16 %v25_v5, %v21_v2  ;;  %v29_v10 = vld [vmem:[%s3662_s1 + $0x40] sm:$0xff]  ;;  %v2995_v22 = vpack.c.bf16 %v28_v20, %v24_v19  ;;  %v23_v23 = vld [vmem:[%s3662_s1 + $0x10] sm:$0xff] }
   0x4   :  { %v34_v7 = vld [vmem:[%s3662_s1 + $0x68] sm:$0xff]  ;;  %v33_v11 = vld [vmem:[%s3662_s1 + $0x60] sm:$0xff]  ;;  %v27_v24 = vld [vmem:[%s3662_s1 + $0x30] sm:$0xff] }
   0x5   :  { %v2956_v9 = vpack.c.bf16 %v34_v7, %v30_v6  ;;  %v38_v12 = vld [vmem:[%s3662_s1 + $0x88] sm:$0xff]  ;;  %2143 = vmatprep.subr.bf16.mxu0 %v2943_v4  ;;  %v2972_v14 = vpack.c.bf16 %v33_v11, %v29_v10  ;;  %v37_v15 = vld [vmem:[%s3662_s1 + $0x80] sm:$0xff]  ;;  %v3003_v25 = vpack.c.bf16 %v27_v24, %v23_v23  ;;  %2175 = vmatprep.subr.bf16.mxu1 %v2995_v22  ;;  %v32_v27 = vld [vmem:[%s3662_s1 + $0x58] sm:$0xff] }
   0x6   :  { %v42_v13 = vld [vmem:[%s3662_s1 + $0xa8] sm:$0xff]  ;;  %2145 = vmatpush1.bf16.msra.mxu0 %v2954_v8  ;;  %v41_v16 = vld [vmem:[%s3662_s1 + $0xa0] sm:$0xff]  ;;  %v36_v28 = vld [vmem:[%s3662_s1 + $0x78] sm:$0xff] }
   0x7   :  { %2147 = vmatprep.subr.bf16.mxu0 %v2956_v9  ;;  %v2981_v17 = vpack.c.bf16 %v42_v13, %v38_v12  ;;  %v46_v18 = vld [vmem:[%s3662_s1 + $0xc8] sm:$0xff]  ;;  %v3006_v26 = vpack.c.bf16 %v41_v16, %v37_v15  ;;  %v31_v29 = vld [vmem:[%s3662_s1 + $0x50] sm:$0xff]  ;;  %v45_v31 = vld [vmem:[%s3662_s1 + $0xc0] sm:$0xff]  ;;  %2177 = vmatpush1.bf16.msra.mxu1 %v3003_v25  ;;  %v3028_v33 = vpack.c.bf16 %v36_v28, %v32_v27 }
   0x8   :  { %v50_v21 = vld [vmem:[%s3662_s1 + $0xe8] sm:$0xff]  ;;  %v49_v32 = vld [vmem:[%s3662_s1 + $0xe0] sm:$0xff]  ;;  %v35_v34 = vld [vmem:[%s3662_s1 + $0x70] sm:$0xff] }
   0x9   :  { %v3019_v30 = vpack.c.bf16 %v50_v21, %v46_v18  ;;  %v54_v35 = vld [vmem:[%s3662_s1 + $0x108] sm:$0xff]  ;;  %v3039_v37 = vpack.c.bf16 %v35_v34, %v31_v29  ;;  %v40_v38 = vld [vmem:[%s3662_s1 + $0x98] sm:$0xff]  ;;  %2179 = vmatprep.subr.bf16.mxu1 %v3028_v33  ;;  %v39_v40 = vld [vmem:[%s3662_s1 + $0x90] sm:$0xff]  ;;  %v3055_v42 = vpack.c.bf16 %v49_v32, %v45_v31 }
   0xa   :  { %2149 = vmatpush1.bf16.msra.mxu0 %v2972_v14  ;;  %v58_v36 = vld [vmem:[%s3662_s1 + $0x128] sm:$0xff]  ;;  %v44_v39 = vld [vmem:[%s3662_s1 + $0xb8] sm:$0xff]  ;;  %v43_v41 = vld [vmem:[%s3662_s1 + $0xb0] sm:$0xff] }
   0xb   :  { %2151 = vmatprep.subr.bf16.mxu0 %v2981_v17  ;;  %v53_v43 = vld [vmem:[%s3662_s1 + $0x100] sm:$0xff]  ;;  %v3063_v45 = vpack.c.bf16 %v44_v39, %v40_v38  ;;  %v3066_v46 = vpack.c.bf16 %v58_v36, %v54_v35  ;;  %2181 = vmatpush1.bf16.msra.mxu1 %v3039_v37  ;;  %v62_v47 = vld [vmem:[%s3662_s1 + $0x148] sm:$0xff]  ;;  %v3072_v48 = vpack.c.bf16 %v43_v41, %v39_v40  ;;  %v48_v49 = vld [vmem:[%s3662_s1 + $0xd8] sm:$0xff] }
   0xc   :  { %v57_v44 = vld [vmem:[%s3662_s1 + $0x120] sm:$0xff]  ;;  %v52_v50 = vld [vmem:[%s3662_s1 + $0xf8] sm:$0xff]  ;;  %v66_v51 = vld [vmem:[%s3662_s1 + $0x168] sm:$0xff] }
   0xd   :  { %2183 = vmatprep.subr.bf16.mxu1 %v3063_v45  ;;  %v3084_v52 = vpack.c.bf16 %v52_v50, %v48_v49  ;;  %v47_v53 = vld [vmem:[%s3662_s1 + $0xd0] sm:$0xff]  ;;  %v3093_v55 = vpack.c.bf16 %v57_v44, %v53_v43  ;;  %v56_v56 = vld [vmem:[%s3662_s1 + $0x118] sm:$0xff]  ;;  %v3102_v58 = vpack.c.bf16 %v66_v51, %v62_v47  ;;  %v61_v59 = vld [vmem:[%s3662_s1 + $0x140] sm:$0xff] }
   0xe   :  { %2153 = vmatpush1.bf16.msra.mxu0 %v3006_v26  ;;  %v51_v54 = vld [vmem:[%s3662_s1 + $0xf0] sm:$0xff]  ;;  %v60_v57 = vld [vmem:[%s3662_s1 + $0x138] sm:$0xff]  ;;  %v65_v60 = vld [vmem:[%s3662_s1 + $0x160] sm:$0xff] }
   0xf   :  { %2155 = vmatprep.subr.bf16.mxu0 %v3019_v30  ;;  %2185 = vmatpush1.bf16.msra.mxu1 %v3072_v48  ;;  %v70_v61 = vld [vmem:[%s3662_s1 + $0x188] sm:$0xff]  ;;  %v3114_v62 = vpack.c.bf16 %v51_v54, %v47_v53  ;;  %v3120_v0 = vpack.c.bf16 %v60_v57, %v56_v56  ;;  %v55_v1 = vld [vmem:[%s3662_s1 + $0x110] sm:$0xff]  ;;  %v64_v5 = vld [vmem:[%s3662_s1 + $0x158] sm:$0xff]  ;;  %v3135_v7 = vpack.c.bf16 %v65_v60, %v61_v59 }
  0x10   :  { %v74_v63 = vld [vmem:[%s3662_s1 + $0x1a8] sm:$0xff]  ;;  %2187 = vmatprep.subr.bf16.mxu1 %v3084_v52  ;;  %v59_v2 = vld [vmem:[%s3662_s1 + $0x130] sm:$0xff]  ;;  %v68_v6 = vld [vmem:[%s3662_s1 + $0x178] sm:$0xff] }
  0x11   :  { %v3138_v10 = vpack.c.bf16 %v74_v63, %v70_v61  ;;  %v69_v11 = vld [vmem:[%s3662_s1 + $0x180] sm:$0xff]  ;;  %v78_v13 = vld [vmem:[%s3662_s1 + $0x1c8] sm:$0xff]  ;;  %v3150_v15 = vpack.c.bf16 %v59_v2, %v55_v1  ;;  %v3156_v18 = vpack.c.bf16 %v68_v6, %v64_v5  ;;  %v63_v19 = vld [vmem:[%s3662_s1 + $0x150] sm:$0xff] }
  0x12   :  { %2157 = vmatpush1.bf16.msra.mxu0 %v3055_v42  ;;  %v73_v12 = vld [vmem:[%s3662_s1 + $0x1a0] sm:$0xff]  ;;  %v82_v16 = vld [vmem:[%s3662_s1 + $0x1e8] sm:$0xff]  ;;  %v67_v20 = vld [vmem:[%s3662_s1 + $0x170] sm:$0xff] }
  0x13   :  { %2159 = vmatprep.subr.bf16.mxu0 %v3066_v46  ;;  %2189 = vmatpush1.bf16.msra.mxu1 %v3114_v62  ;;  %v72_v21 = vld [vmem:[%s3662_s1 + $0x198] sm:$0xff]  ;;  %v3171_v24 = vpack.c.bf16 %v73_v12, %v69_v11  ;;  %v3174_v27 = vpack.c.bf16 %v82_v16, %v78_v13  ;;  %v77_v28 = vld [vmem:[%s3662_s1 + $0x1c0] sm:$0xff]  ;;  %v3183_v31 = vpack.c.bf16 %v67_v20, %v63_v19  ;;  %v71_v34 = vld [vmem:[%s3662_s1 + $0x190] sm:$0xff] }
  0x14   :  { %2191 = vmatprep.subr.bf16.mxu1 %v3120_v0  ;;  %v76_v23 = vld [vmem:[%s3662_s1 + $0x1b8] sm:$0xff]  ;;  %v81_v29 = vld [vmem:[%s3662_s1 + $0x1e0] sm:$0xff]  ;;  %v75_v35 = vld [vmem:[%s3662_s1 + $0x1b0] sm:$0xff] }
  0x15   :  { %v3186_v32 = vpack.c.bf16 %v76_v23, %v72_v21  ;;  %v80_v36 = vld [vmem:[%s3662_s1 + $0x1d8] sm:$0xff]  ;;  %v3201_v39 = vpack.c.bf16 %v81_v29, %v77_v28  ;;  %v3205_v40 = vpack.c.bf16 %v75_v35, %v71_v34  ;;  %v79_v43 = vld [vmem:[%s3662_s1 + $0x1d0] sm:$0xff]  ;;  %v89_v49 = vld [vmem:[%s3663_s0] sm:$0xff] }
  0x16   :  { %2161 = vmatpush1.bf16.msra.mxu0 %v3093_v55  ;;  %v84_v38 = vld [vmem:[%s3662_s1 + $0x1f8] sm:$0xff]  ;;  %v83_v44 = vld [vmem:[%s3662_s1 + $0x1f0] sm:$0xff]  ;;  %v93_v50 = vunpack.c.l.bf16 %v89_v49  ;;  %v94_v51 = vunpack.c.h.bf16 %v89_v49  ;;  %v90_v56 = vld [vmem:[%s3663_s0 + $0x8] sm:$0xff] }
  0x17   :  { %2163 = vmatprep.subr.bf16.mxu0 %v3102_v58  ;;  %2193 = vmatpush1.bf16.msra.mxu1 %v3150_v15  ;;  %v3208_v41 = vpack.c.bf16 %v84_v38, %v80_v36  ;;  %v3218_v47 = vpack.c.bf16 %v83_v44, %v79_v43  ;;  %v91_v53 = vld [vmem:[%s3663_s0 + $0x10] sm:$0xff]  ;;  %v96_v2 = vunpack.c.h.bf16 %v90_v56  ;;  %v92_v11 = vld [vmem:[%s3663_s0 + $0x18] sm:$0xff]  ;;  %v95_v34 = vunpack.c.l.bf16 %v90_v56 }
  0x18   :  { %2195 = vmatprep.subr.bf16.mxu1 %v3156_v18  ;;  %v97_v60 = vunpack.c.l.bf16 %v91_v53  ;;  %v98_v63 = vunpack.c.h.bf16 %v91_v53  ;;  %v100_v28 = vunpack.c.h.bf16 %v92_v11  ;;  %v99_v49 = vunpack.c.l.bf16 %v92_v11 }
  0x1a   :  { %2165 = vmatpush1.bf16.msra.mxu0 %v3135_v7 }
  0x1b   :  { %2167 = vmatprep.subr.bf16.mxu0 %v3138_v10  ;;  %2197 = vmatpush1.bf16.msra.mxu1 %v3183_v31 }
  0x1c   :  { %2199 = vmatprep.subr.bf16.mxu1 %v3186_v32 }
  0x1e   :  { %2169 = vmatpush1.bf16.msra.mxu0 %v3171_v24 }
  0x1f   :  { %2171 = vmatprep.subr.bf16.mxu0 %v3174_v27  ;;  %2201 = vmatpush1.bf16.msra.mxu1 %v3205_v40 }
  0x20   :  { %2203 = vmatprep.subr.bf16.mxu1 %v3208_v41 }
  0x22   :  { %2173 = vmatpush1.bf16.msra.mxu0 %v3201_v39 }
  0x23   :  { %2207 = vmatprep.subr.bf16.mxu0 %v2943_v4  ;;  %2205 = vmatpush1.bf16.msra.mxu1 %v3218_v47 }
  0x24   :  { %2239 = vmatprep.subr.bf16.mxu1 %v2995_v22 }
  0x25   :  { %166 = vmatmul.mubr.f32.vlgmr.msra.gmra.mrb[0].mxu0 %v2911_v3 }
  0x26   :  { %171 = vmatprep.mubr.f32.mxu0 %v2911_v3  ;;  %2209 = vmatpush1.bf16.msra.mxu0 %v2954_v8 }
  0x27   :  { %2211 = vmatprep.subr.bf16.mxu0 %v2956_v9  ;;  %243 = vmatmul.mubr.f32.vlgmr.msra.gmra.mrb[0].mxu1 %v2911_v3 }
  0x28   :  { %248 = vmatprep.mubr.f32.mxu1 %v2911_v3  ;;  %2241 = vmatpush1.bf16.msra.mxu1 %v3003_v25 }
  0x29   :  { %172 = vmatmul.mubr.f32.gmra.mrb[2].mxu0 %v2911_v3  ;;  %2243 = vmatprep.subr.bf16.mxu1 %v3028_v33 }
  0x2a   :  { %2213 = vmatpush1.bf16.msra.mxu0 %v2972_v14  ;;  %398 = vmatprep.mubr.f32.mxu0 %v2911_v3 }
  0x2b   :  { %2215 = vmatprep.subr.bf16.mxu0 %v2981_v17  ;;  %249 = vmatmul.mubr.f32.gmra.mrb[2].mxu1 %v2911_v3 }
  0x2c   :  { %2245 = vmatpush1.bf16.msra.mxu1 %v3039_v37  ;;  %475 = vmatprep.mubr.f32.mxu1 %v2911_v3 }
  0x2d   :  { %2247 = vmatprep.subr.bf16.mxu1 %v3063_v45 }
  0x2e   :  { %2217 = vmatpush1.bf16.msra.mxu0 %v3006_v26 }
  0x2f   :  { %2219 = vmatprep.subr.bf16.mxu0 %v3019_v30 }
  0x30   :  { %2249 = vmatpush1.bf16.msra.mxu1 %v3072_v48 }
  0x31   :  { %2251 = vmatprep.subr.bf16.mxu1 %v3084_v52 }
  0x32   :  { %2221 = vmatpush1.bf16.msra.mxu0 %v3055_v42 }
  0x33   :  { %2223 = vmatprep.subr.bf16.mxu0 %v3066_v46 }
  0x34   :  { %2253 = vmatpush1.bf16.msra.mxu1 %v3114_v62 }
  0x35   :  { %2255 = vmatprep.subr.bf16.mxu1 %v3120_v0 }
  0x36   :  { %2225 = vmatpush1.bf16.msra.mxu0 %v3093_v55 }
  0x37   :  { %2227 = vmatprep.subr.bf16.mxu0 %v3102_v58 }
  0x38   :  { %2257 = vmatpush1.bf16.msra.mxu1 %v3150_v15 }
  0x39   :  { %2259 = vmatprep.subr.bf16.mxu1 %v3156_v18 }
  0x3a   :  { %2229 = vmatpush1.bf16.msra.mxu0 %v3135_v7 }
  0x3b   :  { %2231 = vmatprep.subr.bf16.mxu0 %v3138_v10 }
  0x3c   :  { %2261 = vmatpush1.bf16.msra.mxu1 %v3183_v31 }
  0x3d   :  { %2263 = vmatprep.subr.bf16.mxu1 %v3186_v32 }
  0x3e   :  { %2233 = vmatpush1.bf16.msra.mxu0 %v3171_v24 }
  0x3f   :  { %2235 = vmatprep.subr.bf16.mxu0 %v3174_v27 }
  0x40   :  { %2265 = vmatpush1.bf16.msra.mxu1 %v3205_v40 }
  0x41   :  { %2267 = vmatprep.subr.bf16.mxu1 %v3208_v41 }
  0x42   :  { %2237 = vmatpush1.bf16.msra.mxu0 %v3201_v39 }
  0x43   :  { %2271 = vmatprep.subr.bf16.mxu0 %v2943_v4 }
  0x44   :  { %2269 = vmatpush1.bf16.msra.mxu1 %v3218_v47 }
  0x45   :  { %2303 = vmatprep.subr.bf16.mxu1 %v2995_v22 }
  0xf8   :  { %v167_v54 = vpop.f32.mrb[0].mxu0 }
  0xf9   :  { %v255_v57 = vadd.f32 %v167_v54, %v93_v50  ;;  %v169_v59 = vpop.f32.mrb[1].mxu0 }
  0xfa   :  { %v256_v61 = vadd.f32 %v169_v59, %v94_v51  ;;  %v244_v16 = vpop.f32.mrb[0].mxu1 }
  0xfb   :  { %v1973_v1 = vmul.f32 -1.442695, %v255_v57  ;;  %v246_v20 = vpop.f32.mrb[1].mxu1  ;;  %v257_v44 = vadd.f32 %v244_v16, %v95_v34 }
  0xfc   :  { %v1975_v5 = vmul.f32 -1.442695, %v256_v61  ;;  %v173_v6 = vpop.f32.mrb[2].mxu0  ;;  %v258_v23 = vadd.f32 %v246_v20, %v96_v2 }
  0xfd   :  { %2655 = vpow2.f32 %v1973_v1  ;;  %v259_v12 = vadd.f32 %v173_v6, %v97_v60  ;;  %v175_v13 = vpop.f32.mrb[3].mxu0 }
  0xfe   :  { %2657 = vpow2.f32 %v1975_v5  ;;  %v260_v19 = vadd.f32 %v175_v13, %v98_v63  ;;  %v250_v35 = vpop.f32.mrb[2].mxu1  ;;  %v1977_v38 = vmul.f32 -1.442695, %v258_v23 }
  0xff   :  { %v1974_v21 = vmul.f32 -1.442695, %v259_v12  ;;  %v252_v36 = vpop.f32.mrb[3].mxu1  ;;  %v261_v57 = vadd.f32 %v250_v35, %v99_v49 }
 0x100   :  { %v1976_v29 = vmul.f32 -1.442695, %v260_v19  ;;  %v262_v43 = vadd.f32 %v252_v36, %v100_v28 }
 0x101   :  { %2659 = vpow2.f32 %v1974_v21 }
 0x102   :  { %2661 = vpow2.f32 %v1976_v29  ;;  %v1978_v50 = vmul.f32 -1.442695, %v262_v43 }
 0x103   :  { %2663 = vpow2.f32 %v1977_v38 }
 0x104   :  { %2665 = vtanh.f32 %v257_v44 }
 0x105   :  { %2667 = vpow2.f32 %v1978_v50 }
 0x107   :  { %v2656_v51 = vpop.eup %2655 }
 0x108   :  { %v2658_v53 = vpop.eup %2657  ;;  %v269_v54 = vadd.f32 1.0, %v2656_v51 }
 0x109   :  { %v281_v59 = vadd.f32 1.0, %v2658_v53  ;;  %v1981_v53 = vld [vmem:[%s3663_s0 + $0x20] sm:$0xff] }
 0x10a   :  { %2669 = vrcp.f32 %v269_v54  ;;  %v326_v54 = vunpack.c.l.bf16 %v1981_v53 }
 0x10b   :  { %v2660_v60 = vpop.eup %2659  ;;  %2671 = vrcp.f32 %v281_v59  ;;  %v1983_v59 = vld [vmem:[%s3663_s0 + $0x30] sm:$0xff] }
 0x10c   :  { %v2662_v56 = vpop.eup %2661  ;;  %v270_v61 = vadd.f32 1.0, %v2660_v60  ;;  %2673 = vtanh.f32 %v261_v57  ;;  %v327_v57 = vunpack.c.h.bf16 %v1981_v53 }
 0x10d   :  { %v282_v63 = vadd.f32 1.0, %v2662_v56  ;;  %v2664_v1 = vpop.eup %2663 }
 0x10e   :  { %2675 = vrcp.f32 %v270_v61  ;;  %v2666_v2 = vpop.eup %2665  ;;  %v295_v11 = vadd.f32 1.0, %v2664_v1 }
 0x10f   :  { %2677 = vrcp.f32 %v282_v63  ;;  %v2668_v5 = vpop.eup %2667  ;;  %v1982_v63 = vld [vmem:[%s3663_s0 + $0x28] sm:$0xff] }
 0x110   :  { %2679 = vrcp.f32 %v295_v11  ;;  %v296_v23 = vadd.f32 1.0, %v2668_v5  ;;  %v330_v5 = vunpack.c.l.bf16 %v1983_v59  ;;  %v331_v11 = vunpack.c.h.bf16 %v1983_v59 }
 0x114   :  { %v2670_v6 = vpop.eup %2669 }
 0x115   :  { %v2672_v12 = vpop.eup %2671  ;;  %v303_v13 = vmul.f32 %v2670_v6, %v2666_v2 }
 0x116   :  { %v2674_v16 = vpop.eup %2673  ;;  %v301_v19 = vmul.f32 0.0, %v2672_v12 }
 0x118   :  { %v2676_v20 = vpop.eup %2675  ;;  %v3276_v21 = vadd.f32 %v303_v13, %v301_v19 }
 0x119   :  { %v2678_v28 = vpop.eup %2677  ;;  %v304_v29 = vmul.f32 %v2676_v20, %v2674_v16  ;;  %v329_v16 = vunpack.c.h.bf16 %v1982_v63 }
 0x11a   :  { %v302_v34 = vmul.f32 0.0, %v2678_v28  ;;  %2681 = vtanh.f32 %v3276_v21  ;;  %v2680_v36 = vpop.eup %2679  ;;  %v1984_v28 = vld [vmem:[%s3663_s0 + $0x38] sm:$0xff] }
 0x11b   :  { %2683 = vrcp.f32 %v296_v23 }
 0x11c   :  { %v3279_v35 = vadd.f32 %v304_v29, %v302_v34 }
 0x11e   :  { %2685 = vtanh.f32 %v3279_v35 }
 0x124   :  { %v2682_v38 = vpop.eup %2681 }
 0x125   :  { %v309_v43 = vmul.f32 %v2682_v38, %v2680_v36  ;;  %v2684_v44 = vpop.eup %2683 }
 0x127   :  { %399 = vmatmul.mubr.f32.vlgmr.msra.gmra.mrb[4].mxu0 %v309_v43  ;;  %476 = vmatmul.mubr.f32.vlgmr.msra.gmra.mrb[4].mxu1 %v309_v43 }
 0x128   :  { %v2686_v49 = vpop.eup %2685  ;;  %404 = vmatprep.mubr.f32.mxu0 %v2911_v3  ;;  %481 = vmatprep.mubr.f32.mxu1 %v2911_v3 }
 0x129   :  { %v310_v50 = vmul.f32 %v2686_v49, %v2684_v44  ;;  %2273 = vmatpush1.bf16.msra.mxu0 %v2954_v8  ;;  %2305 = vmatpush1.bf16.msra.mxu1 %v3003_v25  ;;  %v333_v49 = vunpack.c.h.bf16 %v1984_v28 }
 0x12a   :  { %2275 = vmatprep.subr.bf16.mxu0 %v2956_v9  ;;  %2307 = vmatprep.subr.bf16.mxu1 %v3028_v33 }
 0x12b   :  { %v2098_v51 = vpack.c.bf16 %v310_v50, %v309_v43  ;;  %405 = vmatmul.mubr.f32.gmra.mrb[6].mxu0 %v310_v50  ;;  %482 = vmatmul.mubr.f32.gmra.mrb[6].mxu1 %v310_v50  ;;  %v328_v50 = vunpack.c.l.bf16 %v1982_v63 }
 0x12c   :  { %632 = vmatprep.mubr.f32.mxu0 %v2911_v3  ;;  %709 = vmatprep.mubr.f32.mxu1 %v2911_v3 }
 0x12d   :  { %2099 = vst [vmem:[%s3664_s2] sm:$0xff] %v2098_v51   ;;  %2277 = vmatpush1.bf16.msra.mxu0 %v2972_v14  ;;  %2309 = vmatpush1.bf16.msra.mxu1 %v3039_v37 }
 0x12e   :  { %2279 = vmatprep.subr.bf16.mxu0 %v2981_v17  ;;  %2311 = vmatprep.subr.bf16.mxu1 %v3063_v45 }
 0x131   :  { %2281 = vmatpush1.bf16.msra.mxu0 %v3006_v26  ;;  %2313 = vmatpush1.bf16.msra.mxu1 %v3072_v48 }
 0x132   :  { %2283 = vmatprep.subr.bf16.mxu0 %v3019_v30  ;;  %2315 = vmatprep.subr.bf16.mxu1 %v3084_v52 }
 0x135   :  { %2285 = vmatpush1.bf16.msra.mxu0 %v3055_v42  ;;  %2317 = vmatpush1.bf16.msra.mxu1 %v3114_v62 }
 0x136   :  { %2287 = vmatprep.subr.bf16.mxu0 %v3066_v46  ;;  %2319 = vmatprep.subr.bf16.mxu1 %v3120_v0 }
 0x139   :  { %2289 = vmatpush1.bf16.msra.mxu0 %v3093_v55  ;;  %2321 = vmatpush1.bf16.msra.mxu1 %v3150_v15 }
 0x13a   :  { %2291 = vmatprep.subr.bf16.mxu0 %v3102_v58  ;;  %2323 = vmatprep.subr.bf16.mxu1 %v3156_v18 }
 0x13d   :  { %2293 = vmatpush1.bf16.msra.mxu0 %v3135_v7  ;;  %2325 = vmatpush1.bf16.msra.mxu1 %v3183_v31 }
 0x13e   :  { %2295 = vmatprep.subr.bf16.mxu0 %v3138_v10  ;;  %2327 = vmatprep.subr.bf16.mxu1 %v3186_v32 }
 0x141   :  { %2297 = vmatpush1.bf16.msra.mxu0 %v3171_v24  ;;  %2329 = vmatpush1.bf16.msra.mxu1 %v3205_v40 }
 0x142   :  { %2299 = vmatprep.subr.bf16.mxu0 %v3174_v27  ;;  %2331 = vmatprep.subr.bf16.mxu1 %v3208_v41 }
 0x145   :  { %2301 = vmatpush1.bf16.msra.mxu0 %v3201_v39  ;;  %2333 = vmatpush1.bf16.msra.mxu1 %v3218_v47 }
 0x146   :  { %2335 = vmatprep.subr.bf16.mxu0 %v2943_v4  ;;  %2367 = vmatprep.subr.bf16.mxu1 %v2995_v22 }
 0x1fa   :  { %v400_v60 = vpop.f32.mrb[4].mxu0  ;;  %v477_v56 = vpop.f32.mrb[4].mxu1 }
 0x1fb   :  { %v488_v61 = vadd.f32 %v400_v60, %v326_v54  ;;  %v402_v1 = vpop.f32.mrb[5].mxu0  ;;  %v479_v2 = vpop.f32.mrb[5].mxu1  ;;  %v490_v54 = vadd.f32 %v477_v56, %v328_v50 }
 0x1fc   :  { %v489_v6 = vadd.f32 %v402_v1, %v327_v57  ;;  %v491_v43 = vadd.f32 %v479_v2, %v329_v16  ;;  %v332_v57 = vunpack.c.l.bf16 %v1984_v28 }
 0x1fd   :  { %v1985_v12 = vmul.f32 -1.442695, %v488_v61 }
 0x1fe   :  { %v1987_v13 = vmul.f32 -1.442695, %v489_v6  ;;  %v406_v19 = vpop.f32.mrb[6].mxu0  ;;  %v483_v20 = vpop.f32.mrb[6].mxu1  ;;  %v1989_v51 = vmul.f32 -1.442695, %v491_v43 }
 0x1ff   :  { %2687 = vpow2.f32 %v1985_v12  ;;  %v492_v23 = vadd.f32 %v406_v19, %v330_v5  ;;  %v408_v29 = vpop.f32.mrb[7].mxu0  ;;  %v485_v34 = vpop.f32.mrb[7].mxu1  ;;  %v494_v6 = vadd.f32 %v483_v20, %v332_v57 }
 0x200   :  { %2689 = vpow2.f32 %v1987_v13  ;;  %v493_v36 = vadd.f32 %v408_v29, %v331_v11  ;;  %v495_v53 = vadd.f32 %v485_v34, %v333_v49 }
 0x201   :  { %v1986_v38 = vmul.f32 -1.442695, %v492_v23 }
 0x202   :  { %v1988_v44 = vmul.f32 -1.442695, %v493_v36  ;;  %v1990_v1 = vmul.f32 -1.442695, %v495_v53 }
 0x203   :  { %2691 = vpow2.f32 %v1986_v38 }
 0x204   :  { %2693 = vpow2.f32 %v1988_v44 }
 0x205   :  { %2695 = vpow2.f32 %v1989_v51 }
 0x206   :  { %2697 = vtanh.f32 %v490_v54 }
 0x209   :  { %v2688_v59 = vpop.eup %2687 }
 0x20a   :  { %v2690_v60 = vpop.eup %2689  ;;  %v502_v61 = vadd.f32 1.0, %v2688_v59 }
 0x20b   :  { %v514_v5 = vadd.f32 1.0, %v2690_v60 }
 0x20c   :  { %2699 = vrcp.f32 %v502_v61  ;;  %v1995_v61 = vld [vmem:[%s3663_s0 + $0x40] sm:$0xff] }
 0x20d   :  { %v2692_v11 = vpop.eup %2691  ;;  %2701 = vrcp.f32 %v514_v5  ;;  %v561_v5 = vunpack.c.h.bf16 %v1995_v61 }
 0x20e   :  { %v2694_v2 = vpop.eup %2693  ;;  %v503_v12 = vadd.f32 1.0, %v2692_v11  ;;  %2703 = vpow2.f32 %v1990_v1  ;;  %v560_v1 = vunpack.c.l.bf16 %v1995_v61 }
 0x20f   :  { %2705 = vtanh.f32 %v494_v6  ;;  %v515_v63 = vadd.f32 1.0, %v2694_v2  ;;  %v2696_v56 = vpop.eup %2695  ;;  %v1997_v6 = vld [vmem:[%s3663_s0 + $0x50] sm:$0xff] }
 0x210   :  { %2707 = vrcp.f32 %v503_v12  ;;  %v2698_v13 = vpop.eup %2697  ;;  %v528_v28 = vadd.f32 1.0, %v2696_v56 }
 0x211   :  { %2709 = vrcp.f32 %v515_v63  ;;  %v1996_v63 = vld [vmem:[%s3663_s0 + $0x48] sm:$0xff] }
 0x212   :  { %2711 = vrcp.f32 %v528_v28 }
 0x216   :  { %v2700_v16 = vpop.eup %2699 }
 0x217   :  { %v2702_v19 = vpop.eup %2701  ;;  %v536_v23 = vmul.f32 %v2700_v16, %v2698_v13  ;;  %v564_v16 = vunpack.c.l.bf16 %v1997_v6 }
 0x218   :  { %v2704_v29 = vpop.eup %2703  ;;  %v534_v34 = vmul.f32 %v2702_v19, %v3276_v21 }
 0x219   :  { %v2706_v20 = vpop.eup %2705  ;;  %v529_v49 = vadd.f32 1.0, %v2704_v29 }
 0x21a   :  { %v2708_v36 = vpop.eup %2707  ;;  %v3334_v38 = vadd.f32 %v536_v23, %v534_v34  ;;  %v565_v23 = vunpack.c.h.bf16 %v1997_v6  ;;  %v563_v34 = vunpack.c.h.bf16 %v1996_v63 }
 0x21b   :  { %v2710_v43 = vpop.eup %2709  ;;  %v537_v44 = vmul.f32 %v2708_v36, %v2706_v20 }
 0x21c   :  { %2713 = vtanh.f32 %v3334_v38  ;;  %v535_v50 = vmul.f32 %v2710_v43, %v3279_v35  ;;  %v2712_v53 = vpop.eup %2711 }
 0x21d   :  { %2715 = vrcp.f32 %v529_v49 }
 0x21e   :  { %v3338_v51 = vadd.f32 %v537_v44, %v535_v50  ;;  %v1998_v44 = vld [vmem:[%s3663_s0 + $0x58] sm:$0xff] }
 0x220   :  { %2717 = vtanh.f32 %v3338_v51 }
 0x226   :  { %v2714_v54 = vpop.eup %2713 }
 0x227   :  { %v542_v21 = vmul.f32 %v2714_v54, %v2712_v53  ;;  %v2716_v57 = vpop.eup %2715 }
 0x229   :  { %633 = vmatmul.mubr.f32.vlgmr.msra.gmra.mrb[8].mxu0 %v542_v21  ;;  %710 = vmatmul.mubr.f32.vlgmr.msra.gmra.mrb[8].mxu1 %v542_v21 }
 0x22a   :  { %v2718_v59 = vpop.eup %2717  ;;  %638 = vmatprep.mubr.f32.mxu0 %v2911_v3  ;;  %715 = vmatprep.mubr.f32.mxu1 %v2911_v3 }
 0x22b   :  { %v543_v60 = vmul.f32 %v2718_v59, %v2716_v57  ;;  %2337 = vmatpush1.bf16.msra.mxu0 %v2954_v8  ;;  %2369 = vmatpush1.bf16.msra.mxu1 %v3003_v25  ;;  %v567_v59 = vunpack.c.h.bf16 %v1998_v44 }
 0x22c   :  { %2339 = vmatprep.subr.bf16.mxu0 %v2956_v9  ;;  %2371 = vmatprep.subr.bf16.mxu1 %v3028_v33 }
 0x22d   :  { %v2103_v35 = vpack.c.bf16 %v543_v60, %v542_v21  ;;  %639 = vmatmul.mubr.f32.gmra.mrb[10].mxu0 %v543_v60  ;;  %716 = vmatmul.mubr.f32.gmra.mrb[10].mxu1 %v543_v60  ;;  %v562_v60 = vunpack.c.l.bf16 %v1996_v63 }
 0x22e   :  { %866 = vmatprep.mubr.f32.mxu0 %v2911_v3  ;;  %943 = vmatprep.mubr.f32.mxu1 %v2911_v3 }
 0x22f   :  { %2135 = vst [vmem:[%s3664_s2 + $0x8] sm:$0xff] %v2103_v35   ;;  %2341 = vmatpush1.bf16.msra.mxu0 %v2972_v14  ;;  %2373 = vmatpush1.bf16.msra.mxu1 %v3039_v37 }
 0x230   :  { %2343 = vmatprep.subr.bf16.mxu0 %v2981_v17  ;;  %2375 = vmatprep.subr.bf16.mxu1 %v3063_v45 }
 0x233   :  { %2345 = vmatpush1.bf16.msra.mxu0 %v3006_v26  ;;  %2377 = vmatpush1.bf16.msra.mxu1 %v3072_v48 }
 0x234   :  { %2347 = vmatprep.subr.bf16.mxu0 %v3019_v30  ;;  %2379 = vmatprep.subr.bf16.mxu1 %v3084_v52 }
 0x237   :  { %2349 = vmatpush1.bf16.msra.mxu0 %v3055_v42  ;;  %2381 = vmatpush1.bf16.msra.mxu1 %v3114_v62 }
 0x238   :  { %2351 = vmatprep.subr.bf16.mxu0 %v3066_v46  ;;  %2383 = vmatprep.subr.bf16.mxu1 %v3120_v0 }
 0x23b   :  { %2353 = vmatpush1.bf16.msra.mxu0 %v3093_v55  ;;  %2385 = vmatpush1.bf16.msra.mxu1 %v3150_v15 }
 0x23c   :  { %2355 = vmatprep.subr.bf16.mxu0 %v3102_v58  ;;  %2387 = vmatprep.subr.bf16.mxu1 %v3156_v18 }
 0x23f   :  { %2357 = vmatpush1.bf16.msra.mxu0 %v3135_v7  ;;  %2389 = vmatpush1.bf16.msra.mxu1 %v3183_v31 }
 0x240   :  { %2359 = vmatprep.subr.bf16.mxu0 %v3138_v10  ;;  %2391 = vmatprep.subr.bf16.mxu1 %v3186_v32 }
 0x243   :  { %2361 = vmatpush1.bf16.msra.mxu0 %v3171_v24  ;;  %2393 = vmatpush1.bf16.msra.mxu1 %v3205_v40 }
 0x244   :  { %2363 = vmatprep.subr.bf16.mxu0 %v3174_v27  ;;  %2395 = vmatprep.subr.bf16.mxu1 %v3208_v41 }
 0x247   :  { %2365 = vmatpush1.bf16.msra.mxu0 %v3201_v39  ;;  %2397 = vmatpush1.bf16.msra.mxu1 %v3218_v47 }
 0x248   :  { %2399 = vmatprep.subr.bf16.mxu0 %v2943_v4  ;;  %2431 = vmatprep.subr.bf16.mxu1 %v2995_v22 }
 0x2fc   :  { %v634_v11 = vpop.f32.mrb[8].mxu0  ;;  %v711_v2 = vpop.f32.mrb[8].mxu1 }
 0x2fd   :  { %v722_v12 = vadd.f32 %v634_v11, %v560_v1  ;;  %v636_v56 = vpop.f32.mrb[9].mxu0  ;;  %v713_v13 = vpop.f32.mrb[9].mxu1  ;;  %v724_v1 = vadd.f32 %v711_v2, %v562_v60 }
 0x2fe   :  { %v723_v19 = vadd.f32 %v636_v56, %v561_v5  ;;  %v725_v21 = vadd.f32 %v713_v13, %v563_v34  ;;  %v566_v5 = vunpack.c.l.bf16 %v1998_v44 }
 0x2ff   :  { %v1999_v28 = vmul.f32 -1.442695, %v722_v12 }
 0x300   :  { %v2001_v29 = vmul.f32 -1.442695, %v723_v19  ;;  %v640_v20 = vpop.f32.mrb[10].mxu0  ;;  %v717_v36 = vpop.f32.mrb[10].mxu1  ;;  %v2003_v35 = vmul.f32 -1.442695, %v725_v21 }
 0x301   :  { %2719 = vpow2.f32 %v1999_v28  ;;  %v726_v43 = vadd.f32 %v640_v20, %v564_v16  ;;  %v642_v49 = vpop.f32.mrb[11].mxu0  ;;  %v719_v50 = vpop.f32.mrb[11].mxu1  ;;  %v728_v19 = vadd.f32 %v717_v36, %v566_v5 }
 0x302   :  { %2721 = vpow2.f32 %v2001_v29  ;;  %v727_v53 = vadd.f32 %v642_v49, %v565_v23  ;;  %v729_v61 = vadd.f32 %v719_v50, %v567_v59 }
 0x303   :  { %v2000_v54 = vmul.f32 -1.442695, %v726_v43 }
 0x304   :  { %v2002_v57 = vmul.f32 -1.442695, %v727_v53  ;;  %v2004_v56 = vmul.f32 -1.442695, %v729_v61 }
 0x305   :  { %2723 = vpow2.f32 %v2000_v54 }
 0x306   :  { %2725 = vpow2.f32 %v2002_v57 }
 0x307   :  { %2727 = vpow2.f32 %v2003_v35 }
 0x308   :  { %2729 = vtanh.f32 %v724_v1 }
 0x30b   :  { %v2720_v6 = vpop.eup %2719 }
 0x30c   :  { %v2722_v11 = vpop.eup %2721  ;;  %v736_v12 = vadd.f32 1.0, %v2720_v6 }
 0x30d   :  { %v748_v16 = vadd.f32 1.0, %v2722_v11 }
 0x30e   :  { %2731 = vrcp.f32 %v736_v12  ;;  %v2009_v12 = vld [vmem:[%s3663_s0 + $0x60] sm:$0xff] }
 0x30f   :  { %v2724_v23 = vpop.eup %2723  ;;  %2733 = vrcp.f32 %v748_v16  ;;  %v795_v16 = vunpack.c.h.bf16 %v2009_v12 }
 0x310   :  { %v2726_v13 = vpop.eup %2725  ;;  %v737_v28 = vadd.f32 1.0, %v2724_v23  ;;  %2735 = vpow2.f32 %v2004_v56  ;;  %v794_v56 = vunpack.c.l.bf16 %v2009_v12 }
 0x311   :  { %2737 = vtanh.f32 %v728_v19  ;;  %v749_v63 = vadd.f32 1.0, %v2726_v13  ;;  %v2728_v2 = vpop.eup %2727  ;;  %v2011_v19 = vld [vmem:[%s3663_s0 + $0x70] sm:$0xff] }
 0x312   :  { %2739 = vrcp.f32 %v737_v28  ;;  %v2730_v29 = vpop.eup %2729  ;;  %v762_v44 = vadd.f32 1.0, %v2728_v2 }
 0x313   :  { %2741 = vrcp.f32 %v749_v63  ;;  %v2010_v63 = vld [vmem:[%s3663_s0 + $0x68] sm:$0xff] }
 0x314   :  { %2743 = vrcp.f32 %v762_v44 }
 0x318   :  { %v2732_v34 = vpop.eup %2731 }
 0x319   :  { %v2734_v20 = vpop.eup %2733  ;;  %v770_v43 = vmul.f32 %v2732_v34, %v2730_v29  ;;  %v798_v34 = vunpack.c.l.bf16 %v2011_v19 }
 0x31a   :  { %v2736_v49 = vpop.eup %2735  ;;  %v768_v50 = vmul.f32 %v2734_v20, %v3334_v38 }
 0x31b   :  { %v2738_v36 = vpop.eup %2737  ;;  %v763_v59 = vadd.f32 1.0, %v2736_v49 }
 0x31c   :  { %v2740_v53 = vpop.eup %2739  ;;  %v3393_v54 = vadd.f32 %v770_v43, %v768_v50  ;;  %v799_v43 = vunpack.c.h.bf16 %v2011_v19  ;;  %v797_v50 = vunpack.c.h.bf16 %v2010_v63 }
 0x31d   :  { %v2742_v21 = vpop.eup %2741  ;;  %v771_v57 = vmul.f32 %v2740_v53, %v2738_v36 }
 0x31e   :  { %2745 = vtanh.f32 %v3393_v54  ;;  %v769_v60 = vmul.f32 %v2742_v21, %v3338_v51  ;;  %v2744_v61 = vpop.eup %2743 }
 0x31f   :  { %2747 = vrcp.f32 %v763_v59 }
 0x320   :  { %v3397_v35 = vadd.f32 %v771_v57, %v769_v60  ;;  %v2012_v57 = vld [vmem:[%s3663_s0 + $0x78] sm:$0xff] }
 0x322   :  { %2749 = vtanh.f32 %v3397_v35 }
 0x328   :  { %v2746_v1 = vpop.eup %2745 }
 0x329   :  { %v776_v38 = vmul.f32 %v2746_v1, %v2744_v61  ;;  %v2748_v5 = vpop.eup %2747 }
 0x32b   :  { %867 = vmatmul.mubr.f32.vlgmr.msra.gmra.mrb[12].mxu0 %v776_v38  ;;  %944 = vmatmul.mubr.f32.vlgmr.msra.gmra.mrb[12].mxu1 %v776_v38 }
 0x32c   :  { %v2750_v6 = vpop.eup %2749  ;;  %872 = vmatprep.mubr.f32.mxu0 %v2911_v3  ;;  %949 = vmatprep.mubr.f32.mxu1 %v2911_v3 }
 0x32d   :  { %v777_v11 = vmul.f32 %v2750_v6, %v2748_v5  ;;  %2401 = vmatpush1.bf16.msra.mxu0 %v2954_v8  ;;  %2433 = vmatpush1.bf16.msra.mxu1 %v3003_v25  ;;  %v801_v6 = vunpack.c.h.bf16 %v2012_v57 }
 0x32e   :  { %2403 = vmatprep.subr.bf16.mxu0 %v2956_v9  ;;  %2435 = vmatprep.subr.bf16.mxu1 %v3028_v33 }
 0x32f   :  { %v2108_v51 = vpack.c.bf16 %v777_v11, %v776_v38  ;;  %873 = vmatmul.mubr.f32.gmra.mrb[14].mxu0 %v777_v11  ;;  %950 = vmatmul.mubr.f32.gmra.mrb[14].mxu1 %v777_v11  ;;  %v796_v11 = vunpack.c.l.bf16 %v2010_v63 }
 0x330   :  { %1100 = vmatprep.mubr.f32.mxu0 %v2911_v3  ;;  %1177 = vmatprep.mubr.f32.mxu1 %v2911_v3 }
 0x331   :  { %2136 = vst [vmem:[%s3664_s2 + $0x10] sm:$0xff] %v2108_v51   ;;  %2405 = vmatpush1.bf16.msra.mxu0 %v2972_v14  ;;  %2437 = vmatpush1.bf16.msra.mxu1 %v3039_v37 }
 0x332   :  { %2407 = vmatprep.subr.bf16.mxu0 %v2981_v17  ;;  %2439 = vmatprep.subr.bf16.mxu1 %v3063_v45 }
 0x335   :  { %2409 = vmatpush1.bf16.msra.mxu0 %v3006_v26  ;;  %2441 = vmatpush1.bf16.msra.mxu1 %v3072_v48 }
 0x336   :  { %2411 = vmatprep.subr.bf16.mxu0 %v3019_v30  ;;  %2443 = vmatprep.subr.bf16.mxu1 %v3084_v52 }
 0x339   :  { %2413 = vmatpush1.bf16.msra.mxu0 %v3055_v42  ;;  %2445 = vmatpush1.bf16.msra.mxu1 %v3114_v62 }
 0x33a   :  { %2415 = vmatprep.subr.bf16.mxu0 %v3066_v46  ;;  %2447 = vmatprep.subr.bf16.mxu1 %v3120_v0 }
 0x33d   :  { %2417 = vmatpush1.bf16.msra.mxu0 %v3093_v55  ;;  %2449 = vmatpush1.bf16.msra.mxu1 %v3150_v15 }
 0x33e   :  { %2419 = vmatprep.subr.bf16.mxu0 %v3102_v58  ;;  %2451 = vmatprep.subr.bf16.mxu1 %v3156_v18 }
 0x341   :  { %2421 = vmatpush1.bf16.msra.mxu0 %v3135_v7  ;;  %2453 = vmatpush1.bf16.msra.mxu1 %v3183_v31 }
 0x342   :  { %2423 = vmatprep.subr.bf16.mxu0 %v3138_v10  ;;  %2455 = vmatprep.subr.bf16.mxu1 %v3186_v32 }
 0x345   :  { %2425 = vmatpush1.bf16.msra.mxu0 %v3171_v24  ;;  %2457 = vmatpush1.bf16.msra.mxu1 %v3205_v40 }
 0x346   :  { %2427 = vmatprep.subr.bf16.mxu0 %v3174_v27  ;;  %2459 = vmatprep.subr.bf16.mxu1 %v3208_v41 }
 0x349   :  { %2429 = vmatpush1.bf16.msra.mxu0 %v3201_v39  ;;  %2461 = vmatpush1.bf16.msra.mxu1 %v3218_v47 }
 0x34a   :  { %2463 = vmatprep.subr.bf16.mxu0 %v2943_v4  ;;  %2495 = vmatprep.subr.bf16.mxu1 %v2995_v22 }
 0x3fe   :  { %v868_v23 = vpop.f32.mrb[12].mxu0  ;;  %v945_v13 = vpop.f32.mrb[12].mxu1 }
 0x3ff   :  { %v956_v28 = vadd.f32 %v868_v23, %v794_v56  ;;  %v870_v2 = vpop.f32.mrb[13].mxu0  ;;  %v947_v29 = vpop.f32.mrb[13].mxu1  ;;  %v958_v56 = vadd.f32 %v945_v13, %v796_v11 }
 0x400   :  { %v957_v20 = vadd.f32 %v870_v2, %v795_v16  ;;  %v959_v38 = vadd.f32 %v947_v29, %v797_v50  ;;  %v800_v16 = vunpack.c.l.bf16 %v2012_v57 }
 0x401   :  { %v2013_v44 = vmul.f32 -1.442695, %v956_v28 }
 0x402   :  { %v2015_v49 = vmul.f32 -1.442695, %v957_v20  ;;  %v874_v36 = vpop.f32.mrb[14].mxu0  ;;  %v951_v53 = vpop.f32.mrb[14].mxu1  ;;  %v2017_v51 = vmul.f32 -1.442695, %v959_v38 }
 0x403   :  { %2751 = vpow2.f32 %v2013_v44  ;;  %v960_v21 = vadd.f32 %v874_v36, %v798_v34  ;;  %v876_v59 = vpop.f32.mrb[15].mxu0  ;;  %v953_v60 = vpop.f32.mrb[15].mxu1  ;;  %v962_v20 = vadd.f32 %v951_v53, %v800_v16 }
 0x404   :  { %2753 = vpow2.f32 %v2015_v49  ;;  %v961_v61 = vadd.f32 %v876_v59, %v799_v43  ;;  %v963_v12 = vadd.f32 %v953_v60, %v801_v6 }
 0x405   :  { %v2014_v1 = vmul.f32 -1.442695, %v960_v21 }
 0x406   :  { %v2016_v5 = vmul.f32 -1.442695, %v961_v61  ;;  %v2018_v2 = vmul.f32 -1.442695, %v963_v12 }
 0x407   :  { %2755 = vpow2.f32 %v2014_v1 }
 0x408   :  { %2757 = vpow2.f32 %v2016_v5 }
 0x409   :  { %2759 = vpow2.f32 %v2017_v51 }
 0x40a   :  { %2761 = vtanh.f32 %v958_v56 }
 0x40d   :  { %v2752_v19 = vpop.eup %2751 }
 0x40e   :  { %v2754_v23 = vpop.eup %2753  ;;  %v970_v28 = vadd.f32 1.0, %v2752_v19 }
 0x40f   :  { %v982_v34 = vadd.f32 1.0, %v2754_v23 }
 0x410   :  { %2763 = vrcp.f32 %v970_v28  ;;  %v2023_v28 = vld [vmem:[%s3663_s0 + $0x80] sm:$0xff] }
 0x411   :  { %v2756_v43 = vpop.eup %2755  ;;  %2765 = vrcp.f32 %v982_v34  ;;  %v1029_v34 = vunpack.c.h.bf16 %v2023_v28 }
 0x412   :  { %v2758_v29 = vpop.eup %2757  ;;  %v971_v44 = vadd.f32 1.0, %v2756_v43  ;;  %2767 = vpow2.f32 %v2018_v2  ;;  %v1028_v2 = vunpack.c.l.bf16 %v2023_v28 }
 0x413   :  { %2769 = vtanh.f32 %v962_v20  ;;  %v983_v63 = vadd.f32 1.0, %v2758_v29  ;;  %v2760_v13 = vpop.eup %2759  ;;  %v2025_v20 = vld [vmem:[%s3663_s0 + $0x90] sm:$0xff] }
 0x414   :  { %2771 = vrcp.f32 %v971_v44  ;;  %v2762_v49 = vpop.eup %2761  ;;  %v996_v57 = vadd.f32 1.0, %v2760_v13 }
 0x415   :  { %2773 = vrcp.f32 %v983_v63  ;;  %v2024_v63 = vld [vmem:[%s3663_s0 + $0x88] sm:$0xff] }
 0x416   :  { %2775 = vrcp.f32 %v996_v57 }
 0x41a   :  { %v2764_v50 = vpop.eup %2763 }
 0x41b   :  { %v2766_v36 = vpop.eup %2765  ;;  %v1004_v21 = vmul.f32 %v2764_v50, %v2762_v49  ;;  %v1032_v50 = vunpack.c.l.bf16 %v2025_v20 }
 0x41c   :  { %v2768_v59 = vpop.eup %2767  ;;  %v1002_v60 = vmul.f32 %v2766_v36, %v3393_v54 }
 0x41d   :  { %v2770_v53 = vpop.eup %2769  ;;  %v997_v6 = vadd.f32 1.0, %v2768_v59 }
 0x41e   :  { %v2772_v61 = vpop.eup %2771  ;;  %v3452_v1 = vadd.f32 %v1004_v21, %v1002_v60  ;;  %v1033_v21 = vunpack.c.h.bf16 %v2025_v20  ;;  %v1031_v60 = vunpack.c.h.bf16 %v2024_v63 }
 0x41f   :  { %v2774_v38 = vpop.eup %2773  ;;  %v1005_v5 = vmul.f32 %v2772_v61, %v2770_v53 }
 0x420   :  { %2777 = vtanh.f32 %v3452_v1  ;;  %v1003_v11 = vmul.f32 %v2774_v38, %v3397_v35  ;;  %v2776_v12 = vpop.eup %2775 }
 0x421   :  { %2779 = vrcp.f32 %v997_v6 }
 0x422   :  { %v3456_v51 = vadd.f32 %v1005_v5, %v1003_v11  ;;  %v2026_v5 = vld [vmem:[%s3663_s0 + $0x98] sm:$0xff] }
 0x424   :  { %2781 = vtanh.f32 %v3456_v51 }
 0x42a   :  { %v2778_v56 = vpop.eup %2777 }
 0x42b   :  { %v1010_v54 = vmul.f32 %v2778_v56, %v2776_v12  ;;  %v2780_v16 = vpop.eup %2779 }
 0x42d   :  { %1101 = vmatmul.mubr.f32.vlgmr.msra.gmra.mrb[16].mxu0 %v1010_v54  ;;  %1178 = vmatmul.mubr.f32.vlgmr.msra.gmra.mrb[16].mxu1 %v1010_v54 }
 0x42e   :  { %v2782_v19 = vpop.eup %2781  ;;  %1106 = vmatprep.mubr.f32.mxu0 %v2911_v3  ;;  %1183 = vmatprep.mubr.f32.mxu1 %v2911_v3 }
 0x42f   :  { %v1011_v23 = vmul.f32 %v2782_v19, %v2780_v16  ;;  %2465 = vmatpush1.bf16.msra.mxu0 %v2954_v8  ;;  %2497 = vmatpush1.bf16.msra.mxu1 %v3003_v25  ;;  %v1035_v19 = vunpack.c.h.bf16 %v2026_v5 }
 0x430   :  { %2467 = vmatprep.subr.bf16.mxu0 %v2956_v9  ;;  %2499 = vmatprep.subr.bf16.mxu1 %v3028_v33 }
 0x431   :  { %v2113_v35 = vpack.c.bf16 %v1011_v23, %v1010_v54  ;;  %1107 = vmatmul.mubr.f32.gmra.mrb[18].mxu0 %v1011_v23  ;;  %1184 = vmatmul.mubr.f32.gmra.mrb[18].mxu1 %v1011_v23  ;;  %v1030_v23 = vunpack.c.l.bf16 %v2024_v63 }
 0x432   :  { %1334 = vmatprep.mubr.f32.mxu0 %v2911_v3  ;;  %1411 = vmatprep.mubr.f32.mxu1 %v2911_v3 }
 0x433   :  { %2137 = vst [vmem:[%s3664_s2 + $0x18] sm:$0xff] %v2113_v35   ;;  %2469 = vmatpush1.bf16.msra.mxu0 %v2972_v14  ;;  %2501 = vmatpush1.bf16.msra.mxu1 %v3039_v37 }
 0x434   :  { %2471 = vmatprep.subr.bf16.mxu0 %v2981_v17  ;;  %2503 = vmatprep.subr.bf16.mxu1 %v3063_v45 }
 0x437   :  { %2473 = vmatpush1.bf16.msra.mxu0 %v3006_v26  ;;  %2505 = vmatpush1.bf16.msra.mxu1 %v3072_v48 }
 0x438   :  { %2475 = vmatprep.subr.bf16.mxu0 %v3019_v30  ;;  %2507 = vmatprep.subr.bf16.mxu1 %v3084_v52 }
 0x43b   :  { %2477 = vmatpush1.bf16.msra.mxu0 %v3055_v42  ;;  %2509 = vmatpush1.bf16.msra.mxu1 %v3114_v62 }
 0x43c   :  { %2479 = vmatprep.subr.bf16.mxu0 %v3066_v46  ;;  %2511 = vmatprep.subr.bf16.mxu1 %v3120_v0 }
 0x43f   :  { %2481 = vmatpush1.bf16.msra.mxu0 %v3093_v55  ;;  %2513 = vmatpush1.bf16.msra.mxu1 %v3150_v15 }
 0x440   :  { %2483 = vmatprep.subr.bf16.mxu0 %v3102_v58  ;;  %2515 = vmatprep.subr.bf16.mxu1 %v3156_v18 }
 0x443   :  { %2485 = vmatpush1.bf16.msra.mxu0 %v3135_v7  ;;  %2517 = vmatpush1.bf16.msra.mxu1 %v3183_v31 }
 0x444   :  { %2487 = vmatprep.subr.bf16.mxu0 %v3138_v10  ;;  %2519 = vmatprep.subr.bf16.mxu1 %v3186_v32 }
 0x447   :  { %2489 = vmatpush1.bf16.msra.mxu0 %v3171_v24  ;;  %2521 = vmatpush1.bf16.msra.mxu1 %v3205_v40 }
 0x448   :  { %2491 = vmatprep.subr.bf16.mxu0 %v3174_v27  ;;  %2523 = vmatprep.subr.bf16.mxu1 %v3208_v41 }
 0x44b   :  { %2493 = vmatpush1.bf16.msra.mxu0 %v3201_v39  ;;  %2525 = vmatpush1.bf16.msra.mxu1 %v3218_v47 }
 0x44c   :  { %2527 = vmatprep.subr.bf16.mxu0 %v2943_v4  ;;  %2559 = vmatprep.subr.bf16.mxu1 %v2995_v22 }
 0x500   :  { %v1102_v43 = vpop.f32.mrb[16].mxu0  ;;  %v1179_v29 = vpop.f32.mrb[16].mxu1 }
 0x501   :  { %v1190_v44 = vadd.f32 %v1102_v43, %v1028_v2  ;;  %v1104_v13 = vpop.f32.mrb[17].mxu0  ;;  %v1181_v49 = vpop.f32.mrb[17].mxu1  ;;  %v1192_v2 = vadd.f32 %v1179_v29, %v1030_v23 }
 0x502   :  { %v1191_v36 = vadd.f32 %v1104_v13, %v1029_v34  ;;  %v1193_v54 = vadd.f32 %v1181_v49, %v1031_v60  ;;  %v1034_v34 = vunpack.c.l.bf16 %v2026_v5 }
 0x503   :  { %v2027_v57 = vmul.f32 -1.442695, %v1190_v44 }
 0x504   :  { %v2029_v59 = vmul.f32 -1.442695, %v1191_v36  ;;  %v1108_v53 = vpop.f32.mrb[18].mxu0  ;;  %v1185_v61 = vpop.f32.mrb[18].mxu1  ;;  %v2031_v35 = vmul.f32 -1.442695, %v1193_v54 }
 0x505   :  { %2783 = vpow2.f32 %v2027_v57  ;;  %v1194_v38 = vadd.f32 %v1108_v53, %v1032_v50  ;;  %v1110_v6 = vpop.f32.mrb[19].mxu0  ;;  %v1187_v11 = vpop.f32.mrb[19].mxu1  ;;  %v1196_v36 = vadd.f32 %v1185_v61, %v1034_v34 }
 0x506   :  { %2785 = vpow2.f32 %v2029_v59  ;;  %v1195_v12 = vadd.f32 %v1110_v6, %v1033_v21  ;;  %v1197_v28 = vadd.f32 %v1187_v11, %v1035_v19 }
 0x507   :  { %v2028_v56 = vmul.f32 -1.442695, %v1194_v38 }
 0x508   :  { %v2030_v16 = vmul.f32 -1.442695, %v1195_v12  ;;  %v2032_v13 = vmul.f32 -1.442695, %v1197_v28 }
 0x509   :  { %2787 = vpow2.f32 %v2028_v56 }
 0x50a   :  { %2789 = vpow2.f32 %v2030_v16 }
 0x50b   :  { %2791 = vpow2.f32 %v2031_v35 }
 0x50c   :  { %2793 = vtanh.f32 %v1192_v2 }
 0x50f   :  { %v2784_v20 = vpop.eup %2783 }
 0x510   :  { %v2786_v43 = vpop.eup %2785  ;;  %v1204_v44 = vadd.f32 1.0, %v2784_v20 }
 0x511   :  { %v1216_v50 = vadd.f32 1.0, %v2786_v43 }
 0x512   :  { %2795 = vrcp.f32 %v1204_v44  ;;  %v2037_v44 = vld [vmem:[%s3663_s0 + $0xa0] sm:$0xff] }
 0x513   :  { %v2788_v21 = vpop.eup %2787  ;;  %2797 = vrcp.f32 %v1216_v50  ;;  %v1263_v50 = vunpack.c.h.bf16 %v2037_v44 }
 0x514   :  { %v2790_v49 = vpop.eup %2789  ;;  %v1205_v57 = vadd.f32 1.0, %v2788_v21  ;;  %2799 = vpow2.f32 %v2032_v13  ;;  %v1262_v13 = vunpack.c.l.bf16 %v2037_v44 }
 0x515   :  { %2801 = vtanh.f32 %v1196_v36  ;;  %v1217_v63 = vadd.f32 1.0, %v2790_v49  ;;  %v2792_v29 = vpop.eup %2791  ;;  %v2039_v36 = vld [vmem:[%s3663_s0 + $0xb0] sm:$0xff] }
 0x516   :  { %2803 = vrcp.f32 %v1205_v57  ;;  %v2794_v59 = vpop.eup %2793  ;;  %v1230_v5 = vadd.f32 1.0, %v2792_v29 }
 0x517   :  { %2805 = vrcp.f32 %v1217_v63  ;;  %v2038_v63 = vld [vmem:[%s3663_s0 + $0xa8] sm:$0xff] }
 0x518   :  { %2807 = vrcp.f32 %v1230_v5  ;;  %v1265_v5 = vunpack.c.h.bf16 %v2038_v63 }
 0x51c   :  { %v2796_v60 = vpop.eup %2795 }
 0x51d   :  { %v2798_v53 = vpop.eup %2797  ;;  %v1238_v38 = vmul.f32 %v2796_v60, %v2794_v59  ;;  %v1267_v60 = vunpack.c.h.bf16 %v2039_v36 }
 0x51e   :  { %v2800_v6 = vpop.eup %2799  ;;  %v1236_v11 = vmul.f32 %v2798_v53, %v3452_v1 }
 0x51f   :  { %v2802_v61 = vpop.eup %2801  ;;  %v1231_v19 = vadd.f32 1.0, %v2800_v6 }
 0x520   :  { %v2804_v12 = vpop.eup %2803  ;;  %v3511_v56 = vadd.f32 %v1238_v38, %v1236_v11 }
 0x521   :  { %v2806_v54 = vpop.eup %2805  ;;  %v1239_v16 = vmul.f32 %v2804_v12, %v2802_v61  ;;  %v2040_v12 = vld [vmem:[%s3663_s0 + $0xb8] sm:$0xff] }
 0x522   :  { %2809 = vtanh.f32 %v3511_v56  ;;  %v1237_v23 = vmul.f32 %v2806_v54, %v3456_v51  ;;  %v2808_v28 = vpop.eup %2807  ;;  %v1268_v44 = vunpack.c.l.bf16 %v2040_v12 }
 0x523   :  { %2811 = vrcp.f32 %v1231_v19 }
 0x524   :  { %v3515_v35 = vadd.f32 %v1239_v16, %v1237_v23 }
 0x526   :  { %2813 = vtanh.f32 %v3515_v35 }
 0x52c   :  { %v2810_v2 = vpop.eup %2809 }
 0x52d   :  { %v1244_v1 = vmul.f32 %v2810_v2, %v2808_v28  ;;  %v2812_v34 = vpop.eup %2811 }
 0x52f   :  { %1335 = vmatmul.mubr.f32.vlgmr.msra.gmra.mrb[20].mxu0 %v1244_v1  ;;  %1412 = vmatmul.mubr.f32.vlgmr.msra.gmra.mrb[20].mxu1 %v1244_v1 }
 0x530   :  { %v2814_v20 = vpop.eup %2813  ;;  %1340 = vmatprep.mubr.f32.mxu0 %v2911_v3  ;;  %1417 = vmatprep.mubr.f32.mxu1 %v2911_v3 }
 0x531   :  { %v1245_v43 = vmul.f32 %v2814_v20, %v2812_v34  ;;  %2529 = vmatpush1.bf16.msra.mxu0 %v2954_v8  ;;  %2561 = vmatpush1.bf16.msra.mxu1 %v3003_v25  ;;  %v1264_v34 = vunpack.c.l.bf16 %v2038_v63 }
 0x532   :  { %2531 = vmatprep.subr.bf16.mxu0 %v2956_v9  ;;  %2563 = vmatprep.subr.bf16.mxu1 %v3028_v33 }
 0x533   :  { %v2118_v51 = vpack.c.bf16 %v1245_v43, %v1244_v1  ;;  %1341 = vmatmul.mubr.f32.gmra.mrb[22].mxu0 %v1245_v43  ;;  %1418 = vmatmul.mubr.f32.gmra.mrb[22].mxu1 %v1245_v43  ;;  %v1269_v1 = vunpack.c.h.bf16 %v2040_v12 }
 0x534   :  { %1568 = vmatprep.mubr.f32.mxu0 %v2911_v3  ;;  %1645 = vmatprep.mubr.f32.mxu1 %v2911_v3 }
 0x535   :  { %2138 = vst [vmem:[%s3664_s2 + $0x20] sm:$0xff] %v2118_v51   ;;  %2533 = vmatpush1.bf16.msra.mxu0 %v2972_v14  ;;  %2565 = vmatpush1.bf16.msra.mxu1 %v3039_v37 }
 0x536   :  { %2535 = vmatprep.subr.bf16.mxu0 %v2981_v17  ;;  %2567 = vmatprep.subr.bf16.mxu1 %v3063_v45 }
 0x539   :  { %2537 = vmatpush1.bf16.msra.mxu0 %v3006_v26  ;;  %2569 = vmatpush1.bf16.msra.mxu1 %v3072_v48 }
 0x53a   :  { %2539 = vmatprep.subr.bf16.mxu0 %v3019_v30  ;;  %2571 = vmatprep.subr.bf16.mxu1 %v3084_v52 }
 0x53d   :  { %2541 = vmatpush1.bf16.msra.mxu0 %v3055_v42  ;;  %2573 = vmatpush1.bf16.msra.mxu1 %v3114_v62 }
 0x53e   :  { %2543 = vmatprep.subr.bf16.mxu0 %v3066_v46  ;;  %2575 = vmatprep.subr.bf16.mxu1 %v3120_v0 }
 0x541   :  { %2545 = vmatpush1.bf16.msra.mxu0 %v3093_v55  ;;  %2577 = vmatpush1.bf16.msra.mxu1 %v3150_v15 }
 0x542   :  { %2547 = vmatprep.subr.bf16.mxu0 %v3102_v58  ;;  %2579 = vmatprep.subr.bf16.mxu1 %v3156_v18 }
 0x545   :  { %2549 = vmatpush1.bf16.msra.mxu0 %v3135_v7  ;;  %2581 = vmatpush1.bf16.msra.mxu1 %v3183_v31 }
 0x546   :  { %2551 = vmatprep.subr.bf16.mxu0 %v3138_v10  ;;  %2583 = vmatprep.subr.bf16.mxu1 %v3186_v32 }
 0x549   :  { %2553 = vmatpush1.bf16.msra.mxu0 %v3171_v24  ;;  %2585 = vmatpush1.bf16.msra.mxu1 %v3205_v40 }
 0x54a   :  { %2555 = vmatprep.subr.bf16.mxu0 %v3174_v27  ;;  %2587 = vmatprep.subr.bf16.mxu1 %v3208_v41 }
 0x54d   :  { %2557 = vmatpush1.bf16.msra.mxu0 %v3201_v39  ;;  %2589 = vmatpush1.bf16.msra.mxu1 %v3218_v47 }
 0x54e   :  { %2591 = vmatprep.subr.bf16.mxu0 %v2943_v4  ;;  %2623 = vmatprep.subr.bf16.mxu1 %v2995_v22  ;;  %v1266_v22 = vunpack.c.l.bf16 %v2039_v36 }
 0x602   :  { %v1336_v21 = vpop.f32.mrb[20].mxu0  ;;  %v1413_v49 = vpop.f32.mrb[20].mxu1 }
 0x603   :  { %v1424_v57 = vadd.f32 %v1336_v21, %v1262_v13  ;;  %v1338_v4 = vpop.f32.mrb[21].mxu0  ;;  %v1415_v29 = vpop.f32.mrb[21].mxu1  ;;  %v1426_v51 = vadd.f32 %v1413_v49, %v1264_v34 }
 0x604   :  { %v1425_v59 = vadd.f32 %v1338_v4, %v1263_v50  ;;  %v1427_v28 = vadd.f32 %v1415_v29, %v1265_v5 }
 0x605   :  { %v2041_v53 = vmul.f32 -1.442695, %v1424_v57 }
 0x606   :  { %v2043_v38 = vmul.f32 -1.442695, %v1425_v59  ;;  %v1342_v6 = vpop.f32.mrb[22].mxu0  ;;  %v1419_v11 = vpop.f32.mrb[22].mxu1  ;;  %v2045_v20 = vmul.f32 -1.442695, %v1427_v28 }
 0x607   :  { %2815 = vpow2.f32 %v2041_v53  ;;  %v1428_v61 = vadd.f32 %v1342_v6, %v1266_v22  ;;  %v1344_v54 = vpop.f32.mrb[23].mxu0  ;;  %v1421_v16 = vpop.f32.mrb[23].mxu1  ;;  %v1430_v4 = vadd.f32 %v1419_v11, %v1268_v44 }
 0x608   :  { %2817 = vpow2.f32 %v2043_v38  ;;  %v1429_v19 = vadd.f32 %v1344_v54, %v1267_v60  ;;  %v1431_v43 = vadd.f32 %v1421_v16, %v1269_v1 }
 0x609   :  { %v2042_v23 = vmul.f32 -1.442695, %v1428_v61 }
 0x60a   :  { %v2044_v2 = vmul.f32 -1.442695, %v1429_v19  ;;  %v2046_v21 = vmul.f32 -1.442695, %v1431_v43 }
 0x60b   :  { %2819 = vpow2.f32 %v2042_v23 }
 0x60c   :  { %2821 = vpow2.f32 %v2044_v2 }
 0x60d   :  { %2823 = vpow2.f32 %v2045_v20 }
 0x60e   :  { %2825 = vtanh.f32 %v1426_v51 }
 0x611   :  { %v2816_v13 = vpop.eup %2815 }
 0x612   :  { %v2818_v50 = vpop.eup %2817  ;;  %v1438_v36 = vadd.f32 1.0, %v2816_v13 }
 0x613   :  { %v1450_v57 = vadd.f32 1.0, %v2818_v50 }
 0x614   :  { %2827 = vrcp.f32 %v1438_v36 }
 0x615   :  { %v2820_v22 = vpop.eup %2819  ;;  %2829 = vrcp.f32 %v1450_v57 }
 0x616   :  { %v2822_v29 = vpop.eup %2821  ;;  %v1439_v59 = vadd.f32 1.0, %v2820_v22  ;;  %2831 = vpow2.f32 %v2046_v21 }
 0x617   :  { %2833 = vtanh.f32 %v1430_v4  ;;  %v1451_v63 = vadd.f32 1.0, %v2822_v29  ;;  %v2824_v49 = vpop.eup %2823 }
 0x618   :  { %2835 = vrcp.f32 %v1439_v59  ;;  %v2826_v60 = vpop.eup %2825  ;;  %v1464_v6 = vadd.f32 1.0, %v2824_v49 }
 0x619   :  { %2837 = vrcp.f32 %v1451_v63 }
 0x61a   :  { %2839 = vrcp.f32 %v1464_v6 }
 0x61e   :  { %v2828_v53 = vpop.eup %2827 }
 0x61f   :  { %v2830_v38 = vpop.eup %2829  ;;  %v1472_v5 = vmul.f32 %v2828_v53, %v2826_v60 }
 0x620   :  { %v2832_v61 = vpop.eup %2831  ;;  %v1470_v12 = vmul.f32 %v2830_v38, %v3511_v56 }
 0x621   :  { %v2834_v11 = vpop.eup %2833  ;;  %v1465_v28 = vadd.f32 1.0, %v2832_v61 }
 0x622   :  { %v2836_v54 = vpop.eup %2835  ;;  %v3570_v16 = vadd.f32 %v1472_v5, %v1470_v12 }
 0x623   :  { %v2838_v19 = vpop.eup %2837  ;;  %v1473_v23 = vmul.f32 %v2836_v54, %v2834_v11 }
 0x624   :  { %2841 = vtanh.f32 %v3570_v16  ;;  %v1471_v2 = vmul.f32 %v2838_v19, %v3515_v35  ;;  %v2840_v34 = vpop.eup %2839 }
 0x625   :  { %2843 = vrcp.f32 %v1465_v28 }
 0x626   :  { %v3574_v1 = vadd.f32 %v1473_v23, %v1471_v2 }
 0x628   :  { %2845 = vtanh.f32 %v3574_v1 }
 0x62e   :  { %v2842_v20 = vpop.eup %2841 }
 0x62f   :  { %v1478_v56 = vmul.f32 %v2842_v20, %v2840_v34  ;;  %v2844_v43 = vpop.eup %2843 }
 0x631   :  { %1569 = vmatmul.mubr.f32.vlgmr.msra.gmra.mrb[24].mxu0 %v1478_v56  ;;  %1646 = vmatmul.mubr.f32.vlgmr.msra.gmra.mrb[24].mxu1 %v1478_v56 }
 0x632   :  { %v2846_v51 = vpop.eup %2845  ;;  %1574 = vmatprep.mubr.f32.mxu0 %v2911_v3  ;;  %1651 = vmatprep.mubr.f32.mxu1 %v2911_v3 }
 0x633   :  { %v1479_v44 = vmul.f32 %v2846_v51, %v2844_v43  ;;  %2593 = vmatpush1.bf16.msra.mxu0 %v2954_v8  ;;  %2625 = vmatpush1.bf16.msra.mxu1 %v3003_v25  ;;  %v2051_v8 = vld [vmem:[%s3663_s0 + $0xc0] sm:$0xff] }
 0x634   :  { %2595 = vmatprep.subr.bf16.mxu0 %v2956_v9  ;;  %2627 = vmatprep.subr.bf16.mxu1 %v3028_v33  ;;  %v1496_v9 = vunpack.c.l.bf16 %v2051_v8  ;;  %v2052_v33 = vld [vmem:[%s3663_s0 + $0xc8] sm:$0xff] }
 0x635   :  { %v2123_v35 = vpack.c.bf16 %v1479_v44, %v1478_v56  ;;  %1575 = vmatmul.mubr.f32.gmra.mrb[26].mxu0 %v1479_v44  ;;  %1652 = vmatmul.mubr.f32.gmra.mrb[26].mxu1 %v1479_v44 }
 0x636   :  { %1802 = vmatprep.mubr.f32.mxu0 %v2911_v3  ;;  %1879 = vmatprep.mubr.f32.mxu1 %v2911_v3 }
 0x637   :  { %2139 = vst [vmem:[%s3664_s2 + $0x28] sm:$0xff] %v2123_v35   ;;  %2597 = vmatpush1.bf16.msra.mxu0 %v2972_v14  ;;  %2629 = vmatpush1.bf16.msra.mxu1 %v3039_v37  ;;  %v1497_v14 = vunpack.c.h.bf16 %v2051_v8 }
 0x638   :  { %2599 = vmatprep.subr.bf16.mxu0 %v2981_v17  ;;  %2631 = vmatprep.subr.bf16.mxu1 %v3063_v45  ;;  %v2053_v17 = vld [vmem:[%s3663_s0 + $0xd0] sm:$0xff] }
 0x639   :  { %v1500_v45 = vunpack.c.l.bf16 %v2053_v17 }
 0x63b   :  { %2601 = vmatpush1.bf16.msra.mxu0 %v3006_v26  ;;  %2633 = vmatpush1.bf16.msra.mxu1 %v3072_v48  ;;  %v1501_v48 = vunpack.c.h.bf16 %v2053_v17 }
 0x63c   :  { %2603 = vmatprep.subr.bf16.mxu0 %v3019_v30  ;;  %2635 = vmatprep.subr.bf16.mxu1 %v3084_v52 }
 0x63f   :  { %2605 = vmatpush1.bf16.msra.mxu0 %v3055_v42  ;;  %2637 = vmatpush1.bf16.msra.mxu1 %v3114_v62 }
 0x640   :  { %2607 = vmatprep.subr.bf16.mxu0 %v3066_v46  ;;  %2639 = vmatprep.subr.bf16.mxu1 %v3120_v0 }
 0x643   :  { %2609 = vmatpush1.bf16.msra.mxu0 %v3093_v55  ;;  %2641 = vmatpush1.bf16.msra.mxu1 %v3150_v15 }
 0x644   :  { %2611 = vmatprep.subr.bf16.mxu0 %v3102_v58  ;;  %2643 = vmatprep.subr.bf16.mxu1 %v3156_v18  ;;  %v1499_v58 = vunpack.c.h.bf16 %v2052_v33 }
 0x647   :  { %2613 = vmatpush1.bf16.msra.mxu0 %v3135_v7  ;;  %2645 = vmatpush1.bf16.msra.mxu1 %v3183_v31 }
 0x648   :  { %2615 = vmatprep.subr.bf16.mxu0 %v3138_v10  ;;  %2647 = vmatprep.subr.bf16.mxu1 %v3186_v32  ;;  %v2054_v10 = vld [vmem:[%s3663_s0 + $0xd8] sm:$0xff] }
 0x649   :  { %v1502_v50 = vunpack.c.l.bf16 %v2054_v10 }
 0x64b   :  { %2617 = vmatpush1.bf16.msra.mxu0 %v3171_v24  ;;  %2649 = vmatpush1.bf16.msra.mxu1 %v3205_v40  ;;  %v1498_v40 = vunpack.c.l.bf16 %v2052_v33 }
 0x64c   :  { %2619 = vmatprep.subr.bf16.mxu0 %v3174_v27  ;;  %2651 = vmatprep.subr.bf16.mxu1 %v3208_v41 }
 0x64f   :  { %2621 = vmatpush1.bf16.msra.mxu0 %v3201_v39  ;;  %2653 = vmatpush1.bf16.msra.mxu1 %v3218_v47  ;;  %v1503_v39 = vunpack.c.h.bf16 %v2054_v10 }
 0x704   :  { %v1570_v25 = vpop.f32.mrb[24].mxu0  ;;  %v1647_v26 = vpop.f32.mrb[24].mxu1 }
 0x705   :  { %v1658_v30 = vadd.f32 %v1570_v25, %v1496_v9  ;;  %v1572_v37 = vpop.f32.mrb[25].mxu0  ;;  %v1649_v42 = vpop.f32.mrb[25].mxu1  ;;  %v1660_v13 = vadd.f32 %v1647_v26, %v1498_v40  ;;  %v2067_v26 = vld [vmem:[%s3663_s0 + $0xf0] sm:$0xff] }
 0x706   :  { %v1659_v46 = vadd.f32 %v1572_v37, %v1497_v14  ;;  %v1661_v31 = vadd.f32 %v1649_v42, %v1499_v58  ;;  %v2066_v37 = vld [vmem:[%s3663_s0 + $0xe8] sm:$0xff] }
 0x707   :  { %v2055_v52 = vmul.f32 -1.442695, %v1658_v30 }
 0x708   :  { %v2057_v55 = vmul.f32 -1.442695, %v1659_v46  ;;  %v1576_v62 = vpop.f32.mrb[26].mxu0  ;;  %v1653_v0 = vpop.f32.mrb[26].mxu1  ;;  %v2059_v41 = vmul.f32 -1.442695, %v1661_v31  ;;  %v1734_v46 = vunpack.c.l.bf16 %v2067_v26 }
 0x709   :  { %2847 = vpow2.f32 %v2055_v52  ;;  %v1662_v7 = vadd.f32 %v1576_v62, %v1500_v45  ;;  %v1578_v15 = vpop.f32.mrb[27].mxu0  ;;  %v1655_v18 = vpop.f32.mrb[27].mxu1  ;;  %v1664_v29 = vadd.f32 %v1653_v0, %v1502_v50  ;;  %v1735_v52 = vunpack.c.h.bf16 %v2067_v26 }
 0x70a   :  { %2849 = vpow2.f32 %v2057_v55  ;;  %v1663_v24 = vadd.f32 %v1578_v15, %v1501_v48  ;;  %v1665_v47 = vadd.f32 %v1655_v18, %v1503_v39  ;;  %v1733_v62 = vunpack.c.h.bf16 %v2066_v37  ;;  %v2068_v15 = vld [vmem:[%s3663_s0 + $0xf8] sm:$0xff] }
 0x70b   :  { %v2056_v27 = vmul.f32 -1.442695, %v1662_v7  ;;  %v1737_v40 = vunpack.c.h.bf16 %v2068_v15 }
 0x70c   :  { %v2058_v32 = vmul.f32 -1.442695, %v1663_v24  ;;  %v2060_v4 = vmul.f32 -1.442695, %v1665_v47 }
 0x70d   :  { %2851 = vpow2.f32 %v2056_v27 }
 0x70e   :  { %2853 = vpow2.f32 %v2058_v32 }
 0x70f   :  { %2855 = vpow2.f32 %v2059_v41  ;;  %v1732_v41 = vunpack.c.l.bf16 %v2066_v37 }
 0x710   :  { %2857 = vtanh.f32 %v1660_v13 }
 0x713   :  { %v2848_v36 = vpop.eup %2847 }
 0x714   :  { %v2850_v21 = vpop.eup %2849  ;;  %v1672_v57 = vadd.f32 1.0, %v2848_v36  ;;  %v1736_v36 = vunpack.c.l.bf16 %v2068_v15 }
 0x715   :  { %v1684_v22 = vadd.f32 1.0, %v2850_v21 }
 0x716   :  { %2859 = vrcp.f32 %v1672_v57 }
 0x717   :  { %v2852_v59 = vpop.eup %2851  ;;  %2861 = vrcp.f32 %v1684_v22 }
 0x718   :  { %v2854_v63 = vpop.eup %2853  ;;  %v1673_v49 = vadd.f32 1.0, %v2852_v59  ;;  %2863 = vpow2.f32 %v2060_v4 }
 0x719   :  { %2865 = vtanh.f32 %v1664_v29  ;;  %v1685_v60 = vadd.f32 1.0, %v2854_v63  ;;  %v2856_v53 = vpop.eup %2855 }
 0x71a   :  { %2867 = vrcp.f32 %v1673_v49  ;;  %v2858_v38 = vpop.eup %2857  ;;  %v1698_v12 = vadd.f32 1.0, %v2856_v53 }
 0x71b   :  { %2869 = vrcp.f32 %v1685_v60 }
 0x71c   :  { %2871 = vrcp.f32 %v1698_v12 }
 0x720   :  { %v2860_v5 = vpop.eup %2859 }
 0x721   :  { %v2862_v6 = vpop.eup %2861  ;;  %v1706_v61 = vmul.f32 %v2860_v5, %v2858_v38 }
 0x722   :  { %v2864_v11 = vpop.eup %2863  ;;  %v1704_v54 = vmul.f32 %v2862_v6, %v3570_v16 }
 0x723   :  { %v2866_v19 = vpop.eup %2865  ;;  %v1699_v20 = vadd.f32 1.0, %v2864_v11 }
 0x724   :  { %v2868_v23 = vpop.eup %2867  ;;  %v3627_v28 = vadd.f32 %v1706_v61, %v1704_v54 }
 0x725   :  { %v2870_v2 = vpop.eup %2869  ;;  %v1707_v34 = vmul.f32 %v2868_v23, %v2866_v19 }
 0x726   :  { %2873 = vtanh.f32 %v3627_v28  ;;  %v1705_v56 = vmul.f32 %v2870_v2, %v3574_v1  ;;  %v2872_v51 = vpop.eup %2871  ;;  %v2065_v1 = vld [vmem:[%s3663_s0 + $0xe0] sm:$0xff] }
 0x727   :  { %2875 = vrcp.f32 %v1699_v20  ;;  %v1730_v17 = vunpack.c.l.bf16 %v2065_v1  ;;  %v1731_v25 = vunpack.c.h.bf16 %v2065_v1 }
 0x728   :  { %v3631_v43 = vadd.f32 %v1707_v34, %v1705_v56 }
 0x72a   :  { %2877 = vtanh.f32 %v3631_v43 }
 0x730   :  { %v2874_v44 = vpop.eup %2873 }
 0x731   :  { %v1712_v16 = vmul.f32 %v2874_v44, %v2872_v51  ;;  %v2876_v35 = vpop.eup %2875 }
 0x733   :  { %1803 = vmatmul.mubr.f32.vlgmr.msra.gmra.mrb[28].mxu0 %v1712_v16  ;;  %1880 = vmatmul.mubr.f32.vlgmr.msra.gmra.mrb[28].mxu1 %v1712_v16 }
 0x734   :  { %v2878_v8 = vpop.eup %2877  ;;  %1808 = vmatprep.mubr.f32.mxu0 %v2911_v3  ;;  %1885 = vmatprep.mubr.f32.mxu1 %v2911_v3 }
 0x735   :  { %v1713_v9 = vmul.f32 %v2878_v8, %v2876_v35 }
 0x737   :  { %v2128_v14 = vpack.c.bf16 %v1713_v9, %v1712_v16  ;;  %1809 = vmatmul.mubr.f32.gmra.mrb[30].mxu0 %v1713_v9  ;;  %1886 = vmatmul.mubr.f32.gmra.mrb[30].mxu1 %v1713_v9 }
 0x739   :  { %2140 = vst [vmem:[%s3664_s2 + $0x30] sm:$0xff] %v2128_v14  }
 0x806   :  { %v1804_v30 = vpop.f32.mrb[28].mxu0  ;;  %v1881_v3 = vpop.f32.mrb[28].mxu1 }
 0x807   :  { %v1892_v33 = vadd.f32 %v1804_v30, %v1730_v17  ;;  %v1806_v42 = vpop.f32.mrb[29].mxu0  ;;  %v1883_v45 = vpop.f32.mrb[29].mxu1  ;;  %v1894_v50 = vadd.f32 %v1881_v3, %v1732_v41 }
 0x808   :  { %v1893_v48 = vadd.f32 %v1806_v42, %v1731_v25  ;;  %v1895_v32 = vadd.f32 %v1883_v45, %v1733_v62 }
 0x809   :  { %v2069_v55 = vmul.f32 -1.442695, %v1892_v33 }
 0x80a   :  { %v2071_v58 = vmul.f32 -1.442695, %v1893_v48  ;;  %v1810_v0 = vpop.f32.mrb[30].mxu0  ;;  %v1887_v7 = vpop.f32.mrb[30].mxu1  ;;  %v2073_v47 = vmul.f32 -1.442695, %v1895_v32 }
 0x80b   :  { %2879 = vpow2.f32 %v2069_v55  ;;  %v1896_v10 = vadd.f32 %v1810_v0, %v1734_v46  ;;  %v1812_v18 = vpop.f32.mrb[31].mxu0  ;;  %v1889_v24 = vpop.f32.mrb[31].mxu1  ;;  %v1898_v59 = vadd.f32 %v1887_v7, %v1736_v36 }
 0x80c   :  { %2881 = vpow2.f32 %v2071_v58  ;;  %v1897_v27 = vadd.f32 %v1812_v18, %v1735_v52  ;;  %v1899_v13 = vadd.f32 %v1889_v24, %v1737_v40 }
 0x80d   :  { %v2070_v31 = vmul.f32 -1.442695, %v1896_v10 }
 0x80e   :  { %v2072_v39 = vmul.f32 -1.442695, %v1897_v27  ;;  %v2074_v22 = vmul.f32 -1.442695, %v1899_v13 }
 0x80f   :  { %2883 = vpow2.f32 %v2070_v31 }
 0x810   :  { %2885 = vpow2.f32 %v2072_v39 }
 0x811   :  { %2887 = vpow2.f32 %v2073_v47 }
 0x812   :  { %2889 = vtanh.f32 %v1894_v50 }
 0x815   :  { %v2880_v21 = vpop.eup %2879 }
 0x816   :  { %v2882_v57 = vpop.eup %2881  ;;  %v1906_v4 = vadd.f32 1.0, %v2880_v21 }
 0x817   :  { %v1918_v29 = vadd.f32 1.0, %v2882_v57 }
 0x818   :  { %2891 = vrcp.f32 %v1906_v4 }
 0x819   :  { %v2884_v63 = vpop.eup %2883  ;;  %2893 = vrcp.f32 %v1918_v29 }
 0x81a   :  { %v2886_v49 = vpop.eup %2885  ;;  %v1907_v60 = vadd.f32 1.0, %v2884_v63  ;;  %2895 = vpow2.f32 %v2074_v22 }
 0x81b   :  { %2897 = vtanh.f32 %v1898_v59  ;;  %v1919_v53 = vadd.f32 1.0, %v2886_v49  ;;  %v2888_v38 = vpop.eup %2887 }
 0x81c   :  { %2899 = vrcp.f32 %v1907_v60  ;;  %v2890_v5 = vpop.eup %2889  ;;  %v1932_v11 = vadd.f32 1.0, %v2888_v38 }
 0x81d   :  { %2901 = vrcp.f32 %v1919_v53 }
 0x81e   :  { %2903 = vrcp.f32 %v1932_v11 }
 0x822   :  { %v2892_v6 = vpop.eup %2891 }
 0x823   :  { %v2894_v61 = vpop.eup %2893  ;;  %v1940_v12 = vmul.f32 %v2892_v6, %v2890_v5 }
 0x824   :  { %v2896_v54 = vpop.eup %2895  ;;  %v1938_v19 = vmul.f32 %v2894_v61, %v3627_v28 }
 0x825   :  { %v2898_v23 = vpop.eup %2897  ;;  %v1933_v51 = vadd.f32 1.0, %v2896_v54 }
 0x826   :  { %v2900_v2 = vpop.eup %2899  ;;  %v1942_v34 = vadd.f32 %v1940_v12, %v1938_v19 }
 0x827   :  { %v2902_v20 = vpop.eup %2901  ;;  %v1941_v56 = vmul.f32 %v2900_v2, %v2898_v23 }
 0x828   :  { %2905 = vtanh.f32 %v1942_v34  ;;  %1963 = vst [vmem:[%s3665_s3] sm:$0xff] %v1942_v34  ;;  %v1939_v44 = vmul.f32 %v2902_v20, %v3631_v43  ;;  %v2904_v28 = vpop.eup %2903 }
 0x829   :  { %2907 = vrcp.f32 %v1933_v51 }
 0x82a   :  { %v1943_v16 = vadd.f32 %v1941_v56, %v1939_v44 }
 0x82c   :  { %2909 = vtanh.f32 %v1943_v16  ;;  %1964 = vst [vmem:[%s3665_s3 + $0x8] sm:$0xff] %v1943_v16 }
 0x832   :  { %v2906_v35 = vpop.eup %2905 }
 0x833   :  { %v1946_v8 = vmul.f32 %v2906_v35, %v2904_v28  ;;  %v2908_v9 = vpop.eup %2907 }
 0x836   :  { %v2910_v14 = vpop.eup %2909 }
 0x837   :  { %v1947_v1 = vmul.f32 %v2910_v14, %v2908_v9 }
 0x839   :  { %v2133_v17 = vpack.c.bf16 %v1947_v1, %v1946_v8 }
 0x83b   :  { %2141 = vst [vmem:[%s3664_s2 + $0x38] sm:$0xff] %v2133_v17  }

</bundles_post_ra>
